<compile_context>
chip_gen: v7x
topology: tpu7x:2x2x1
jax: 0.10.0
libtpu: 0.0.40
codegen_flags: <defaults>
</compile_context>

<pallas_src>
import numpy as np
import jax
import jax.numpy as jnp
from jax import lax
from jax.experimental import pallas as pl
from jax.experimental.pallas import tpu as pltpu


def _make_thp_kernel(N, C, margin):
    """N = padded flat length (multiple of C); C = sublane chunk size."""
    n_chunks = N // C
    INF = float("inf")  # Python float -> literal, never a captured jax-array constant

    def kernel(row_ref, colT_ref, meta_ref, loss_ref):
        # row_ref : (3, N)  VMEM  row 0 = target, row 1 = raw logits, row 2 = scatter weight w
        # colT_ref: (C, 2*n_chunks) VMEM  lane j = target column of chunk j,
        #                                 lane n_chunks + j = logits column of chunk j
        # meta_ref: (2,)   SMEM  [empty_class_flag, nan_term]
        # loss_ref: (1, 1) SMEM  scalar loss
        tgt_r = row_ref[0:1, :]                          # (1, N)
        s_r = jax.nn.sigmoid(row_ref[1:2, :])            # (1, N)  sigmoid(output)
        w_r = row_ref[2:3, :]                            # (1, N)  wrapper-precomputed weights
        ab_r = tgt_r == 1.0                              # abnormal lanes
        nm_r = tgt_r == 0.0                              # normal lanes

        sub = lax.broadcasted_iota(jnp.int32, (C, 1), 0)  # within-chunk row index

        run_min_n = jnp.full((1, N), INF, jnp.float32)    # running min dist to a normal
        run_min_a = jnp.full((1, N), INF, jnp.float32)    # running min dist to an abnormal
        run_s_n = jnp.zeros((1, N), jnp.float32)          # sigmoid value at that argmin
        run_s_a = jnp.zeros((1, N), jnp.float32)

        # Streamed pass over sublane chunks of C positions: each step builds one (C, N) distance
        # tile and folds it into (1, N) running (min, value-at-argmin) accumulators.
        # TODO(synk): for large N move the chunk axis onto a pipelined grid axis (or a bounded-
        #             unroll fori_loop) and lane-tile the position axis with a "parallel" grid
        #             dim; wrapper-precomputed w already makes lanes independent.
        for j in range(n_chunks):                         # static unroll; n_chunks is small here
            tgt_c = colT_ref[:, j:j + 1]                                      # (C, 1)
            s_c = jax.nn.sigmoid(colT_ref[:, n_chunks + j:n_chunks + j + 1])  # (C, 1)
            nm_c = tgt_c == 0.0
            ab_c = tgt_c == 1.0

            D = (s_r - s_c) ** 2                                              # (C, N)

            def fold(mask_c, run_min, run_s):
                # Masked running argmin with torch/np first-occurrence tie-break:
                #   within chunk : smallest row index at the exact chunk min,
                #   across chunks: strict '<' so the earlier chunk keeps ties.
                Dm = jnp.where(mask_c, D, INF)                                # (C, N)
                cmin = jnp.min(Dm, axis=0, keepdims=True)                     # (1, N)
                jmin = jnp.min(jnp.where(Dm == cmin, sub, C), axis=0, keepdims=True)
                s_at = jnp.sum(jnp.where(sub == jmin, s_c, 0.0), axis=0, keepdims=True)
                upd = cmin < run_min
                return jnp.where(upd, cmin, run_min), jnp.where(upd, s_at, run_s)
            # TODO(synk): the 6 sublane reductions/chunk above are now the dominant XLU load;
            #             count-style sums could be offloaded to the idle MXU, but the s_at value
            #             path must stay f32/VPU to keep torch.argmin tie-breaks bit-exact.

            run_min_n, run_s_n = fold(nm_c, run_min_n, run_s_n)
            run_min_a, run_s_a = fold(ab_c, run_min_a, run_s_a)

        # Per-element clamped losses (filteredDists entries), selected per class.
        log_s = jnp.log(s_r)
        ab_loss = jnp.maximum(-(log_s - jnp.log(run_s_n) - margin), 0.0)
        nm_loss = jnp.maximum(-(jnp.log(run_s_a) - log_s - margin), 0.0)
        elem_loss = jnp.where(ab_r, ab_loss, jnp.where(nm_r, nm_loss, 0.0))   # (1, N)

        # The PyTorch "scrambled scatter" + per-window means collapse analytically into one
        # weighted sum; w was precomputed from `target` alone in the wrapper.
        scatter_sum = jnp.sum(elem_loss * w_r)

        empty = meta_ref[0] > 0.5     # either class absent -> calculate_loss returns zeros
        loss_ref[0, 0] = jnp.where(empty, 0.0, scatter_sum) + meta_ref[1]

    return kernel


def temporal_hard_pair_loss(output, target, margin=0.0, mask_value=-1.0):
    """output, target: (B, T) float32. Returns scalar float32 loss."""
    B, T = target.shape
    N = B * T
    C = 64                                  # sublane chunk size (sweep 32/64; 64 per perf review)
    Np = ((N + C - 1) // C) * C             # pad flat length to a multiple of C
    n_chunks = Np // C
    mv = float(mask_value)

    out_flat = output.astype(jnp.float32).reshape(N)
    tgt_flat = target.astype(jnp.float32).reshape(N)

    # ---- target-only bookkeeping, O(N)+O(B), done once in the wrapper ----
    valid = tgt_flat != mv
    ab = tgt_flat == 1.0
    nm = tgt_flat == 0.0
    abf = ab.astype(jnp.float32)
    nmf = nm.astype(jnp.float32)
    n_ab = jnp.sum(abf)
    n_nm = jnp.sum(nmf)
    empty = jnp.logical_or(n_ab == 0.0, n_nm == 0.0)

    rk_ab = jnp.cumsum(abf) - abf           # exclusive prefix count of abnormal clips
    rk_nm = jnp.cumsum(nmf) - nmf           # exclusive prefix count of normal clips
    compact_idx = jnp.where(ab, rk_ab, n_ab + rk_nm)   # index into cat([abLoss, nmLoss])

    cnt = jnp.sum(valid.astype(jnp.float32).reshape(B, T), axis=1)   # (B,) valid clips / window
    cum = jnp.cumsum(cnt) - cnt                                      # exclusive window offsets
    inv_cnt = jnp.where(cnt > 0, 1.0 / jnp.maximum(cnt, 1.0), 0.0)   # guarded (no inf)
    nan_term = jnp.sum(jnp.where(cnt == 0, float("nan"), 0.0))       # mean of empty window = NaN

    # compact rank r lands in window b iff cum[b] <= r < cum[b] + cnt[b]
    inside = (compact_idx[None, :] >= cum[:, None]) & (compact_idx[None, :] < (cum + cnt)[:, None])
    w = jnp.sum(jnp.where(inside, inv_cnt[:, None], 0.0), axis=0)    # (N,)
    w = jnp.where(ab | nm, w, 0.0)                                   # classed elements only

    if Np != N:
        pad = Np - N
        out_flat = jnp.concatenate([out_flat, jnp.zeros((pad,), jnp.float32)])
        tgt_flat = jnp.concatenate([tgt_flat, jnp.full((pad,), mv, jnp.float32)])
        w = jnp.concatenate([w, jnp.zeros((pad,), jnp.float32)])

    row = jnp.stack([tgt_flat, out_flat, w], axis=0)                 # (3, Np)  row layout
    tgt_cols = tgt_flat.reshape(n_chunks, C).T                       # (C, n_chunks)
    out_cols = out_flat.reshape(n_chunks, C).T                       # (C, n_chunks)
    colT = jnp.concatenate([tgt_cols, out_cols], axis=1)             # (C, 2*n_chunks)
    meta = jnp.stack([jnp.where(empty, 1.0, 0.0), nan_term]).astype(jnp.float32)   # (2,)

    kernel = _make_thp_kernel(Np, C, float(margin))
    res = pl.pallas_call(
        kernel,
        out_shape=jax.ShapeDtypeStruct((1, 1), jnp.float32),
        grid=(1,),
        in_specs=[
            pl.BlockSpec((3, Np), lambda i: (0, 0)),
            pl.BlockSpec((C, 2 * n_chunks), lambda i: (0, 0)),
            pl.BlockSpec(memory_space=pltpu.MemorySpace.SMEM),
        ],
        out_specs=pl.BlockSpec(memory_space=pltpu.MemorySpace.SMEM),
    )(row, colT, meta)
    return res[0, 0]


def _reference_thp(output, target, margin=0.0, mask_value=-1.0):
    """Pure numpy transcription of the PyTorch forward (measure='output')."""
    out = np.asarray(output, dtype=np.float32)
    tgt = np.asarray(target, dtype=np.float32)
    s = 1.0 / (1.0 + np.exp(-out))
    B, T = tgt.shape
    tflat = tgt.reshape(-1)
    sflat = s.reshape(-1)
    mask = np.nonzero(tflat != mask_value)[0]
    hp = np.zeros_like(tflat)
    a = tflat[mask]
    o = sflat[mask]
    abm = np.nonzero(a == 1)[0]
    nmm = np.nonzero(a == 0)[0]
    outA, outN = o[abm], o[nmm]
    if outA.shape[0] == 0 or outN.shape[0] == 0:
        fd = np.zeros_like(o)
    else:
        scores = (outA[None, :] - outN[:, None]) ** 2            # (n_norm, n_ab)
        abl = -(np.log(outA) - np.log(outN[scores.argmin(axis=0)]) - margin)
        nml = -(np.log(outA[scores.argmin(axis=1)]) - np.log(outN) - margin)
        fd = np.maximum(np.concatenate([abl, nml], 0), 0.0)
    hp[mask] = fd
    hp = hp.reshape(B, T)
    loss = 0.0
    for b in range(B):
        cf = np.nonzero(tgt[b] != mask_value)[0]
        loss += hp[b, cf].mean()
    return np.float32(loss)


if __name__ == "__main__":
    key = jax.random.PRNGKey(0)
    k1, k2 = jax.random.split(key)
    B, T = 2, 128

    logits = jax.random.normal(k1, (B, T), dtype=jnp.float32)
    # target in {-1 (masked), 0 (normal), 1 (abnormal)}
    target = jax.random.randint(k2, (B, T), minval=-1, maxval=2).astype(jnp.float32)
    # guarantee every window has valid clips and both classes exist
    target = target.at[:, 0].set(0.0).at[:, 1].set(1.0)

    loss = jax.block_until_ready(temporal_hard_pair_loss(logits, target))
    ref = _reference_thp(np.array(logits), np.array(target))
    assert np.allclose(np.array(loss), ref, rtol=1e-3, atol=1e-3), (loss, ref)

    # empty-class branch: all-normal targets -> calculate_loss returns zeros -> loss == 0
    target2 = jnp.zeros((B, T), jnp.float32)
    loss2 = jax.block_until_ready(temporal_hard_pair_loss(logits, target2))
    ref2 = _reference_thp(np.array(logits), np.array(target2))
    assert np.allclose(np.array(loss2), ref2, rtol=1e-3, atol=1e-3), (loss2, ref2)

    print("KERNEL_OK")
</pallas_src>

<mosaic_0001>
module attributes {stable_mosaic.version = 11 : i64} {
  func.func @kernel(%arg0: i32, %arg1: memref<3x256xf32, #tpu.memory_space<vmem>>, %arg2: memref<64x8xf32, #tpu.memory_space<vmem>>, %arg3: memref<2xf32, #tpu.memory_space<smem>>, %arg4: memref<1x1xf32, #tpu.memory_space<smem>>) attributes {dimension_semantics = [#tpu.dimension_semantics<arbitrary>], iteration_bounds = array<i64: 1>, scalar_prefetch = 0 : i64, scratch_operands = 0 : i64, tpu.core_type = #tpu.core_type<tc>, window_params = [{pipeline_mode = #tpu.pipeline_mode<synchronous>, transform_indices = @transform_0, window_bounds = array<i64: 3, 256>}, {pipeline_mode = #tpu.pipeline_mode<synchronous>, transform_indices = @transform_1, window_bounds = array<i64: 64, 8>}, {transform_indices = @transform_2, window_bounds = array<i64: 2>}, {transform_indices = @transform_3, window_bounds = array<i64: 1, 1>}]} {
    %c0 = arith.constant 0 : index
    %c0_0 = arith.constant 0 : index
    %0 = vector.load %arg1[%c0, %c0_0] : memref<3x256xf32, #tpu.memory_space<vmem>>, vector<1x256xf32>
    %c1 = arith.constant 1 : index
    %c0_1 = arith.constant 0 : index
    %1 = vector.load %arg1[%c1, %c0_1] : memref<3x256xf32, #tpu.memory_space<vmem>>, vector<1x256xf32>
    %2 = arith.negf %1 : vector<1x256xf32>
    %3 = math.exp %2 : vector<1x256xf32>
    %cst = arith.constant 1.000000e+00 : f32
    %4 = vector.broadcast %cst : f32 to vector<1x256xf32>
    %5 = arith.addf %4, %3 : vector<1x256xf32>
    %6 = arith.divf %4, %5 : vector<1x256xf32>
    %c2 = arith.constant 2 : index
    %c0_2 = arith.constant 0 : index
    %7 = vector.load %arg1[%c2, %c0_2] : memref<3x256xf32, #tpu.memory_space<vmem>>, vector<1x256xf32>
    %cst_3 = arith.constant 1.000000e+00 : f32
    %8 = vector.broadcast %cst_3 : f32 to vector<1x256xf32>
    %9 = arith.cmpf oeq, %0, %8 : vector<1x256xf32>
    %cst_4 = arith.constant 0.000000e+00 : f32
    %10 = vector.broadcast %cst_4 : f32 to vector<1x256xf32>
    %11 = arith.cmpf oeq, %0, %10 : vector<1x256xf32>
    %12 = tpu.iota {dimensions = array<i32: 0>} : vector<64x1xi32>
    %cst_5 = arith.constant 0x7F800000 : f32
    %13 = vector.broadcast %cst_5 : f32 to vector<1x256xf32>
    %cst_6 = arith.constant 0x7F800000 : f32
    %14 = vector.broadcast %cst_6 : f32 to vector<1x256xf32>
    %cst_7 = arith.constant 0.000000e+00 : f32
    %15 = vector.broadcast %cst_7 : f32 to vector<1x256xf32>
    %cst_8 = arith.constant 0.000000e+00 : f32
    %16 = vector.broadcast %cst_8 : f32 to vector<1x256xf32>
    %c0_9 = arith.constant 0 : index
    %c0_10 = arith.constant 0 : index
    %17 = vector.load %arg2[%c0_9, %c0_10] : memref<64x8xf32, #tpu.memory_space<vmem>>, vector<64x1xf32>
    %c0_11 = arith.constant 0 : index
    %c4 = arith.constant 4 : index
    %18 = vector.load %arg2[%c0_11, %c4] : memref<64x8xf32, #tpu.memory_space<vmem>>, vector<64x1xf32>
    %19 = arith.negf %18 : vector<64x1xf32>
    %20 = math.exp %19 : vector<64x1xf32>
    %cst_12 = arith.constant 1.000000e+00 : f32
    %21 = vector.broadcast %cst_12 : f32 to vector<64x1xf32>
    %22 = arith.addf %21, %20 : vector<64x1xf32>
    %23 = arith.divf %21, %22 : vector<64x1xf32>
    %cst_13 = arith.constant 0.000000e+00 : f32
    %24 = vector.broadcast %cst_13 : f32 to vector<64x1xf32>
    %25 = arith.cmpf oeq, %17, %24 : vector<64x1xf32>
    %cst_14 = arith.constant 1.000000e+00 : f32
    %26 = vector.broadcast %cst_14 : f32 to vector<64x1xf32>
    %27 = arith.cmpf oeq, %17, %26 : vector<64x1xf32>
    %28 = vector.broadcast %6 : vector<1x256xf32> to vector<64x256xf32>
    %29 = vector.broadcast %23 : vector<64x1xf32> to vector<64x256xf32>
    %30 = arith.subf %28, %29 : vector<64x256xf32>
    %31 = arith.mulf %30, %30 : vector<64x256xf32>
    %cst_15 = arith.constant 0x7F800000 : f32
    %32 = vector.shape_cast %25 : vector<64x1xi1> to vector<64x1xi1>
    %33 = vector.broadcast %32 : vector<64x1xi1> to vector<64x256xi1>
    %34 = vector.broadcast %cst_15 : f32 to vector<64x256xf32>
    %35 = arith.select %33, %31, %34 : vector<64x256xi1>, vector<64x256xf32>
    %cst_16 = arith.constant dense<0x7F800000> : vector<256xf32>
    %36 = vector.multi_reduction <minimumf>, %35, %cst_16 [0] : vector<64x256xf32> to vector<256xf32>
    %37 = vector.shape_cast %36 : vector<256xf32> to vector<1x256xf32>
    %38 = vector.broadcast %37 : vector<1x256xf32> to vector<64x256xf32>
    %39 = arith.cmpf oeq, %35, %38 : vector<64x256xf32>
    %c64_i32 = arith.constant 64 : i32
    %40 = vector.shape_cast %12 : vector<64x1xi32> to vector<64x1xi32>
    %41 = vector.broadcast %40 : vector<64x1xi32> to vector<64x256xi32>
    %42 = vector.broadcast %c64_i32 : i32 to vector<64x256xi32>
    %43 = arith.select %39, %41, %42 : vector<64x256xi1>, vector<64x256xi32>
    %cst_17 = arith.constant dense<2147483647> : vector<256xi32>
    %44 = vector.multi_reduction <minsi>, %43, %cst_17 [0] : vector<64x256xi32> to vector<256xi32>
    %45 = vector.shape_cast %44 : vector<256xi32> to vector<1x256xi32>
    %46 = vector.broadcast %12 : vector<64x1xi32> to vector<64x256xi32>
    %47 = vector.broadcast %45 : vector<1x256xi32> to vector<64x256xi32>
    %48 = arith.cmpi eq, %46, %47 : vector<64x256xi32>
    %cst_18 = arith.constant 0.000000e+00 : f32
    %49 = vector.shape_cast %23 : vector<64x1xf32> to vector<64x1xf32>
    %50 = vector.broadcast %49 : vector<64x1xf32> to vector<64x256xf32>
    %51 = vector.broadcast %cst_18 : f32 to vector<64x256xf32>
    %52 = arith.select %48, %50, %51 : vector<64x256xi1>, vector<64x256xf32>
    %cst_19 = arith.constant dense<0.000000e+00> : vector<256xf32>
    %53 = vector.multi_reduction <add>, %52, %cst_19 [0] : vector<64x256xf32> to vector<256xf32>
    %54 = vector.shape_cast %53 : vector<256xf32> to vector<1x256xf32>
    %55 = arith.cmpf olt, %37, %13 : vector<1x256xf32>
    %56 = arith.select %55, %37, %13 : vector<1x256xi1>, vector<1x256xf32>
    %57 = arith.select %55, %54, %15 : vector<1x256xi1>, vector<1x256xf32>
    %cst_20 = arith.constant 0x7F800000 : f32
    %58 = vector.shape_cast %27 : vector<64x1xi1> to vector<64x1xi1>
    %59 = vector.broadcast %58 : vector<64x1xi1> to vector<64x256xi1>
    %60 = vector.broadcast %cst_20 : f32 to vector<64x256xf32>
    %61 = arith.select %59, %31, %60 : vector<64x256xi1>, vector<64x256xf32>
    %cst_21 = arith.constant dense<0x7F800000> : vector<256xf32>
    %62 = vector.multi_reduction <minimumf>, %61, %cst_21 [0] : vector<64x256xf32> to vector<256xf32>
    %63 = vector.shape_cast %62 : vector<256xf32> to vector<1x256xf32>
    %64 = vector.broadcast %63 : vector<1x256xf32> to vector<64x256xf32>
    %65 = arith.cmpf oeq, %61, %64 : vector<64x256xf32>
    %c64_i32_22 = arith.constant 64 : i32
    %66 = vector.shape_cast %12 : vector<64x1xi32> to vector<64x1xi32>
    %67 = vector.broadcast %66 : vector<64x1xi32> to vector<64x256xi32>
    %68 = vector.broadcast %c64_i32_22 : i32 to vector<64x256xi32>
    %69 = arith.select %65, %67, %68 : vector<64x256xi1>, vector<64x256xi32>
    %cst_23 = arith.constant dense<2147483647> : vector<256xi32>
    %70 = vector.multi_reduction <minsi>, %69, %cst_23 [0] : vector<64x256xi32> to vector<256xi32>
    %71 = vector.shape_cast %70 : vector<256xi32> to vector<1x256xi32>
    %72 = vector.broadcast %12 : vector<64x1xi32> to vector<64x256xi32>
    %73 = vector.broadcast %71 : vector<1x256xi32> to vector<64x256xi32>
    %74 = arith.cmpi eq, %72, %73 : vector<64x256xi32>
    %cst_24 = arith.constant 0.000000e+00 : f32
    %75 = vector.shape_cast %23 : vector<64x1xf32> to vector<64x1xf32>
    %76 = vector.broadcast %75 : vector<64x1xf32> to vector<64x256xf32>
    %77 = vector.broadcast %cst_24 : f32 to vector<64x256xf32>
    %78 = arith.select %74, %76, %77 : vector<64x256xi1>, vector<64x256xf32>
    %cst_25 = arith.constant dense<0.000000e+00> : vector<256xf32>
    %79 = vector.multi_reduction <add>, %78, %cst_25 [0] : vector<64x256xf32> to vector<256xf32>
    %80 = vector.shape_cast %79 : vector<256xf32> to vector<1x256xf32>
    %81 = arith.cmpf olt, %63, %14 : vector<1x256xf32>
    %82 = arith.select %81, %63, %14 : vector<1x256xi1>, vector<1x256xf32>
    %83 = arith.select %81, %80, %16 : vector<1x256xi1>, vector<1x256xf32>
    %c0_26 = arith.constant 0 : index
    %c1_27 = arith.constant 1 : index
    %84 = vector.load %arg2[%c0_26, %c1_27] : memref<64x8xf32, #tpu.memory_space<vmem>>, vector<64x1xf32>
    %c0_28 = arith.constant 0 : index
    %c5 = arith.constant 5 : index
    %85 = vector.load %arg2[%c0_28, %c5] : memref<64x8xf32, #tpu.memory_space<vmem>>, vector<64x1xf32>
    %86 = arith.negf %85 : vector<64x1xf32>
    %87 = math.exp %86 : vector<64x1xf32>
    %cst_29 = arith.constant 1.000000e+00 : f32
    %88 = vector.broadcast %cst_29 : f32 to vector<64x1xf32>
    %89 = arith.addf %88, %87 : vector<64x1xf32>
    %90 = arith.divf %88, %89 : vector<64x1xf32>
    %cst_30 = arith.constant 0.000000e+00 : f32
    %91 = vector.broadcast %cst_30 : f32 to vector<64x1xf32>
    %92 = arith.cmpf oeq, %84, %91 : vector<64x1xf32>
    %cst_31 = arith.constant 1.000000e+00 : f32
    %93 = vector.broadcast %cst_31 : f32 to vector<64x1xf32>
    %94 = arith.cmpf oeq, %84, %93 : vector<64x1xf32>
    %95 = vector.broadcast %6 : vector<1x256xf32> to vector<64x256xf32>
    %96 = vector.broadcast %90 : vector<64x1xf32> to vector<64x256xf32>
    %97 = arith.subf %95, %96 : vector<64x256xf32>
    %98 = arith.mulf %97, %97 : vector<64x256xf32>
    %cst_32 = arith.constant 0x7F800000 : f32
    %99 = vector.shape_cast %92 : vector<64x1xi1> to vector<64x1xi1>
    %100 = vector.broadcast %99 : vector<64x1xi1> to vector<64x256xi1>
    %101 = vector.broadcast %cst_32 : f32 to vector<64x256xf32>
    %102 = arith.select %100, %98, %101 : vector<64x256xi1>, vector<64x256xf32>
    %cst_33 = arith.constant dense<0x7F800000> : vector<256xf32>
    %103 = vector.multi_reduction <minimumf>, %102, %cst_33 [0] : vector<64x256xf32> to vector<256xf32>
    %104 = vector.shape_cast %103 : vector<256xf32> to vector<1x256xf32>
    %105 = vector.broadcast %104 : vector<1x256xf32> to vector<64x256xf32>
    %106 = arith.cmpf oeq, %102, %105 : vector<64x256xf32>
    %c64_i32_34 = arith.constant 64 : i32
    %107 = vector.shape_cast %12 : vector<64x1xi32> to vector<64x1xi32>
    %108 = vector.broadcast %107 : vector<64x1xi32> to vector<64x256xi32>
    %109 = vector.broadcast %c64_i32_34 : i32 to vector<64x256xi32>
    %110 = arith.select %106, %108, %109 : vector<64x256xi1>, vector<64x256xi32>
    %cst_35 = arith.constant dense<2147483647> : vector<256xi32>
    %111 = vector.multi_reduction <minsi>, %110, %cst_35 [0] : vector<64x256xi32> to vector<256xi32>
    %112 = vector.shape_cast %111 : vector<256xi32> to vector<1x256xi32>
    %113 = vector.broadcast %12 : vector<64x1xi32> to vector<64x256xi32>
    %114 = vector.broadcast %112 : vector<1x256xi32> to vector<64x256xi32>
    %115 = arith.cmpi eq, %113, %114 : vector<64x256xi32>
    %cst_36 = arith.constant 0.000000e+00 : f32
    %116 = vector.shape_cast %90 : vector<64x1xf32> to vector<64x1xf32>
    %117 = vector.broadcast %116 : vector<64x1xf32> to vector<64x256xf32>
    %118 = vector.broadcast %cst_36 : f32 to vector<64x256xf32>
    %119 = arith.select %115, %117, %118 : vector<64x256xi1>, vector<64x256xf32>
    %cst_37 = arith.constant dense<0.000000e+00> : vector<256xf32>
    %120 = vector.multi_reduction <add>, %119, %cst_37 [0] : vector<64x256xf32> to vector<256xf32>
    %121 = vector.shape_cast %120 : vector<256xf32> to vector<1x256xf32>
    %122 = arith.cmpf olt, %104, %56 : vector<1x256xf32>
    %123 = arith.select %122, %104, %56 : vector<1x256xi1>, vector<1x256xf32>
    %124 = arith.select %122, %121, %57 : vector<1x256xi1>, vector<1x256xf32>
    %cst_38 = arith.constant 0x7F800000 : f32
    %125 = vector.shape_cast %94 : vector<64x1xi1> to vector<64x1xi1>
    %126 = vector.broadcast %125 : vector<64x1xi1> to vector<64x256xi1>
    %127 = vector.broadcast %cst_38 : f32 to vector<64x256xf32>
    %128 = arith.select %126, %98, %127 : vector<64x256xi1>, vector<64x256xf32>
    %cst_39 = arith.constant dense<0x7F800000> : vector<256xf32>
    %129 = vector.multi_reduction <minimumf>, %128, %cst_39 [0] : vector<64x256xf32> to vector<256xf32>
    %130 = vector.shape_cast %129 : vector<256xf32> to vector<1x256xf32>
    %131 = vector.broadcast %130 : vector<1x256xf32> to vector<64x256xf32>
    %132 = arith.cmpf oeq, %128, %131 : vector<64x256xf32>
    %c64_i32_40 = arith.constant 64 : i32
    %133 = vector.shape_cast %12 : vector<64x1xi32> to vector<64x1xi32>
    %134 = vector.broadcast %133 : vector<64x1xi32> to vector<64x256xi32>
    %135 = vector.broadcast %c64_i32_40 : i32 to vector<64x256xi32>
    %136 = arith.select %132, %134, %135 : vector<64x256xi1>, vector<64x256xi32>
    %cst_41 = arith.constant dense<2147483647> : vector<256xi32>
    %137 = vector.multi_reduction <minsi>, %136, %cst_41 [0] : vector<64x256xi32> to vector<256xi32>
    %138 = vector.shape_cast %137 : vector<256xi32> to vector<1x256xi32>
    %139 = vector.broadcast %12 : vector<64x1xi32> to vector<64x256xi32>
    %140 = vector.broadcast %138 : vector<1x256xi32> to vector<64x256xi32>
    %141 = arith.cmpi eq, %139, %140 : vector<64x256xi32>
    %cst_42 = arith.constant 0.000000e+00 : f32
    %142 = vector.shape_cast %90 : vector<64x1xf32> to vector<64x1xf32>
    %143 = vector.broadcast %142 : vector<64x1xf32> to vector<64x256xf32>
    %144 = vector.broadcast %cst_42 : f32 to vector<64x256xf32>
    %145 = arith.select %141, %143, %144 : vector<64x256xi1>, vector<64x256xf32>
    %cst_43 = arith.constant dense<0.000000e+00> : vector<256xf32>
    %146 = vector.multi_reduction <add>, %145, %cst_43 [0] : vector<64x256xf32> to vector<256xf32>
    %147 = vector.shape_cast %146 : vector<256xf32> to vector<1x256xf32>
    %148 = arith.cmpf olt, %130, %82 : vector<1x256xf32>
    %149 = arith.select %148, %130, %82 : vector<1x256xi1>, vector<1x256xf32>
    %150 = arith.select %148, %147, %83 : vector<1x256xi1>, vector<1x256xf32>
    %c0_44 = arith.constant 0 : index
    %c2_45 = arith.constant 2 : index
    %151 = vector.load %arg2[%c0_44, %c2_45] : memref<64x8xf32, #tpu.memory_space<vmem>>, vector<64x1xf32>
    %c0_46 = arith.constant 0 : index
    %c6 = arith.constant 6 : index
    %152 = vector.load %arg2[%c0_46, %c6] : memref<64x8xf32, #tpu.memory_space<vmem>>, vector<64x1xf32>
    %153 = arith.negf %152 : vector<64x1xf32>
    %154 = math.exp %153 : vector<64x1xf32>
    %cst_47 = arith.constant 1.000000e+00 : f32
    %155 = vector.broadcast %cst_47 : f32 to vector<64x1xf32>
    %156 = arith.addf %155, %154 : vector<64x1xf32>
    %157 = arith.divf %155, %156 : vector<64x1xf32>
    %cst_48 = arith.constant 0.000000e+00 : f32
    %158 = vector.broadcast %cst_48 : f32 to vector<64x1xf32>
    %159 = arith.cmpf oeq, %151, %158 : vector<64x1xf32>
    %cst_49 = arith.constant 1.000000e+00 : f32
    %160 = vector.broadcast %cst_49 : f32 to vector<64x1xf32>
    %161 = arith.cmpf oeq, %151, %160 : vector<64x1xf32>
    %162 = vector.broadcast %6 : vector<1x256xf32> to vector<64x256xf32>
    %163 = vector.broadcast %157 : vector<64x1xf32> to vector<64x256xf32>
    %164 = arith.subf %162, %163 : vector<64x256xf32>
    %165 = arith.mulf %164, %164 : vector<64x256xf32>
    %cst_50 = arith.constant 0x7F800000 : f32
    %166 = vector.shape_cast %159 : vector<64x1xi1> to vector<64x1xi1>
    %167 = vector.broadcast %166 : vector<64x1xi1> to vector<64x256xi1>
    %168 = vector.broadcast %cst_50 : f32 to vector<64x256xf32>
    %169 = arith.select %167, %165, %168 : vector<64x256xi1>, vector<64x256xf32>
    %cst_51 = arith.constant dense<0x7F800000> : vector<256xf32>
    %170 = vector.multi_reduction <minimumf>, %169, %cst_51 [0] : vector<64x256xf32> to vector<256xf32>
    %171 = vector.shape_cast %170 : vector<256xf32> to vector<1x256xf32>
    %172 = vector.broadcast %171 : vector<1x256xf32> to vector<64x256xf32>
    %173 = arith.cmpf oeq, %169, %172 : vector<64x256xf32>
    %c64_i32_52 = arith.constant 64 : i32
    %174 = vector.shape_cast %12 : vector<64x1xi32> to vector<64x1xi32>
    %175 = vector.broadcast %174 : vector<64x1xi32> to vector<64x256xi32>
    %176 = vector.broadcast %c64_i32_52 : i32 to vector<64x256xi32>
    %177 = arith.select %173, %175, %176 : vector<64x256xi1>, vector<64x256xi32>
    %cst_53 = arith.constant dense<2147483647> : vector<256xi32>
    %178 = vector.multi_reduction <minsi>, %177, %cst_53 [0] : vector<64x256xi32> to vector<256xi32>
    %179 = vector.shape_cast %178 : vector<256xi32> to vector<1x256xi32>
    %180 = vector.broadcast %12 : vector<64x1xi32> to vector<64x256xi32>
    %181 = vector.broadcast %179 : vector<1x256xi32> to vector<64x256xi32>
    %182 = arith.cmpi eq, %180, %181 : vector<64x256xi32>
    %cst_54 = arith.constant 0.000000e+00 : f32
    %183 = vector.shape_cast %157 : vector<64x1xf32> to vector<64x1xf32>
    %184 = vector.broadcast %183 : vector<64x1xf32> to vector<64x256xf32>
    %185 = vector.broadcast %cst_54 : f32 to vector<64x256xf32>
    %186 = arith.select %182, %184, %185 : vector<64x256xi1>, vector<64x256xf32>
    %cst_55 = arith.constant dense<0.000000e+00> : vector<256xf32>
    %187 = vector.multi_reduction <add>, %186, %cst_55 [0] : vector<64x256xf32> to vector<256xf32>
    %188 = vector.shape_cast %187 : vector<256xf32> to vector<1x256xf32>
    %189 = arith.cmpf olt, %171, %123 : vector<1x256xf32>
    %190 = arith.select %189, %171, %123 : vector<1x256xi1>, vector<1x256xf32>
    %191 = arith.select %189, %188, %124 : vector<1x256xi1>, vector<1x256xf32>
    %cst_56 = arith.constant 0x7F800000 : f32
    %192 = vector.shape_cast %161 : vector<64x1xi1> to vector<64x1xi1>
    %193 = vector.broadcast %192 : vector<64x1xi1> to vector<64x256xi1>
    %194 = vector.broadcast %cst_56 : f32 to vector<64x256xf32>
    %195 = arith.select %193, %165, %194 : vector<64x256xi1>, vector<64x256xf32>
    %cst_57 = arith.constant dense<0x7F800000> : vector<256xf32>
    %196 = vector.multi_reduction <minimumf>, %195, %cst_57 [0] : vector<64x256xf32> to vector<256xf32>
    %197 = vector.shape_cast %196 : vector<256xf32> to vector<1x256xf32>
    %198 = vector.broadcast %197 : vector<1x256xf32> to vector<64x256xf32>
    %199 = arith.cmpf oeq, %195, %198 : vector<64x256xf32>
    %c64_i32_58 = arith.constant 64 : i32
    %200 = vector.shape_cast %12 : vector<64x1xi32> to vector<64x1xi32>
    %201 = vector.broadcast %200 : vector<64x1xi32> to vector<64x256xi32>
    %202 = vector.broadcast %c64_i32_58 : i32 to vector<64x256xi32>
    %203 = arith.select %199, %201, %202 : vector<64x256xi1>, vector<64x256xi32>
    %cst_59 = arith.constant dense<2147483647> : vector<256xi32>
    %204 = vector.multi_reduction <minsi>, %203, %cst_59 [0] : vector<64x256xi32> to vector<256xi32>
    %205 = vector.shape_cast %204 : vector<256xi32> to vector<1x256xi32>
    %206 = vector.broadcast %12 : vector<64x1xi32> to vector<64x256xi32>
    %207 = vector.broadcast %205 : vector<1x256xi32> to vector<64x256xi32>
    %208 = arith.cmpi eq, %206, %207 : vector<64x256xi32>
    %cst_60 = arith.constant 0.000000e+00 : f32
    %209 = vector.shape_cast %157 : vector<64x1xf32> to vector<64x1xf32>
    %210 = vector.broadcast %209 : vector<64x1xf32> to vector<64x256xf32>
    %211 = vector.broadcast %cst_60 : f32 to vector<64x256xf32>
    %212 = arith.select %208, %210, %211 : vector<64x256xi1>, vector<64x256xf32>
    %cst_61 = arith.constant dense<0.000000e+00> : vector<256xf32>
    %213 = vector.multi_reduction <add>, %212, %cst_61 [0] : vector<64x256xf32> to vector<256xf32>
    %214 = vector.shape_cast %213 : vector<256xf32> to vector<1x256xf32>
    %215 = arith.cmpf olt, %197, %149 : vector<1x256xf32>
    %216 = arith.select %215, %197, %149 : vector<1x256xi1>, vector<1x256xf32>
    %217 = arith.select %215, %214, %150 : vector<1x256xi1>, vector<1x256xf32>
    %c0_62 = arith.constant 0 : index
    %c3 = arith.constant 3 : index
    %218 = vector.load %arg2[%c0_62, %c3] : memref<64x8xf32, #tpu.memory_space<vmem>>, vector<64x1xf32>
    %c0_63 = arith.constant 0 : index
    %c7 = arith.constant 7 : index
    %219 = vector.load %arg2[%c0_63, %c7] : memref<64x8xf32, #tpu.memory_space<vmem>>, vector<64x1xf32>
    %220 = arith.negf %219 : vector<64x1xf32>
    %221 = math.exp %220 : vector<64x1xf32>
    %cst_64 = arith.constant 1.000000e+00 : f32
    %222 = vector.broadcast %cst_64 : f32 to vector<64x1xf32>
    %223 = arith.addf %222, %221 : vector<64x1xf32>
    %224 = arith.divf %222, %223 : vector<64x1xf32>
    %cst_65 = arith.constant 0.000000e+00 : f32
    %225 = vector.broadcast %cst_65 : f32 to vector<64x1xf32>
    %226 = arith.cmpf oeq, %218, %225 : vector<64x1xf32>
    %cst_66 = arith.constant 1.000000e+00 : f32
    %227 = vector.broadcast %cst_66 : f32 to vector<64x1xf32>
    %228 = arith.cmpf oeq, %218, %227 : vector<64x1xf32>
    %229 = vector.broadcast %6 : vector<1x256xf32> to vector<64x256xf32>
    %230 = vector.broadcast %224 : vector<64x1xf32> to vector<64x256xf32>
    %231 = arith.subf %229, %230 : vector<64x256xf32>
    %232 = arith.mulf %231, %231 : vector<64x256xf32>
    %cst_67 = arith.constant 0x7F800000 : f32
    %233 = vector.shape_cast %226 : vector<64x1xi1> to vector<64x1xi1>
    %234 = vector.broadcast %233 : vector<64x1xi1> to vector<64x256xi1>
    %235 = vector.broadcast %cst_67 : f32 to vector<64x256xf32>
    %236 = arith.select %234, %232, %235 : vector<64x256xi1>, vector<64x256xf32>
    %cst_68 = arith.constant dense<0x7F800000> : vector<256xf32>
    %237 = vector.multi_reduction <minimumf>, %236, %cst_68 [0] : vector<64x256xf32> to vector<256xf32>
    %238 = vector.shape_cast %237 : vector<256xf32> to vector<1x256xf32>
    %239 = vector.broadcast %238 : vector<1x256xf32> to vector<64x256xf32>
    %240 = arith.cmpf oeq, %236, %239 : vector<64x256xf32>
    %c64_i32_69 = arith.constant 64 : i32
    %241 = vector.shape_cast %12 : vector<64x1xi32> to vector<64x1xi32>
    %242 = vector.broadcast %241 : vector<64x1xi32> to vector<64x256xi32>
    %243 = vector.broadcast %c64_i32_69 : i32 to vector<64x256xi32>
    %244 = arith.select %240, %242, %243 : vector<64x256xi1>, vector<64x256xi32>
    %cst_70 = arith.constant dense<2147483647> : vector<256xi32>
    %245 = vector.multi_reduction <minsi>, %244, %cst_70 [0] : vector<64x256xi32> to vector<256xi32>
    %246 = vector.shape_cast %245 : vector<256xi32> to vector<1x256xi32>
    %247 = vector.broadcast %12 : vector<64x1xi32> to vector<64x256xi32>
    %248 = vector.broadcast %246 : vector<1x256xi32> to vector<64x256xi32>
    %249 = arith.cmpi eq, %247, %248 : vector<64x256xi32>
    %cst_71 = arith.constant 0.000000e+00 : f32
    %250 = vector.shape_cast %224 : vector<64x1xf32> to vector<64x1xf32>
    %251 = vector.broadcast %250 : vector<64x1xf32> to vector<64x256xf32>
    %252 = vector.broadcast %cst_71 : f32 to vector<64x256xf32>
    %253 = arith.select %249, %251, %252 : vector<64x256xi1>, vector<64x256xf32>
    %cst_72 = arith.constant dense<0.000000e+00> : vector<256xf32>
    %254 = vector.multi_reduction <add>, %253, %cst_72 [0] : vector<64x256xf32> to vector<256xf32>
    %255 = vector.shape_cast %254 : vector<256xf32> to vector<1x256xf32>
    %256 = arith.cmpf olt, %238, %190 : vector<1x256xf32>
    %257 = arith.select %256, %255, %191 : vector<1x256xi1>, vector<1x256xf32>
    %cst_73 = arith.constant 0x7F800000 : f32
    %258 = vector.shape_cast %228 : vector<64x1xi1> to vector<64x1xi1>
    %259 = vector.broadcast %258 : vector<64x1xi1> to vector<64x256xi1>
    %260 = vector.broadcast %cst_73 : f32 to vector<64x256xf32>
    %261 = arith.select %259, %232, %260 : vector<64x256xi1>, vector<64x256xf32>
    %cst_74 = arith.constant dense<0x7F800000> : vector<256xf32>
    %262 = vector.multi_reduction <minimumf>, %261, %cst_74 [0] : vector<64x256xf32> to vector<256xf32>
    %263 = vector.shape_cast %262 : vector<256xf32> to vector<1x256xf32>
    %264 = vector.broadcast %263 : vector<1x256xf32> to vector<64x256xf32>
    %265 = arith.cmpf oeq, %261, %264 : vector<64x256xf32>
    %c64_i32_75 = arith.constant 64 : i32
    %266 = vector.shape_cast %12 : vector<64x1xi32> to vector<64x1xi32>
    %267 = vector.broadcast %266 : vector<64x1xi32> to vector<64x256xi32>
    %268 = vector.broadcast %c64_i32_75 : i32 to vector<64x256xi32>
    %269 = arith.select %265, %267, %268 : vector<64x256xi1>, vector<64x256xi32>
    %cst_76 = arith.constant dense<2147483647> : vector<256xi32>
    %270 = vector.multi_reduction <minsi>, %269, %cst_76 [0] : vector<64x256xi32> to vector<256xi32>
    %271 = vector.shape_cast %270 : vector<256xi32> to vector<1x256xi32>
    %272 = vector.broadcast %12 : vector<64x1xi32> to vector<64x256xi32>
    %273 = vector.broadcast %271 : vector<1x256xi32> to vector<64x256xi32>
    %274 = arith.cmpi eq, %272, %273 : vector<64x256xi32>
    %cst_77 = arith.constant 0.000000e+00 : f32
    %275 = vector.shape_cast %224 : vector<64x1xf32> to vector<64x1xf32>
    %276 = vector.broadcast %275 : vector<64x1xf32> to vector<64x256xf32>
    %277 = vector.broadcast %cst_77 : f32 to vector<64x256xf32>
    %278 = arith.select %274, %276, %277 : vector<64x256xi1>, vector<64x256xf32>
    %cst_78 = arith.constant dense<0.000000e+00> : vector<256xf32>
    %279 = vector.multi_reduction <add>, %278, %cst_78 [0] : vector<64x256xf32> to vector<256xf32>
    %280 = vector.shape_cast %279 : vector<256xf32> to vector<1x256xf32>
    %281 = arith.cmpf olt, %263, %216 : vector<1x256xf32>
    %282 = arith.select %281, %280, %217 : vector<1x256xi1>, vector<1x256xf32>
    %283 = math.log %6 : vector<1x256xf32>
    %284 = math.log %257 : vector<1x256xf32>
    %285 = arith.subf %283, %284 : vector<1x256xf32>
    %cst_79 = arith.constant 0.000000e+00 : f32
    %286 = vector.broadcast %cst_79 : f32 to vector<1x256xf32>
    %287 = arith.subf %285, %286 : vector<1x256xf32>
    %cst_80 = arith.constant 0.000000e+00 : f32
    %288 = vector.broadcast %cst_80 : f32 to vector<1x256xf32>
    %289 = arith.subf %288, %287 : vector<1x256xf32>
    %cst_81 = arith.constant 0.000000e+00 : f32
    %290 = vector.broadcast %cst_81 : f32 to vector<1x256xf32>
    %291 = arith.maximumf %289, %290 : vector<1x256xf32>
    %292 = math.log %282 : vector<1x256xf32>
    %293 = arith.subf %292, %283 : vector<1x256xf32>
    %cst_82 = arith.constant 0.000000e+00 : f32
    %294 = vector.broadcast %cst_82 : f32 to vector<1x256xf32>
    %295 = arith.subf %293, %294 : vector<1x256xf32>
    %cst_83 = arith.constant 0.000000e+00 : f32
    %296 = vector.broadcast %cst_83 : f32 to vector<1x256xf32>
    %297 = arith.subf %296, %295 : vector<1x256xf32>
    %cst_84 = arith.constant 0.000000e+00 : f32
    %298 = vector.broadcast %cst_84 : f32 to vector<1x256xf32>
    %299 = arith.maximumf %297, %298 : vector<1x256xf32>
    %cst_85 = arith.constant 0.000000e+00 : f32
    %300 = vector.broadcast %cst_85 : f32 to vector<1x256xf32>
    %301 = arith.select %11, %299, %300 : vector<1x256xi1>, vector<1x256xf32>
    %302 = arith.select %9, %291, %301 : vector<1x256xi1>, vector<1x256xf32>
    %303 = arith.mulf %302, %7 : vector<1x256xf32>
    %304 = vector.shape_cast %303 : vector<1x256xf32> to vector<1x1x256xf32>
    %cst_86 = arith.constant dense<0.000000e+00> : vector<1xf32>
    %305 = vector.multi_reduction <add>, %304, %cst_86 [1, 2] : vector<1x1x256xf32> to vector<1xf32>
    %306 = vector.shape_cast %305 : vector<1xf32> to vector<1x1x1xf32>
    %307 = vector.extract %306[0, 0, 0] : f32 from vector<1x1x1xf32>
    %c0_87 = arith.constant 0 : index
    %308 = memref.load %arg3[%c0_87] : memref<2xf32, #tpu.memory_space<smem>>
    %cst_88 = arith.constant 5.000000e-01 : f32
    %309 = arith.cmpf ogt, %308, %cst_88 : f32
    %cst_89 = arith.constant 0.000000e+00 : f32
    %310 = arith.select %309, %cst_89, %307 : f32
    %c1_90 = arith.constant 1 : index
    %311 = memref.load %arg3[%c1_90] : memref<2xf32, #tpu.memory_space<smem>>
    %312 = arith.addf %310, %311 : f32
    %c0_91 = arith.constant 0 : index
    %c0_92 = arith.constant 0 : index
    %313 = memref.load %arg4[%c0_91, %c0_92] : memref<1x1xf32, #tpu.memory_space<smem>>
    memref.store %312, %arg4[%c0_91, %c0_92] : memref<1x1xf32, #tpu.memory_space<smem>>
    return
  }
  func.func @transform_0(%arg0: i32) -> (i32, i32) {
    %c0_i32 = arith.constant 0 : i32
    %c0_i32_0 = arith.constant 0 : i32
    %c0_i32_1 = arith.constant 0 : i32
    return %c0_i32, %c0_i32_0 : i32, i32
  }
  func.func @transform_1(%arg0: i32) -> (i32, i32) {
    %c0_i32 = arith.constant 0 : i32
    %c0_i32_0 = arith.constant 0 : i32
    %c0_i32_1 = arith.constant 0 : i32
    return %c0_i32, %c0_i32_0 : i32, i32
  }
  func.func @transform_2(%arg0: i32) -> i32 {
    %c0_i32 = arith.constant 0 : i32
    %c0_i32_0 = arith.constant 0 : i32
    return %c0_i32 : i32
  }
  func.func @transform_3(%arg0: i32) -> (i32, i32) {
    %c0_i32 = arith.constant 0 : i32
    %c0_i32_0 = arith.constant 0 : i32
    %c0_i32_1 = arith.constant 0 : i32
    return %c0_i32, %c0_i32_0 : i32, i32
  }
}

</mosaic_0001>

<bundles_post_ra>
// kernel: tpu_custom_call.1
= control target key start
LH: loop header
LB: loop body
LE: loop exit
PB: predicated region body
PF: predicated region fallthrough
CT: control target
= control target key end

     0   :  { %8 = vsyncpa [#allocation4], 0  ;;  %s5645_s0 = inlined_call_operand.vmem [shape: f32[3,256], index: 0, kind: input, shape index: {}]   ;;  %s5646_s1 = inlined_call_operand.vmem [shape: f32[64,8], index: 1, kind: input, shape index: {}]   ;;  %s5647_s2 = inlined_call_operand.vmem [shape: f32[2], index: 2, kind: input, shape index: {}]   ;;  %s5648_s3 = inlined_call_operand.hbm [shape: f32[1,1], index: 3, kind: output, shape index: {}]  }
   0x1   :  { %9 = vsyncpa [#allocation3], 0  ;;  %s20_s14 = sshll.u32 %s5647_s2, 4  ;;  %s21_s14 = int_to_ptr.vmem [resolvable:$true] %s20_s14 }
   0x2   :  { %s2361_s15 = scalar_lea.vmem %s21_s14, 16  ;;  %p2366_p1 = scmp.lt.s32.totalorder %s21_s14, %s21_s14 }
   0x3   :  { %p2362_p0 = scmp.ne.s32.totalorder %s21_s14, %s2361_s15  ;;  %p2367_p2 = scmp.lt.s32.totalorder %s2361_s15, %s2361_s15 }
   0x5   :  { %p2368_p3 = por %p2367_p2, %p2366_p1 }
   0x7   :  { %p2369_p4 = pnand %p2368_p3, %p2362_p0 }
   0x9   :  { %2372 = shalt.err (!%p2369_p4)
}
   0xa   :  { %s2387_s16 = smov [#allocation2]  }
   0xb   :  { %23 = dma.vmem_to_smem %s21_s14, 16, %s2387_s16, [#allocation4]  }
   0xc   :  { %2383 = dma.done.wait [#allocation4], 16  }
   0xd   :  { %2384 = vsyncadd [#allocation4], 4294967280 }
   0xe   :  { %27 = sfence }
   0xf   :  { %v2424_v0 = vld [vmem:[%s5646_s1 + $0x8] sm:$0xff]  ;;  %v2429_v1 = vld [vmem:[%s5646_s1 + $0x10] sm:$0xff]  ;;  %v2434_v2 = vld [vmem:[%s5646_s1 + $0x20] sm:$0xff]  ;;  %v2388_v3 = vmov 0   ;;  %v2389_v6 = vmov 4   ;;  %v2390_v46 = vmov 6  }
  0x10   :  { %2276 = vset.pattern.permute.xlu1 %v2388_v3  ;;  %vm107_vm0 = vcmp.eq.f32.partialorder %v2424_v0, 0.0  ;;  %v2255_v4 = vmul.f32 -1.442695, %v2424_v0  ;;  %v2256_v5 = vmul.f32 -1.442695, %v2429_v1  ;;  %vm108_vm1 = vcmp.eq.f32.partialorder %v2429_v1, 0.0  ;;  %2277 = vset.pattern.permute.xlu0 %v2389_v6 }
  0x11   :  { %v2442_v7 = vsel %vm107_vm0, 1, %v2388_v3  ;;  %v2258_v8 = vmul.f32 -1.442695, %v2434_v2  ;;  %v2448_v9 = vld [vmem:[%s5646_s1] sm:$0xff]  ;;  %v2455_v11 = vld [vmem:[%s5646_s1 + $0x18] sm:$0xff]  ;;  %v2460_v12 = vld [vmem:[%s5646_s1 + $0x28] sm:$0xff] }
  0x12   :  { %217 = vperm.xlu1 %2276, %v2442_v7   ;;  %2315 = vpow2.f32 %v2255_v4  ;;  %v2254_v10 = vmul.f32 -1.442695, %v2448_v9  ;;  %v2465_v13 = vld [vmem:[%s5646_s1 + $0x38] sm:$0xff]  ;;  %v2468_v14 = vsel %vm108_vm1, 1, %v2388_v3  ;;  %v2257_v15 = vmul.f32 -1.442695, %v2455_v11 }
  0x13   :  { %2317 = vpow2.f32 %v2256_v5  ;;  %v2259_v16 = vmul.f32 -1.442695, %v2460_v12  ;;  %vm110_vm2 = vcmp.eq.f32.partialorder %v2434_v2, 0.0  ;;  %v2476_v17 = vld [vmem:[%s5646_s1 + $0x30] sm:$0xff]  ;;  %v2261_v18 = vmul.f32 -1.442695, %v2465_v13 }
  0x14   :  { %2319 = vpow2.f32 %v2258_v8  ;;  %v2481_v19 = vsel %vm110_vm2, 1, %v2388_v3  ;;  %v2260_v20 = vmul.f32 -1.442695, %v2476_v17  ;;  %vm112_vm3 = vcmp.eq.f32.partialorder %v2476_v17, 0.0  ;;  %s2262_s10 = sld [smem:[#allocation2 + $0x1]]  ;;  %s2373_s15 = scalar_lea.hbm %s5648_s3, 16 }
  0x15   :  { %2321 = vpow2.f32 %v2254_v10  ;;  %v2511_v45 = vsel %vm112_vm3, 1, %v2388_v3  ;;  %vm114_vm4 = vcmp.eq.f32.partialorder %v2448_v9, 1.0  ;;  %vm116_vm5 = vcmp.eq.f32.partialorder %v2429_v1, 1.0  ;;  %v2251_v1 = vld [vmem:[%s5645_s0 + $0x1] ss:$4 sm:$0x3]  ;;  %p2374_p6 = scmp.ne.s32.totalorder %s5648_s3, %s2373_s15  ;;  %p2377_p7 = scmp.lt.u32.totalorder %s2373_s15, %s5648_s3 }
  0x16   :  { %220 = vperm.xlu1 %2276, %v2468_v14   ;;  %2323 = vpow2.f32 %v2257_v15  ;;  %v2518_v47 = vsel %vm114_vm4, 1, %v2388_v3  ;;  %v2524_v48 = vsel %vm116_vm5, 1, %v2388_v3  ;;  %vm118_vm6 = vcmp.eq.f32.partialorder %v2434_v2, 1.0 }
  0x17   :  { %2325 = vpow2.f32 %v2259_v16  ;;  %v2530_v49 = vsel %vm118_vm6, 1, %v2388_v3  ;;  %v2391_v50 = vmov 5   ;;  %vm106_vm7 = vcmp.eq.f32.partialorder %v2448_v9, 0.0  ;;  %p2379_p8 = pnand %p2377_p7, %p2374_p6 }
  0x18   :  { %2327 = vpow2.f32 %v2261_v18  ;;  %v2542_v51 = vsel %vm106_vm7, 1, %v2388_v3  ;;  %vm109_vm8 = vcmp.eq.f32.partialorder %v2455_v11, 0.0  ;;  %vm111_vm9 = vcmp.eq.f32.partialorder %v2460_v12, 0.0 }
  0x19   :  { %2329 = vpow2.f32 %v2260_v20  ;;  %v2549_v52 = vsel %vm109_vm8, 1, %v2388_v3  ;;  %v2555_v53 = vsel %vm111_vm9, 1, %v2388_v3  ;;  %vm113_vm10 = vcmp.eq.f32.partialorder %v2465_v13, 0.0 }
  0x1a   :  { %226 = vperm.xlu1 %2276, %v2481_v19   ;;  %v2561_v54 = vsel %vm113_vm10, 1, %v2388_v3  ;;  %vm115_vm11 = vcmp.eq.f32.partialorder %v2424_v0, 1.0  ;;  %vm117_vm12 = vcmp.eq.f32.partialorder %v2455_v11, 1.0  ;;  %v5655_v56 = vmov 7  }
  0x1b   :  { %v2567_v55 = vsel %vm115_vm11, 1, %v2388_v3  ;;  %v2574_v57 = vsel %vm117_vm12, 1, %v2388_v3  ;;  %vm120_vm13 = vcmp.eq.f32.partialorder %v2476_v17, 1.0  ;;  %v5649_v59 = vmov 1  }
  0x1c   :  { %v2316_v21 = vpop.eup %2315  ;;  %v2580_v58 = vsel %vm120_vm13, 1, %v2388_v3  ;;  %vm119_vm14 = vcmp.eq.f32.partialorder %v2460_v12, 1.0  ;;  %v5653_v61 = vmov 2   ;;  %vm121_vm15 = vcmp.eq.f32.partialorder %v2465_v13, 1.0 }
  0x1d   :  { %v2318_v22 = vpop.eup %2317  ;;  %v83_v27 = vadd.f32 1.0, %v2316_v21  ;;  %v2595_v60 = vsel %vm119_vm14, 1, %v2388_v3  ;;  %v2252_v4 = vmul.f32 -1.442695, %v2251_v1  ;;  %v5651_v13 = vmov 3  }
  0x1e   :  { %v2320_v23 = vpop.eup %2319  ;;  %v84_v24 = vadd.f32 1.0, %v2318_v22  ;;  %2278 = vset.pattern.permute.xlu1 %v2389_v6  ;;  %v2640_v6 = vsel %vm121_vm15, 1, %v2388_v3  ;;  %v41_v22 = vlaneseq }
  0x1f   :  { %v2322_v25 = vpop.eup %2321  ;;  %v86_v33 = vadd.f32 1.0, %v2320_v23 }
  0x20   :  { %v2324_v26 = vpop.eup %2323  ;;  %2331 = vrcp.f32 %v84_v24  ;;  %v82_v28 = vadd.f32 1.0, %v2322_v25 }
  0x21   :  { %v2326_v29 = vpop.eup %2325  ;;  %v85_v30 = vadd.f32 1.0, %v2324_v26 }
  0x22   :  { %2333 = vrcp.f32 %v82_v28  ;;  %v87_v31 = vadd.f32 1.0, %v2326_v29  ;;  %v2328_v32 = vpop.eup %2327 }
  0x23   :  { %2335 = vrcp.f32 %v85_v30  ;;  %v2330_v34 = vpop.eup %2329  ;;  %v89_v35 = vadd.f32 1.0, %v2328_v32 }
  0x24   :  { %2337 = vrcp.f32 %v83_v27  ;;  %v88_v36 = vadd.f32 1.0, %v2330_v34 }
  0x25   :  { %2339 = vrcp.f32 %v87_v31 }
  0x26   :  { %2341 = vrcp.f32 %v86_v33 }
  0x27   :  { %2343 = vrcp.f32 %v89_v35 }
  0x28   :  { %2345 = vrcp.f32 %v88_v36 }
  0x29   :  { %2347 = vpow2.f32 %v2252_v4 }
  0x2a   :  { %v2485_v37 = vpop.eup %2331 }
  0x2b   :  { %145 = vperm.xlu1 %2278, %v2485_v37  }
  0x2c   :  { %v2488_v38 = vpop.eup %2333 }
  0x2d   :  { %v2490_v39 = vpop.eup %2335  ;;  %135 = vperm.xlu0 %2277, %v2488_v38  }
  0x2e   :  { %v2493_v40 = vpop.eup %2337 }
  0x2f   :  { %150 = vperm.xlu1 %2278, %v2490_v39   ;;  %v2496_v41 = vpop.eup %2339 }
  0x30   :  { %v2499_v42 = vpop.eup %2341 }
  0x31   :  { %140 = vperm.xlu0 %2277, %v2493_v40   ;;  %v2502_v43 = vpop.eup %2343 }
  0x32   :  { %v2505_v44 = vpop.eup %2345 }
  0x33   :  { %160 = vperm.xlu1 %2278, %v2496_v41   ;;  %v2348_v16 = vpop.eup %2347 }
  0x34   :  { %v34_v18 = vadd.f32 1.0, %v2348_v16 }
  0x35   :  { %155 = vperm.xlu0 %2277, %v2499_v42  }
  0x36   :  { %2349 = vrcp.f32 %v34_v18 }
  0x37   :  { %170 = vperm.xlu1 %2278, %v2502_v43  }
  0x39   :  { %165 = vperm.xlu0 %2277, %v2505_v44  }
  0x3b   :  { %2279 = vset.pattern.permute.xlu1 %v2388_v3 }
  0x3c   :  { %232 = vperm.xlu1 %2279, %v2511_v45  }
  0x3d   :  { %2282 = vset.pattern.permute.xlu0 %v2390_v46 }
  0x3e   :  { %1154 = vperm.xlu0 %2282, %v2493_v40  }
  0x40   :  { %438 = vperm.xlu1 %2279, %v2518_v47   ;;  %v2689_v28 = vpop.eup %2349 }
  0x41   :  { %6006 = vst [vmem:[#allocation24_spill] sm:$0xff] %v2689_v28 }
  0x42   :  { %1170 = vperm.xlu0 %2282, %v2496_v41  }
  0x44   :  { %444 = vperm.xlu1 %2279, %v2524_v48  }
  0x46   :  { %2287 = vset.pattern.permute.xlu0 %v2391_v50 }
  0x47   :  { %654 = vperm.xlu0 %2287, %v2488_v38  }
  0x48   :  { %450 = vperm.xlu1 %2279, %v2530_v49  }
  0x4b   :  { %666 = vperm.xlu0 %2287, %v2490_v39  }
  0x4c   :  { %2280 = vset.pattern.permute.xlu1 %v2391_v50 }
  0x4d   :  { %658 = vperm.xlu1 %2280, %v2493_v40  }
  0x4f   :  { %670 = vperm.xlu0 %2287, %v2499_v42  }
  0x51   :  { %662 = vperm.xlu1 %2280, %v2485_v37  }
  0x53   :  { %682 = vperm.xlu0 %2287, %v2502_v43  }
  0x55   :  { %2281 = vset.pattern.permute.xlu1 %v2390_v46 }
  0x56   :  { %1150 = vperm.xlu1 %2281, %v2488_v38  }
  0x57   :  { %2290 = vset.pattern.permute.xlu0 %v2388_v3 }
  0x58   :  { %214 = vperm.xlu0 %2290, %v2542_v51  }
  0x5a   :  { %1158 = vperm.xlu1 %2281, %v2485_v37  }
  0x5c   :  { %223 = vperm.xlu0 %2290, %v2549_v52  }
  0x5e   :  { %1162 = vperm.xlu1 %2281, %v2490_v39  }
  0x60   :  { %229 = vperm.xlu0 %2290, %v2555_v53  }
  0x62   :  { %2283 = vset.pattern.permute.xlu1 %v2391_v50 }
  0x63   :  { %674 = vperm.xlu1 %2283, %v2496_v41  }
  0x64   :  { %235 = vperm.xlu0 %2290, %v2561_v54  }
  0x67   :  { %2284 = vset.pattern.permute.xlu1 %v5655_v56 }
  0x68   :  { %441 = vperm.xlu0 %2290, %v2567_v55   ;;  %1646 = vperm.xlu1 %2284, %v2488_v38  }
  0x6c   :  { %447 = vperm.xlu0 %2290, %v2574_v57   ;;  %1654 = vperm.xlu1 %2284, %v2485_v37  }
  0x70   :  { %456 = vperm.xlu0 %2290, %v2580_v58   ;;  %1658 = vperm.xlu1 %2284, %v2490_v39  }
  0x74   :  { %2298 = vset.pattern.permute.xlu0 %v5655_v56  ;;  %2285 = vset.pattern.permute.xlu1 %v5649_v59 }
  0x75   :  { %1650 = vperm.xlu0 %2298, %v2493_v40   ;;  %937 = vperm.xlu1 %2285, %v2567_v55  }
  0x79   :  { %1662 = vperm.xlu0 %2298, %v2499_v42   ;;  %940 = vperm.xlu1 %2285, %v2524_v48  }
  0x7d   :  { %1670 = vperm.xlu0 %2298, %v2505_v44   ;;  %2286 = vset.pattern.permute.xlu1 %v2390_v46 }
  0x7e   :  { %1166 = vperm.xlu1 %2286, %v2499_v42  }
  0x81   :  { %2302 = vset.pattern.permute.xlu0 %v5649_v59 }
  0x82   :  { %934 = vperm.xlu0 %2302, %v2518_v47   ;;  %2288 = vset.pattern.permute.xlu1 %v2388_v3 }
  0x83   :  { %453 = vperm.xlu1 %2288, %v2595_v60  }
  0x86   :  { %943 = vperm.xlu0 %2302, %v2574_v57  }
  0x87   :  { %2289 = vset.pattern.permute.xlu1 %v2391_v50 }
  0x88   :  { %678 = vperm.xlu1 %2289, %v2505_v44  }
  0x8a   :  { %724 = vperm.xlu0 %2302, %v2468_v14  }
  0x8c   :  { %2291 = vset.pattern.permute.xlu1 %v5649_v59 }
  0x8d   :  { %718 = vperm.xlu1 %2291, %v2542_v51  }
  0x8e   :  { %949 = vperm.xlu0 %2302, %v2595_v60  }
  0x91   :  { %721 = vperm.xlu1 %2291, %v2442_v7   ;;  %v2612_v62 = vpop.permute.xlu1 %217 }
  0x92   :  { %733 = vperm.xlu0 %2302, %v2555_v53   ;;  %vm238_vm0 = vcmp.eq.s32.totalorder %v2612_v62, 1 }
  0x95   :  { %727 = vperm.xlu1 %2291, %v2549_v52   ;;  %v2619_v63 = vpop.permute.xlu1 %220 }
  0x96   :  { %952 = vperm.xlu0 %2302, %v2580_v58   ;;  %vm239_vm1 = vcmp.eq.s32.totalorder %v2619_v63, 1 }
  0x99   :  { %2292 = vset.pattern.permute.xlu1 %v5653_v61  ;;  %v2623_v0 = vpop.permute.xlu1 %226 }
  0x9a   :  { %736 = vperm.xlu0 %2302, %v2511_v45   ;;  %1430 = vperm.xlu1 %2292, %v2518_v47   ;;  %vm241_vm2 = vcmp.eq.s32.totalorder %v2623_v0, 1 }
  0x9e   :  { %2308 = vset.pattern.permute.xlu0 %v5653_v61  ;;  %1436 = vperm.xlu1 %2292, %v2524_v48  }
  0x9f   :  { %1433 = vperm.xlu0 %2308, %v2567_v55  }
  0xa2   :  { %1439 = vperm.xlu1 %2292, %v2574_v57  }
  0xa3   :  { %1214 = vperm.xlu0 %2308, %v2542_v51  }
  0xa6   :  { %2293 = vset.pattern.permute.xlu1 %v5655_v56 }
  0xa7   :  { %1223 = vperm.xlu0 %2308, %v2549_v52   ;;  %1666 = vperm.xlu1 %2293, %v2496_v41  }
  0xaa   :  { %v2632_v2 = vpop.permute.xlu1 %145 }
  0xab   :  { %5990 = vst [vmem:[#allocation8_spill] sm:$0xff] %v2632_v2  ;;  %1229 = vperm.xlu0 %2308, %v2555_v53   ;;  %2294 = vset.pattern.permute.xlu1 %v5649_v59 }
  0xac   :  { %v2636_v5 = vpop.permute.xlu0 %135  ;;  %946 = vperm.xlu1 %2294, %v2530_v49  }
  0xad   :  { %5991 = vst [vmem:[#allocation9_spill] sm:$0xff] %v2636_v5 }
  0xae   :  { %v2642_v8 = vpop.permute.xlu1 %150 }
  0xaf   :  { %5992 = vst [vmem:[#allocation10_spill] sm:$0xff] %v2642_v8  ;;  %1451 = vperm.xlu0 %2308, %v2640_v6  }
  0xb0   :  { %v2645_v9 = vpop.permute.xlu0 %140  ;;  %2295 = vset.pattern.permute.xlu1 %v2390_v46 }
  0xb1   :  { %5993 = vst [vmem:[#allocation11_spill] sm:$0xff] %v2645_v9  ;;  %1174 = vperm.xlu1 %2295, %v2505_v44  }
  0xb2   :  { %v2649_v10 = vpop.permute.xlu1 %160 }
  0xb3   :  { %5994 = vst [vmem:[#allocation12_spill] sm:$0xff] %v2649_v10  ;;  %1232 = vperm.xlu0 %2308, %v2511_v45  }
  0xb4   :  { %v2652_v11 = vpop.permute.xlu0 %155 }
  0xb5   :  { %5995 = vst [vmem:[#allocation13_spill] sm:$0xff] %v2652_v11  ;;  %1178 = vperm.xlu1 %2295, %v2502_v43  }
  0xb6   :  { %v2655_v12 = vpop.permute.xlu1 %170 }
  0xb7   :  { %5996 = vst [vmem:[#allocation14_spill] sm:$0xff] %v2655_v12  ;;  %2312 = vset.pattern.permute.xlu0 %v5651_v13 }
  0xb8   :  { %v2658_v15 = vpop.permute.xlu0 %165  ;;  %1927 = vperm.xlu0 %2312, %v2567_v55  }
  0xb9   :  { %5997 = vst [vmem:[#allocation15_spill] sm:$0xff] %v2658_v15  ;;  %2296 = vset.pattern.permute.xlu1 %v5653_v61 }
  0xba   :  { %1217 = vperm.xlu1 %2296, %v2442_v7  }
  0xbb   :  { %v2663_v17 = vpop.permute.xlu1 %232 }
  0xbc   :  { %1713 = vperm.xlu0 %2312, %v2442_v7   ;;  %v2679_v7 = vshrl.u32 %v41_v22, 7  ;;  %vm243_vm6 = vcmp.eq.s32.totalorder %v2663_v17, 1 }
  0xbd   :  { %v2666_v20 = vpop.permute.xlu0 %1154 }
  0xbe   :  { %5998 = vst [vmem:[#allocation16_spill] sm:$0xff] %v2666_v20  ;;  %1220 = vperm.xlu1 %2296, %v2468_v14   ;;  %6002 = vst [vmem:[#allocation20_spill] sm:$0xff] %v2679_v7  ;;  %v2687_v27 = vsub.s32 0, %v2679_v7  ;;  %v2695_v30 = vsub.s32 1, %v2679_v7 }
  0xbf   :  { %v2669_v21 = vpop.permute.xlu1 %438 }
  0xc0   :  { %5999 = vst [vmem:[#allocation17_spill] sm:$0xff] %v2669_v21  ;;  %1942 = vperm.xlu0 %2312, %v2580_v58   ;;  %6005 = vst [vmem:[#allocation23_spill] sm:$0xff] %v2687_v27  ;;  %v2701_v32 = vrot.slane %v2689_v28, %v2687_v27  ;;  %v2708_v34 = vrot.slane %v2689_v28, %v2695_v30 }
  0xc1   :  { %v2672_v23 = vpop.permute.xlu0 %1170  ;;  %6008 = vst [vmem:[#allocation26_spill] sm:$0xff] %v2695_v30 }
  0xc2   :  { %6000 = vst [vmem:[#allocation18_spill] sm:$0xff] %v2672_v23  ;;  %2297 = vset.pattern.permute.xlu1 %v5651_v13  ;;  %6010 = vst [vmem:[#allocation28_spill] sm:$0xff] %v2701_v32  ;;  %v177_v36 = vsub.f32 %v2701_v32, %v2632_v2  ;;  %v178_v38 = vsub.f32 %v2708_v34, %v2632_v2  ;;  %v173_v39 = vsub.f32 %v2701_v32, %v2636_v5 }
  0xc3   :  { %v2675_v24 = vpop.permute.xlu1 %444  ;;  %1924 = vperm.xlu1 %2297, %v2518_v47   ;;  %6012 = vst [vmem:[#allocation30_spill] sm:$0xff] %v2708_v34  ;;  %v174_v40 = vsub.f32 %v2708_v34, %v2636_v5  ;;  %v176_v44 = vsub.f32 %v2708_v34, %v2645_v9  ;;  %v179_v46 = vsub.f32 %v2701_v32, %v2642_v8 }
  0xc4   :  { %6001 = vst [vmem:[#allocation19_spill] sm:$0xff] %v2675_v24  ;;  %1731 = vperm.xlu0 %2312, %v2561_v54   ;;  %v2726_v41 = vmul.f32 %v177_v36, %v177_v36  ;;  %v180_v47 = vsub.f32 %v2708_v34, %v2642_v8  ;;  %v182_v50 = vsub.f32 %v2708_v34, %v2652_v11  ;;  %v6026_v24 = vmov 7  }
  0xc5   :  { %v2748_v4 = vmul.f32 %v173_v39, %v173_v39  ;;  %v2750_v16 = vmul.f32 %v174_v40, %v174_v40  ;;  %v2760_v36 = vmul.f32 %v176_v44, %v176_v44  ;;  %v184_v39 = vsub.f32 %v2708_v34, %v2649_v10 }
  0xc6   :  { %v2681_v25 = vpop.permute.xlu0 %654  ;;  %6015 = vst [vmem:[#allocation33_spill] sm:$0xff] %v2726_v41  ;;  %v2755_v18 = vsel %vm239_vm1, %v2726_v41, inf  ;;  %v2773_v13 = vmul.f32 %v182_v50, %v182_v50  ;;  %v186_v50 = vsub.f32 %v2708_v34, %v2658_v15 }
  0xc7   :  { %6003 = vst [vmem:[#allocation21_spill] sm:$0xff] %v2681_v25  ;;  %v2683_v26 = vpop.permute.xlu1 %450  ;;  %1930 = vperm.xlu1 %2297, %v2524_v48   ;;  %v181_v48 = vsub.f32 %v2701_v32, %v2652_v11  ;;  %6018 = vst [vmem:[#allocation36_spill] sm:$0xff] %v2748_v4 }
  0xc8   :  { %6004 = vst [vmem:[#allocation22_spill] sm:$0xff] %v2683_v26  ;;  %6019 = vst [vmem:[#allocation37_spill] sm:$0xff] %v2750_v16  ;;  %v2839_v41 = vmul.f32 %v186_v50, %v186_v50 }
  0xc9   :  { %v2771_v40 = vmul.f32 %v181_v48, %v181_v48  ;;  %6022 = vst [vmem:[#allocation40_spill] sm:$0xff] %v2773_v13 }
  0xca   :  { %v2691_v29 = vpop.permute.xlu0 %666  ;;  %6025 = vst [vmem:[#allocation43_spill] sm:$0xff] %v2839_v41 }
  0xcb   :  { %6007 = vst [vmem:[#allocation25_spill] sm:$0xff] %v2691_v29  ;;  %1933 = vperm.xlu1 %2297, %v2574_v57   ;;  %v2744_v57 = vmul.f32 %v178_v38, %v178_v38  ;;  %v2762_v38 = vmul.f32 %v179_v46, %v179_v46  ;;  %6021 = vst [vmem:[#allocation39_spill] sm:$0xff] %v2771_v40  ;;  %v2822_v62 = vsel %vm241_vm2, %v2771_v40, inf }
  0xcc   :  { %v2697_v31 = vpop.permute.xlu1 %658 }
  0xcd   :  { %6009 = vst [vmem:[#allocation27_spill] sm:$0xff] %v2697_v31  ;;  %6017 = vst [vmem:[#allocation35_spill] sm:$0xff] %v2744_v57  ;;  %v2788_v56 = vsel %vm239_vm1, %v2744_v57, inf  ;;  %v187_v57 = vsub.f32 %v2701_v32, %v2655_v12 }
  0xce   :  { %v2703_v33 = vpop.permute.xlu0 %670 }
  0xcf   :  { %6011 = vst [vmem:[#allocation29_spill] sm:$0xff] %v2703_v33  ;;  %2299 = vset.pattern.permute.xlu1 %v2388_v3  ;;  %v175_v3 = vsub.f32 %v2701_v32, %v2645_v9  ;;  %v2855_v17 = vmul.f32 %v187_v57, %v187_v57 }
  0xd0   :  { %v2710_v35 = vpop.permute.xlu1 %662  ;;  %459 = vperm.xlu1 %2299, %v2640_v6  }
  0xd1   :  { %6013 = vst [vmem:[#allocation31_spill] sm:$0xff] %v2710_v35  ;;  %v2746_v1 = vmul.f32 %v175_v3, %v175_v3  ;;  %v183_v3 = vsub.f32 %v2701_v32, %v2649_v10  ;;  %6028 = vst [vmem:[#allocation45_spill] sm:$0xff] %v2855_v17 }
  0xd2   :  { %v2715_v37 = vpop.permute.xlu0 %682 }
  0xd3   :  { %6014 = vst [vmem:[#allocation32_spill] sm:$0xff] %v2715_v37  ;;  %v2793_v48 = vsel %vm238_vm0, %v2746_v1, inf  ;;  %v2814_v37 = vmul.f32 %v183_v3, %v183_v3  ;;  %v188_v3 = vsub.f32 %v2708_v34, %v2655_v12 }
  0xd4   :  { %2300 = vset.pattern.permute.xlu1 %v5649_v59  ;;  %v2764_v59 = vmul.f32 %v180_v47, %v180_v47 }
  0xd5   :  { %730 = vperm.xlu1 %2300, %v2481_v19   ;;  %v2729_v42 = vpop.permute.xlu1 %1150  ;;  %v2857_v12 = vmul.f32 %v188_v3, %v188_v3 }
  0xd6   :  { %6016 = vst [vmem:[#allocation34_spill] sm:$0xff] %v2729_v42 }
  0xd7   :  { %v215_v55 = vpop.permute.xlu0 %214  ;;  %6029 = vst [vmem:[#allocation46_spill] sm:$0xff] %v2857_v12 }
  0xd8   :  { %vm237_vm3 = vcmp.eq.s32.totalorder %v215_v55, 1  ;;  %v2800_v55 = vsel %vm238_vm0, %v2760_v36, inf }
  0xd9   :  { %2301 = vset.pattern.permute.xlu1 %v5653_v61  ;;  %v2758_v22 = vpop.permute.xlu1 %1158  ;;  %v2777_v44 = vsel %vm237_vm3, %v2748_v4, inf  ;;  %v2781_v46 = vsel %vm237_vm3, %v2750_v16, inf  ;;  %v185_v61 = vsub.f32 %v2701_v32, %v2658_v15  ;;  %v2816_v16 = vmul.f32 %v184_v39, %v184_v39 }
  0xda   :  { %6020 = vst [vmem:[#allocation38_spill] sm:$0xff] %v2758_v22  ;;  %1442 = vperm.xlu1 %2301, %v2530_v49   ;;  %v261_v27 = vmin.f32 %v2777_v44, %v2755_v18  ;;  %v274_v28 = vmin.f32 %v2781_v46, %v2788_v56 }
  0xdb   :  { %v224_v47 = vpop.permute.xlu0 %223  ;;  %v2833_v39 = vmul.f32 %v185_v61, %v185_v61 }
  0xdc   :  { %vm240_vm4 = vcmp.eq.s32.totalorder %v224_v47, 1  ;;  %v263_v61 = vmin.f32 %v261_v27, %v2822_v62 }
  0xdd   :  { %v2803_v30 = vsel %vm240_vm4, %v2762_v38, inf  ;;  %v2806_v63 = vsel %vm240_vm4, %v2764_v59, inf  ;;  %v2808_v47 = vpop.permute.xlu1 %1162  ;;  %6024 = vst [vmem:[#allocation42_spill] sm:$0xff] %v2833_v39  ;;  %v2861_v27 = vsel %vm243_vm6, %v2833_v39, inf  ;;  %v6030_v39 = vmov 3  }
  0xde   :  { %6023 = vst [vmem:[#allocation41_spill] sm:$0xff] %v2808_v47  ;;  %1445 = vperm.xlu1 %2301, %v2595_v60   ;;  %v2827_v47 = vsel %vm241_vm2, %v2773_v13, inf  ;;  %v262_v23 = vmin.f32 %v2793_v48, %v2803_v30  ;;  %v275_v40 = vmin.f32 %v2800_v55, %v2806_v63  ;;  %v265_v57 = vmin.f32 %v263_v61, %v2861_v27 }
  0xdf   :  { %v230_v4 = vpop.permute.xlu0 %229  ;;  %v276_v26 = vmin.f32 %v274_v28, %v2827_v47  ;;  %v2864_v28 = vsel %vm243_vm6, %v2839_v41, inf }
  0xe0   :  { %vm242_vm5 = vcmp.eq.s32.totalorder %v230_v4, 1 }
  0xe1   :  { %v2843_v0 = vsel %vm242_vm5, %v2814_v37, inf  ;;  %v2846_v13 = vsel %vm242_vm5, %v2816_v16, inf  ;;  %v278_v3 = vmin.f32 %v276_v26, %v2864_v28 }
  0xe2   :  { %v264_v21 = vmin.f32 %v262_v23, %v2843_v0  ;;  %v277_v20 = vmin.f32 %v275_v40, %v2846_v13  ;;  %2303 = vset.pattern.permute.xlu1 %v6026_v24  ;;  %v2853_v4 = vpop.permute.xlu1 %674 }
  0xe3   :  { %6027 = vst [vmem:[#allocation44_spill] sm:$0xff] %v2853_v4  ;;  %v236_v50 = vpop.permute.xlu0 %235  ;;  %1674 = vperm.xlu1 %2303, %v2502_v43  }
  0xe4   :  { %vm244_vm7 = vcmp.eq.s32.totalorder %v236_v50, 1 }
  0xe5   :  { %v2867_v23 = vsel %vm244_vm7, %v2855_v17, inf  ;;  %v2870_v24 = vsel %vm244_vm7, %v2857_v12, inf }
  0xe6   :  { %v266_v40 = vmin.f32 %v264_v21, %v2867_v23  ;;  %v279_v43 = vmin.f32 %v277_v20, %v2870_v24 }
  0xe7   :  { %v442_v50 = vpop.permute.xlu0 %441  ;;  %2304 = vset.pattern.permute.xlu1 %v6030_v39  ;;  %v2877_v4 = vpop.permute.xlu1 %1646 }
  0xe8   :  { %6031 = vst [vmem:[#allocation47_spill] sm:$0xff] %v2877_v4  ;;  %v267_v41 = vmin.f32 %v265_v57, %v266_v40  ;;  %v280_v15 = vmin.f32 %v278_v3, %v279_v43  ;;  %vm462_vm8 = vcmp.eq.s32.totalorder %v442_v50, 1  ;;  %1710 = vperm.xlu1 %2304, %v2542_v51   ;;  %v6043_v3 = vmov 1  }
  0xe9   :  { %v2881_v61 = vsel %vm462_vm8, %v2746_v1, inf  ;;  %v2884_v21 = vsel %vm462_vm8, %v2760_v36, inf }
  0xea   :  { %v268_v12 = vrot.slane %v267_v41, 4  ;;  %v281_v17 = vrot.slane %v280_v15, 4  ;;  %6032 = vst [vmem:[#allocation48_spill] sm:$0xff] %v2881_v61  ;;  %6033 = vst [vmem:[#allocation49_spill] sm:$0xff] %v2884_v21 }
  0xeb   :  { %v448_v26 = vpop.permute.xlu0 %447  ;;  %v2886_v20 = vpop.permute.xlu1 %1654 }
  0xec   :  { %6034 = vst [vmem:[#allocation50_spill] sm:$0xff] %v2886_v20  ;;  %v269_v10 = vmin.f32 %v267_v41, %v268_v12  ;;  %v282_v33 = vmin.f32 %v280_v15, %v281_v17  ;;  %vm464_vm9 = vcmp.eq.s32.totalorder %v448_v26, 1  ;;  %1716 = vperm.xlu1 %2304, %v2468_v14   ;;  %v2909_v17 = vadd.s32 24, %v2679_v7 }
  0xed   :  { %v2890_v57 = vsel %vm464_vm9, %v2762_v38, inf  ;;  %v2893_v51 = vsel %vm464_vm9, %v2764_v59, inf  ;;  %v2903_v38 = vadd.s32 8, %v2679_v7  ;;  %v2906_v59 = vadd.s32 16, %v2679_v7 }
  0xee   :  { %6035 = vst [vmem:[#allocation51_spill] sm:$0xff] %v2890_v57  ;;  %6036 = vst [vmem:[#allocation52_spill] sm:$0xff] %v2893_v51  ;;  %v270_v40 = vrot.slane %v269_v10, 2  ;;  %v283_v1 = vrot.slane %v282_v33, 2 }
  0xef   :  { %v2899_v43 = vpop.permute.xlu1 %1658  ;;  %6038 = vst [vmem:[#allocation54_spill] sm:$0xff] %v2903_v38  ;;  %6039 = vst [vmem:[#allocation55_spill] sm:$0xff] %v2906_v59 }
  0xf0   :  { %6037 = vst [vmem:[#allocation53_spill] sm:$0xff] %v2899_v43  ;;  %v271_v12 = vmin.f32 %v269_v10, %v270_v40  ;;  %v284_v15 = vmin.f32 %v282_v33, %v283_v1  ;;  %1719 = vperm.xlu1 %2304, %v2549_v52   ;;  %6040 = vst [vmem:[#allocation56_spill] sm:$0xff] %v2909_v17  ;;  %v2919_v52 = vadd.s32 32, %v2679_v7  ;;  %v2922_v33 = vadd.s32 40, %v2679_v7 }
  0xf1   :  { %v2925_v40 = vadd.s32 48, %v2679_v7  ;;  %v2928_v1 = vadd.s32 56, %v2679_v7 }
  0xf2   :  { %v272_v14 = vrot.slane %v271_v12, 1  ;;  %v285_v41 = vrot.slane %v284_v15, 1  ;;  %6045 = vst [vmem:[#allocation60_spill] sm:$0xff] %v2919_v52  ;;  %6046 = vst [vmem:[#allocation61_spill] sm:$0xff] %v2922_v33 }
  0xf3   :  { %6047 = vst [vmem:[#allocation62_spill] sm:$0xff] %v2925_v40  ;;  %6048 = vst [vmem:[#allocation63_spill] sm:$0xff] %v2928_v1 }
  0xf4   :  { %v2911_v50 = vmin.f32 %v271_v12, %v272_v14  ;;  %v2913_v26 = vmin.f32 %v284_v15, %v285_v41  ;;  %2305 = vset.pattern.permute.xlu1 %v6043_v3  ;;  %v2916_v10 = vpop.permute.xlu1 %937  ;;  %v6049_v15 = vmov 2  }
  0xf5   :  { %6044 = vst [vmem:[#allocation59_spill] sm:$0xff] %v2916_v10  ;;  %955 = vperm.xlu1 %2305, %v2640_v6  }
  0xf6   :  { %6041 = vst [vmem:[#allocation57_spill] sm:$0xff] %v2911_v50  ;;  %6042 = vst [vmem:[#allocation58_spill] sm:$0xff] %v2913_v26  ;;  %vm287_vm10 = vcmp.eq.f32.partialorder %v2777_v44, %v2911_v50  ;;  %vm288_vm11 = vcmp.eq.f32.partialorder %v2781_v46, %v2913_v26  ;;  %vm289_vm12 = vcmp.eq.f32.partialorder %v2793_v48, %v2911_v50 }
  0xf7   :  { %vm290_vm13 = vcmp.eq.f32.partialorder %v2800_v55, %v2913_v26  ;;  %vm291_vm14 = vcmp.eq.f32.partialorder %v2755_v18, %v2911_v50  ;;  %vm292_vm15 = vcmp.eq.f32.partialorder %v2788_v56, %v2913_v26  ;;  %vm293_vm0 = vcmp.eq.f32.partialorder %v2803_v30, %v2911_v50 }
  0xf8   :  { %vm294_vm1 = vcmp.eq.f32.partialorder %v2806_v63, %v2913_v26  ;;  %vm295_vm2 = vcmp.eq.f32.partialorder %v2822_v62, %v2911_v50  ;;  %vm296_vm3 = vcmp.eq.f32.partialorder %v2827_v47, %v2913_v26  ;;  %vm297_vm4 = vcmp.eq.f32.partialorder %v2843_v0, %v2911_v50  ;;  %v2955_v12 = vpop.permute.xlu1 %940 }
  0xf9   :  { %vm298_vm5 = vcmp.eq.f32.partialorder %v2846_v13, %v2913_v26  ;;  %vm299_vm6 = vcmp.eq.f32.partialorder %v2861_v27, %v2911_v50  ;;  %vm300_vm7 = vcmp.eq.f32.partialorder %v2864_v28, %v2913_v26  ;;  %vm301_vm8 = vcmp.eq.f32.partialorder %v2867_v23, %v2911_v50  ;;  %2306 = vset.pattern.permute.xlu1 %v6049_v15 }
  0xfa   :  { %vm302_vm9 = vcmp.eq.f32.partialorder %v2870_v24, %v2913_v26  ;;  %v303_v14 = vsel %vm287_vm10, %v2679_v7, 64  ;;  %v304_v41 = vsel %vm288_vm11, %v2679_v7, 64  ;;  %v305_v36 = vsel %vm289_vm12, %v2903_v38, 64  ;;  %1226 = vperm.xlu1 %2306, %v2481_v19  }
  0xfb   :  { %v306_v10 = vsel %vm290_vm13, %v2903_v38, 64  ;;  %v307_v44 = vsel %vm291_vm14, %v2906_v59, 64  ;;  %v308_v46 = vsel %vm292_vm15, %v2906_v59, 64  ;;  %v309_v48 = vsel %vm293_vm0, %v2909_v17, 64 }
  0xfc   :  { %v310_v55 = vsel %vm294_vm1, %v2909_v17, 64  ;;  %v311_v18 = vsel %vm295_vm2, %v2919_v52, 64  ;;  %v312_v56 = vsel %vm296_vm3, %v2919_v52, 64  ;;  %v313_v30 = vsel %vm297_vm4, %v2922_v33, 64 }
  0xfd   :  { %v314_v63 = vsel %vm298_vm5, %v2922_v33, 64  ;;  %v315_v62 = vsel %vm299_vm6, %v2925_v40, 64  ;;  %v316_v47 = vsel %vm300_vm7, %v2925_v40, 64  ;;  %v317_v0 = vsel %vm301_vm8, %v2928_v1, 64  ;;  %v3031_v43 = vpop.permute.xlu1 %1166 }
  0xfe   :  { %v318_v13 = vsel %vm302_vm9, %v2928_v1, 64  ;;  %6050 = vst [vmem:[#allocation64_spill] sm:$0xff] %v3031_v43  ;;  %vm319_vm10 = vcmp.lt.s32.totalorder %v303_v14, %v307_v44  ;;  %vm321_vm11 = vcmp.lt.s32.totalorder %v305_v36, %v309_v48  ;;  %vm342_vm12 = vcmp.lt.s32.totalorder %v304_v41, %v308_v46  ;;  %2307 = vset.pattern.permute.xlu1 %v6030_v39 }
  0xff   :  { %vm344_vm13 = vcmp.lt.s32.totalorder %v306_v10, %v310_v55  ;;  %v320_v27 = vsel %vm319_vm10, %v303_v14, %v307_v44  ;;  %v322_v28 = vsel %vm321_vm11, %v305_v36, %v309_v48  ;;  %v343_v20 = vsel %vm342_vm12, %v304_v41, %v308_v46  ;;  %1936 = vperm.xlu1 %2307, %v2530_v49  }
 0x100   :  { %v345_v4 = vsel %vm344_vm13, %v306_v10, %v310_v55  ;;  %vm323_vm14 = vcmp.lt.s32.totalorder %v320_v27, %v311_v18  ;;  %vm325_vm15 = vcmp.lt.s32.totalorder %v322_v28, %v313_v30  ;;  %vm346_vm0 = vcmp.lt.s32.totalorder %v343_v20, %v312_v56  ;;  %v3035_v10 = vpop.permute.xlu0 %456 }
 0x101   :  { %vm348_vm1 = vcmp.lt.s32.totalorder %v345_v4, %v314_v63  ;;  %v324_v23 = vsel %vm323_vm14, %v320_v27, %v311_v18  ;;  %v326_v24 = vsel %vm325_vm15, %v322_v28, %v313_v30  ;;  %v347_v26 = vsel %vm346_vm0, %v343_v20, %v312_v56 }
 0x102   :  { %v349_v43 = vsel %vm348_vm1, %v345_v4, %v314_v63  ;;  %vm327_vm2 = vcmp.lt.s32.totalorder %v324_v23, %v315_v62  ;;  %vm329_vm3 = vcmp.lt.s32.totalorder %v326_v24, %v317_v0  ;;  %vm350_vm4 = vcmp.lt.s32.totalorder %v347_v26, %v316_v47  ;;  %v454_v50 = vpop.permute.xlu1 %453 }
 0x103   :  { %vm352_vm5 = vcmp.lt.s32.totalorder %v349_v43, %v318_v13  ;;  %v328_v1 = vsel %vm327_vm2, %v324_v23, %v315_v62  ;;  %v330_v14 = vsel %vm329_vm3, %v326_v24, %v317_v0  ;;  %v351_v36 = vsel %vm350_vm4, %v347_v26, %v316_v47  ;;  %1939 = vperm.xlu1 %2307, %v2595_v60  }
 0x104   :  { %v353_v41 = vsel %vm352_vm5, %v349_v43, %v318_v13  ;;  %vm331_vm6 = vcmp.lt.s32.totalorder %v328_v1, %v330_v14  ;;  %v3038_v4 = vpop.permute.xlu0 %1650  ;;  %vm466_vm8 = vcmp.eq.s32.totalorder %v454_v50, 1  ;;  %v6056_v56 = vmin.f32 %v2884_v21, %v2893_v51  ;;  %v6104_v51 = vld [vmem:[#allocation41_spill] sm:$0xff] }
 0x105   :  { %vm354_vm7 = vcmp.lt.s32.totalorder %v351_v36, %v353_v41  ;;  %v332_v49 = vsel %vm331_vm6, %v328_v1, %v330_v14  ;;  %6051 = vst [vmem:[#allocation65_spill] sm:$0xff] %v3038_v4  ;;  %v3045_v60 = vsel %vm466_vm8, %v2814_v37, inf  ;;  %v3048_v1 = vsel %vm466_vm8, %v2816_v16, inf }
 0x106   :  { %v355_v44 = vsel %vm354_vm7, %v351_v36, %v353_v41  ;;  %v333_v46 = vrot.slane %v332_v49, 4  ;;  %6053 = vst [vmem:[#allocation67_spill] sm:$0xff] %v3045_v60  ;;  %6054 = vst [vmem:[#allocation68_spill] sm:$0xff] %v3048_v1  ;;  %v3060_v30 = vmin.f32 %v6056_v56, %v3048_v1  ;;  %v685_v24 = vsub.f32 %v2701_v32, %v2681_v25 }
 0x107   :  { %v356_v20 = vrot.slane %v355_v44, 4  ;;  %2309 = vset.pattern.permute.xlu1 %v6043_v3  ;;  %v3041_v48 = vpop.permute.xlu1 %678  ;;  %v6055_v3 = vmin.f32 %v2881_v61, %v2890_v57  ;;  %v692_v14 = vsub.f32 %v2708_v34, %v2691_v29  ;;  %v687_v36 = vsub.f32 %v2701_v32, %v2697_v31  ;;  %v6105_v57 = vld [vmem:[#allocation44_spill] sm:$0xff] }
 0x108   :  { %6052 = vst [vmem:[#allocation66_spill] sm:$0xff] %v3041_v48  ;;  %vm334_vm9 = vcmp.lt.s32.totalorder %v332_v49, %v333_v46  ;;  %739 = vperm.xlu1 %2309, %v2561_v54   ;;  %v3065_v62 = vpop.permute.xlu0 %1662  ;;  %v688_v41 = vsub.f32 %v2708_v34, %v2697_v31  ;;  %v690_v31 = vsub.f32 %v2708_v34, %v2710_v35 }
 0x109   :  { %vm357_vm10 = vcmp.lt.s32.totalorder %v355_v44, %v356_v20  ;;  %v335_v43 = vsel %vm334_vm9, %v332_v49, %v333_v46  ;;  %v3054_v50 = vmin.f32 %v6055_v3, %v3045_v60  ;;  %6057 = vst [vmem:[#allocation69_spill] sm:$0xff] %v3065_v62 }
 0x10a   :  { %v358_v26 = vsel %vm357_vm10, %v355_v44, %v356_v20  ;;  %v336_v55 = vrot.slane %v335_v43, 2 }
 0x10b   :  { %v359_v18 = vrot.slane %v358_v26, 2 }
 0x10c   :  { %vm337_vm11 = vcmp.lt.s32.totalorder %v335_v43, %v336_v55  ;;  %2310 = vset.pattern.permute.xlu1 %v6049_v15  ;;  %v3063_v37 = vpop.permute.xlu1 %718  ;;  %v3074_v23 = vpop.permute.xlu0 %1670 }
 0x10d   :  { %vm360_vm12 = vcmp.lt.s32.totalorder %v358_v26, %v359_v18  ;;  %v338_v16 = vsel %vm337_vm11, %v335_v43, %v336_v55  ;;  %1448 = vperm.xlu1 %2310, %v2580_v58   ;;  %6058 = vst [vmem:[#allocation70_spill] sm:$0xff] %v3074_v23  ;;  %v3103_v43 = vsub.f32 %v2708_v34, %v2681_v25 }
 0x10e   :  { %v361_v63 = vsel %vm360_vm12, %v358_v26, %v359_v18  ;;  %v339_v47 = vrot.slane %v338_v16, 1  ;;  %v3113_v18 = vmul.f32 %v692_v14, %v692_v14 }
 0x10f   :  { %v362_v0 = vrot.slane %v361_v63, 1 }
 0x110   :  { %vm340_vm13 = vcmp.lt.s32.totalorder %v338_v16, %v339_v47  ;;  %v722_v13 = vpop.permute.xlu1 %721  ;;  %v3107_v26 = vpop.permute.xlu0 %934 }
 0x111   :  { %vm363_vm14 = vcmp.lt.s32.totalorder %v361_v63, %v362_v0  ;;  %v3068_v27 = vsel %vm340_vm13, %v338_v16, %v339_v47  ;;  %2311 = vset.pattern.permute.xlu1 %v6030_v39  ;;  %v3117_v47 = vmul.f32 %v688_v41, %v688_v41  ;;  %vm742_vm7 = vcmp.eq.s32.totalorder %v722_v13, 1 }
 0x112   :  { %v3070_v28 = vsel %vm363_vm14, %v361_v63, %v362_v0  ;;  %1722 = vperm.xlu1 %2311, %v2481_v19   ;;  %vm365_vm15 = vcmp.eq.s32.totalorder %v2679_v7, %v3068_v27  ;;  %vm367_vm1 = vcmp.eq.s32.totalorder %v2903_v38, %v3068_v27  ;;  %v691_v19 = vsub.f32 %v2701_v32, %v2691_v29 }
 0x113   :  { %vm366_vm0 = vcmp.eq.s32.totalorder %v2679_v7, %v3070_v28  ;;  %vm368_vm2 = vcmp.eq.s32.totalorder %v2903_v38, %v3070_v28  ;;  %v381_v49 = vsel %vm365_vm15, %v2636_v5, 0.0  ;;  %v383_v46 = vsel %vm367_vm1, %v2645_v9, 0.0  ;;  %v6098_v38 = vld [vmem:[#allocation37_spill] sm:$0xff] }
 0x114   :  { %v728_v58 = vpop.permute.xlu1 %727  ;;  %v382_v44 = vsel %vm366_vm0, %v2636_v5, 0.0  ;;  %v384_v20 = vsel %vm368_vm2, %v2645_v9, 0.0  ;;  %vm369_vm3 = vcmp.eq.s32.totalorder %v2906_v59, %v3068_v27  ;;  %vm370_vm4 = vcmp.eq.s32.totalorder %v2906_v59, %v3070_v28 }
 0x115   :  { %v3111_v55 = vmul.f32 %v691_v19, %v691_v19  ;;  %v397_v56 = vadd.f32 %v383_v46, %v381_v49  ;;  %v410_v16 = vadd.f32 %v384_v20, %v382_v44  ;;  %v3115_v63 = vmul.f32 %v687_v36, %v687_v36  ;;  %v3149_v20 = vpop.permute.xlu0 %943 }
 0x116   :  { %1725 = vperm.xlu1 %2311, %v2555_v53   ;;  %v3109_v53 = vmul.f32 %v685_v24, %v685_v24  ;;  %vm371_vm5 = vcmp.eq.s32.totalorder %v2909_v17, %v3068_v27  ;;  %v385_v0 = vsel %vm369_vm3, %v2632_v2, 0.0  ;;  %v689_v24 = vsub.f32 %v2701_v32, %v2710_v35 }
 0x117   :  { %v1181_v19 = vsub.f32 %v2701_v32, %v2729_v42  ;;  %vm372_vm6 = vcmp.eq.s32.totalorder %v2909_v17, %v3070_v28  ;;  %v398_v14 = vadd.f32 %v397_v56, %v385_v0  ;;  %vm744_vm8 = vcmp.eq.s32.totalorder %v728_v58, 1 }
 0x118   :  { %v1182_v41 = vsub.f32 %v2708_v34, %v2729_v42  ;;  %v1185_v44 = vsub.f32 %v2701_v32, %v2758_v22  ;;  %vm373_vm9 = vcmp.eq.s32.totalorder %v2919_v52, %v3068_v27  ;;  %vm374_vm10 = vcmp.eq.s32.totalorder %v2919_v52, %v3070_v28 }
 0x119   :  { %v1431_v3 = vpop.permute.xlu1 %1430  ;;  %v1186_v58 = vsub.f32 %v2708_v34, %v2758_v22  ;;  %v388_v46 = vsel %vm372_vm6, %v2642_v8, 0.0  ;;  %v3153_v56 = vsel %vm742_vm7, %v3115_v63, inf  ;;  %v3159_v0 = vsel %vm744_vm8, %v3113_v18, inf  ;;  %v3210_v42 = vpop.permute.xlu0 %724 }
 0x11a   :  { %2313 = vset.pattern.permute.xlu1 %v6049_v15  ;;  %v386_v15 = vsel %vm370_vm4, %v2632_v2, 0.0  ;;  %6059 = vst [vmem:[#allocation71_spill] sm:$0xff] %v3153_v56  ;;  %6061 = vst [vmem:[#allocation73_spill] sm:$0xff] %v3159_v0  ;;  %v3164_v22 = vsel %vm742_vm7, %v3117_v47, inf  ;;  %vm1453_vm11 = vcmp.eq.s32.totalorder %v1431_v3, 1  ;;  %vm375_vm12 = vcmp.eq.s32.totalorder %v2922_v33, %v3068_v27 }
 0x11b   :  { %1235 = vperm.xlu1 %2313, %v2561_v54   ;;  %v411_v36 = vadd.f32 %v410_v16, %v386_v15  ;;  %v387_v54 = vsel %vm371_vm5, %v2642_v8, 0.0  ;;  %v3156_v16 = vsel %vm744_vm8, %v3111_v55, inf  ;;  %6062 = vst [vmem:[#allocation74_spill] sm:$0xff] %v3164_v22  ;;  %v3173_v8 = vmul.f32 %v1181_v19, %v1181_v19  ;;  %v6112_v22 = vld [vmem:[#allocation42_spill] sm:$0xff] }
 0x11c   :  { %6060 = vst [vmem:[#allocation72_spill] sm:$0xff] %v3156_v16  ;;  %v399_v15 = vadd.f32 %v398_v14, %v387_v54  ;;  %v3179_v13 = vmul.f32 %v1182_v41, %v1182_v41  ;;  %v3181_v14 = vmul.f32 %v1185_v44, %v1185_v44  ;;  %v3183_v54 = vmul.f32 %v1186_v58, %v1186_v58 }
 0x11d   :  { %v1437_v49 = vpop.permute.xlu1 %1436  ;;  %v412_v29 = vadd.f32 %v411_v36, %v388_v46  ;;  %v390_v19 = vsel %vm374_vm10, %v2652_v11, 0.0  ;;  %v3195_v36 = vsel %vm1453_vm11, %v3173_v8, inf  ;;  %vm376_vm14 = vcmp.eq.s32.totalorder %v2922_v33, %v3070_v28 }
 0x11e   :  { %6063 = vst [vmem:[#allocation75_spill] sm:$0xff] %v3181_v14  ;;  %6064 = vst [vmem:[#allocation76_spill] sm:$0xff] %v3183_v54  ;;  %vm1455_vm13 = vcmp.eq.s32.totalorder %v1437_v49, 1  ;;  %v3199_v44 = vsel %vm1453_vm11, %v3179_v13, inf  ;;  %vm957_vm15 = vcmp.eq.s32.totalorder %v3107_v26, 1  ;;  %v3229_v49 = vmul.f32 %v689_v24, %v689_v24 }
 0x11f   :  { %2314 = vset.pattern.permute.xlu1 %v6030_v39  ;;  %6065 = vst [vmem:[#allocation77_spill] sm:$0xff] %v3195_v36  ;;  %6066 = vst [vmem:[#allocation78_spill] sm:$0xff] %v3199_v44  ;;  %v3202_v58 = vsel %vm1455_vm13, %v3181_v14, inf  ;;  %v3205_v46 = vsel %vm1455_vm13, %v3183_v54, inf  ;;  %v413_v25 = vadd.f32 %v412_v29, %v390_v19  ;;  %v6071_v29 = vld [vmem:[#allocation12_spill] sm:$0xff]  ;;  %vm377_vm0 = vcmp.eq.s32.totalorder %v2925_v40, %v3068_v27  ;;  %v6074_v44 = vld [vmem:[#allocation15_spill] sm:$0xff] }
 0x120   :  { %1945 = vperm.xlu1 %2314, %v2640_v6   ;;  %v389_v6 = vsel %vm373_vm9, %v2652_v11, 0.0  ;;  %6067 = vst [vmem:[#allocation79_spill] sm:$0xff] %v3202_v58  ;;  %6068 = vst [vmem:[#allocation80_spill] sm:$0xff] %v3205_v46  ;;  %v391_v19 = vsel %vm375_vm12, %v6071_v29, 0.0  ;;  %vm959_vm1 = vcmp.eq.s32.totalorder %v2955_v12, 1  ;;  %vm378_vm2 = vcmp.eq.s32.totalorder %v2925_v40, %v3070_v28 }
 0x121   :  { %v3175_v39 = vpop.permute.xlu1 %1439  ;;  %v400_v41 = vadd.f32 %v399_v15, %v389_v6  ;;  %v3218_v15 = vmul.f32 %v3103_v43, %v3103_v43  ;;  %v392_v43 = vsel %vm376_vm14, %v6071_v29, 0.0  ;;  %v3239_v2 = vmul.f32 %v690_v31, %v690_v31 }
 0x122   :  { %v414_v11 = vadd.f32 %v413_v25, %v392_v43  ;;  %v3242_v24 = vsel %vm957_vm15, %v3109_v53, inf  ;;  %v393_v58 = vsel %vm377_vm0, %v6074_v44, 0.0  ;;  %v6077_v43 = vld [vmem:[#allocation63_spill] sm:$0xff]  ;;  %v394_v29 = vsel %vm378_vm2, %v6074_v44, 0.0 }
 0x123   :  { %v401_v26 = vadd.f32 %v400_v41, %v391_v19  ;;  %6072 = vst [vmem:[#allocation82_spill] sm:$0xff] %v3242_v24  ;;  %v3245_v46 = vsel %vm957_vm15, %v3218_v15, inf  ;;  %v3251_v41 = vsel %vm959_vm1, %v3229_v49, inf  ;;  %v3254_v12 = vsel %vm959_vm1, %v3239_v2, inf  ;;  %v3256_v19 = vpop.permute.xlu0 %949 }
 0x124   :  { %1728 = vperm.xlu1 %2314, %v2511_v45   ;;  %v6070_v45 = vld [vmem:[#allocation29_spill] sm:$0xff]  ;;  %6073 = vst [vmem:[#allocation83_spill] sm:$0xff] %v3245_v46  ;;  %6075 = vst [vmem:[#allocation84_spill] sm:$0xff] %v3251_v41  ;;  %vm379_vm3 = vcmp.eq.s32.totalorder %v6077_v43, %v3068_v27  ;;  %v981_v36 = vmin.f32 %v3242_v24, %v3251_v41  ;;  %vm380_vm4 = vcmp.eq.s32.totalorder %v6077_v43, %v3070_v28  ;;  %v6080_v27 = vld [vmem:[#allocation14_spill] sm:$0xff] }
 0x125   :  { %v693_v35 = vsub.f32 %v2701_v32, %v6070_v45  ;;  %v694_v3 = vsub.f32 %v2708_v34, %v6070_v45  ;;  %6076 = vst [vmem:[#allocation85_spill] sm:$0xff] %v3254_v12  ;;  %v415_v9 = vadd.f32 %v414_v11, %v394_v29  ;;  %v994_v5 = vmin.f32 %v3245_v46, %v3254_v12  ;;  %v6084_v24 = vld [vmem:[#allocation19_spill] sm:$0xff]  ;;  %v6085_v12 = vld [vmem:[#allocation16_spill] sm:$0xff] }
 0x126   :  { %v3221_v6 = vpop.permute.xlu1 %1666  ;;  %v395_v44 = vsel %vm379_vm3, %v6080_v27, 0.0  ;;  %v396_v11 = vsel %vm380_vm4, %v6080_v27, 0.0  ;;  %vm463_vm6 = vcmp.eq.s32.totalorder %v6084_v24, 1  ;;  %v1183_v41 = vsub.f32 %v2701_v32, %v6085_v12  ;;  %v6088_v27 = vld [vmem:[#allocation22_spill] sm:$0xff] }
 0x127   :  { %6069 = vst [vmem:[#allocation81_spill] sm:$0xff] %v3221_v6  ;;  %v3247_v45 = vmul.f32 %v693_v35, %v693_v35  ;;  %v3258_v31 = vmul.f32 %v694_v3, %v694_v3  ;;  %v402_v35 = vadd.f32 %v401_v26, %v393_v58  ;;  %v3285_v46 = vpop.permute.xlu0 %733  ;;  %vm465_vm8 = vcmp.eq.s32.totalorder %v6088_v27, 1  ;;  %v6096_v27 = vld [vmem:[#allocation39_spill] sm:$0xff] }
 0x128   :  { %v3306_v33 = vmul.f32 %v1183_v41, %v1183_v41  ;;  %v3314_v17 = vsel %vm465_vm8, %v6096_v27, inf  ;;  %v6100_v41 = vld [vmem:[#allocation40_spill] sm:$0xff]  ;;  %vm467_vm9 = vcmp.eq.s32.totalorder %v3035_v10, 1  ;;  %vm960_vm11 = vcmp.eq.s32.totalorder %v3149_v20, 1 }
 0x129   :  { %v403_v28 = vadd.f32 %v402_v35, %v395_v44  ;;  %v6089_v35 = vld [vmem:[#allocation33_spill] sm:$0xff]  ;;  %v3324_v1 = vsel %vm465_vm8, %v6100_v41, inf  ;;  %v1187_v41 = vsub.f32 %v2701_v32, %v6104_v51  ;;  %v3407_v20 = vsub.f32 %v2701_v32, %v3038_v4 }
 0x12a   :  { %6101 = vst [vmem:[#allocation39_spill] sm:$0xff] %v3324_v1  ;;  %vm962_vm13 = vcmp.eq.s32.totalorder %v3256_v19, 1  ;;  %vm741_vm14 = vcmp.eq.s32.totalorder %v3063_v37, 1  ;;  %vm743_vm2 = vcmp.eq.s32.totalorder %v3210_v42, 1  ;;  %v698_v19 = vsub.f32 %v2708_v34, %v3041_v48 }
 0x12b   :  { %v947_v25 = vpop.permute.xlu1 %946  ;;  %v404_v14 = vrot.slane %v403_v28, 4  ;;  %v3304_v40 = vpop.permute.xlu0 %952  ;;  %v3369_v10 = vmul.f32 %v1187_v41, %v1187_v41  ;;  %vm746_vm3 = vcmp.eq.s32.totalorder %v3285_v46, 1 }
 0x12c   :  { %vm961_vm5 = vcmp.eq.s32.totalorder %v947_v25, 1  ;;  %v416_v25 = vadd.f32 %v415_v9, %v396_v11  ;;  %v3297_v9 = vsel %vm463_vm6, %v6089_v35, inf  ;;  %v6091_v11 = vld [vmem:[#allocation18_spill] sm:$0xff]  ;;  %vm963_vm4 = vcmp.eq.s32.totalorder %v3304_v40, 1 }
 0x12d   :  { %v3270_v3 = vsel %vm961_vm5, %v3247_v45, inf  ;;  %v3273_v54 = vsel %vm961_vm5, %v3258_v31, inf  ;;  %v1191_v24 = vsub.f32 %v2701_v32, %v6091_v11  ;;  %v405_v35 = vadd.f32 %v404_v14, %v403_v28  ;;  %v6103_v14 = vld [vmem:[#allocation32_spill] sm:$0xff] }
 0x12e   :  { %6078 = vst [vmem:[#allocation86_spill] sm:$0xff] %v3270_v3  ;;  %6079 = vst [vmem:[#allocation87_spill] sm:$0xff] %v3273_v54  ;;  %v3277_v58 = vmin.f32 %v981_v36, %v3270_v3  ;;  %v3280_v26 = vmin.f32 %v994_v5, %v3273_v54  ;;  %v1184_v36 = vsub.f32 %v2708_v34, %v6085_v12  ;;  %v6087_v5 = vld [vmem:[#allocation17_spill] sm:$0xff]  ;;  %v417_v44 = vrot.slane %v416_v25, 4  ;;  %v6092_v54 = vld [vmem:[#allocation35_spill] sm:$0xff] }
 0x12f   :  { %vm461_vm7 = vcmp.eq.s32.totalorder %v6087_v5, 1  ;;  %6090 = vst [vmem:[#allocation17_spill] sm:$0xff] %v3297_v9  ;;  %v3302_v43 = vsel %vm463_vm6, %v6092_v54, inf  ;;  %v1192_v12 = vsub.f32 %v2708_v34, %v6091_v11  ;;  %v6094_v5 = vld [vmem:[#allocation36_spill] sm:$0xff]  ;;  %6097 = vst [vmem:[#allocation35_spill] sm:$0xff] %v3314_v17  ;;  %v3330_v27 = vmul.f32 %v1191_v24, %v1191_v24 }
 0x130   :  { %6081 = vst [vmem:[#allocation88_spill] sm:$0xff] %v3277_v58  ;;  %6082 = vst [vmem:[#allocation89_spill] sm:$0xff] %v3280_v26  ;;  %v3283_v29 = vpop.permute.xlu1 %1174  ;;  %v3311_v52 = vsel %vm461_vm7, %v6094_v5, inf  ;;  %v3316_v59 = vmul.f32 %v1184_v36, %v1184_v36  ;;  %v3319_v7 = vsel %vm461_vm7, %v6098_v38, inf  ;;  %v418_v60 = vadd.f32 %v417_v44, %v416_v25  ;;  %v6113_v58 = vld [vmem:[#allocation43_spill] sm:$0xff] }
 0x131   :  { %6083 = vst [vmem:[#allocation90_spill] sm:$0xff] %v3283_v29  ;;  %6093 = vst [vmem:[#allocation22_spill] sm:$0xff] %v3302_v43  ;;  %v485_v54 = vmin.f32 %v3311_v52, %v3297_v9  ;;  %v498_v5 = vmin.f32 %v3319_v7, %v3302_v43  ;;  %v699_v28 = vsub.f32 %v2701_v32, %v6103_v14  ;;  %v3378_v26 = vsel %vm467_vm9, %v6112_v22, inf }
 0x132   :  { %6095 = vst [vmem:[#allocation33_spill] sm:$0xff] %v3311_v52  ;;  %6099 = vst [vmem:[#allocation36_spill] sm:$0xff] %v3319_v7  ;;  %v700_v38 = vsub.f32 %v2708_v34, %v6103_v14  ;;  %v1188_v25 = vsub.f32 %v2708_v34, %v6104_v51  ;;  %v3343_v44 = vmul.f32 %v1192_v12, %v1192_v12  ;;  %v6107_v51 = vld [vmem:[#allocation47_spill] sm:$0xff]  ;;  %vm1456_vm7 = vcmp.eq.s32.totalorder %v3175_v39, 1 }
 0x133   :  { %v3337_v36 = vmin.f32 %v485_v54, %v3314_v17  ;;  %v3346_v24 = vmin.f32 %v498_v5, %v3324_v1  ;;  %v695_v43 = vsub.f32 %v2701_v32, %v6105_v57  ;;  %v696_v14 = vsub.f32 %v2708_v34, %v6105_v57  ;;  %v3353_v17 = vpop.permute.xlu0 %736  ;;  %v6108_v1 = vld [vmem:[#allocation50_spill] sm:$0xff] }
 0x134   :  { %v3292_v3 = vpop.permute.xlu1 %1178  ;;  %v419_v54 = vrot.slane %v418_v60, 2  ;;  %v1677_v12 = vsub.f32 %v2701_v32, %v6107_v51  ;;  %v1678_v5 = vsub.f32 %v2708_v34, %v6107_v51  ;;  %v1681_v21 = vsub.f32 %v2701_v32, %v6108_v1 }
 0x135   :  { %6086 = vst [vmem:[#allocation19_spill] sm:$0xff] %v3292_v3  ;;  %v1682_v61 = vsub.f32 %v2708_v34, %v6108_v1  ;;  %v3365_v57 = vmul.f32 %v699_v28, %v699_v28  ;;  %v3367_v7 = vmul.f32 %v700_v38, %v700_v38  ;;  %v3371_v52 = vmul.f32 %v1188_v25, %v1188_v25 }
 0x136   :  { %v3381_v1 = vsel %vm467_vm9, %v6113_v58, inf  ;;  %v3383_v28 = vmul.f32 %v695_v43, %v695_v43  ;;  %v420_v38 = vadd.f32 %v419_v54, %v418_v60  ;;  %v712_v41 = vmul.f32 %v696_v14, %v696_v14  ;;  %v6124_v58 = vld [vmem:[#allocation57_spill] sm:$0xff] }
 0x137   :  { %6109 = vst [vmem:[#allocation91_spill] sm:$0xff] %v3365_v57  ;;  %6110 = vst [vmem:[#allocation92_spill] sm:$0xff] %v3367_v7  ;;  %v3385_v7 = vmul.f32 %v1677_v12, %v1677_v12  ;;  %v3387_v25 = vmul.f32 %v1678_v5, %v1678_v5  ;;  %v6116_v57 = vld [vmem:[#allocation59_spill] sm:$0xff]  ;;  %v3393_v22 = vmul.f32 %v1682_v61, %v1682_v61  ;;  %v3399_v43 = vpop.permute.xlu0 %1433  ;;  %vm423_vm15 = vcmp.lt.f32.partialorder %v6124_v58, inf }
 0x138   :  { %vm958_vm10 = vcmp.eq.s32.totalorder %v6116_v57, 1  ;;  %v3411_v61 = vsub.f32 %v2708_v34, %v3038_v4  ;;  %v421_v12 = vrot.slane %v420_v38, 1  ;;  %v3463_v42 = vsel %vm962_vm13, %v3383_v28, inf }
 0x139   :  { %v3326_v11 = vpop.permute.xlu1 %1217  ;;  %6114 = vst [vmem:[#allocation42_spill] sm:$0xff] %v3385_v7  ;;  %6115 = vst [vmem:[#allocation43_spill] sm:$0xff] %v3387_v25  ;;  %v3416_v54 = vsel %vm958_vm10, %v3115_v63, inf  ;;  %vm747_vm5 = vcmp.eq.s32.totalorder %v3353_v17, 1  ;;  %vm1454_vm6 = vcmp.eq.s32.totalorder %v3399_v43, 1  ;;  %v3511_v46 = vsel %vm746_vm3, %v3383_v28, inf }
 0x13a   :  { %6102 = vst [vmem:[#allocation37_spill] sm:$0xff] %v3326_v11  ;;  %v406_v11 = vrot.slane %v405_v35, 2  ;;  %6118 = vst [vmem:[#allocation93_spill] sm:$0xff] %v3393_v22  ;;  %v422_v63 = vadd.f32 %v421_v12, %v420_v38  ;;  %v3526_v28 = vsel %vm1454_vm6, %v3306_v33, inf  ;;  %v3566_v39 = vmul.f32 %v3407_v20, %v3407_v20 }
 0x13b   :  { %6121 = vst [vmem:[#allocation96_spill] sm:$0xff] %v3416_v54  ;;  %6133 = vst [vmem:[#allocation104_spill] sm:$0xff] %v3463_v42  ;;  %v6151_v40 = vmin.f32 %v3337_v36, %v3378_v26  ;;  %v6152_v17 = vmin.f32 %v3346_v24, %v3381_v1 }
 0x13c   :  { %v407_v0 = vadd.f32 %v406_v11, %v405_v35  ;;  %v3391_v11 = vmul.f32 %v1681_v21, %v1681_v21  ;;  %6139 = vst [vmem:[#allocation110_spill] sm:$0xff] %v3511_v46  ;;  %6142 = vst [vmem:[#allocation113_spill] sm:$0xff] %v3526_v28 }
 0x13d   :  { %v3355_v9 = vpop.permute.xlu1 %1220 }
 0x13e   :  { %6106 = vst [vmem:[#allocation40_spill] sm:$0xff] %v3355_v9  ;;  %v6111_v9 = vld [vmem:[#allocation53_spill] sm:$0xff]  ;;  %6117 = vst [vmem:[#allocation59_spill] sm:$0xff] %v3391_v11  ;;  %v408_v21 = vrot.slane %v407_v0, 1 }
 0x13f   :  { %v1683_v3 = vsub.f32 %v2701_v32, %v6111_v9  ;;  %v1684_v51 = vsub.f32 %v2708_v34, %v6111_v9 }
 0x140   :  { %v409_v60 = vadd.f32 %v408_v21, %v407_v0  ;;  %v1215_v21 = vpop.permute.xlu0 %1214 }
 0x141   :  { %v3401_v35 = vmul.f32 %v1683_v3, %v1683_v3  ;;  %v3403_v14 = vmul.f32 %v1684_v51, %v1684_v51  ;;  %v3419_v3 = vsel %vm960_vm11, %v3111_v55, inf  ;;  %v3422_v51 = vsel %vm960_vm11, %v3113_v18, inf  ;;  %v6126_v55 = vld [vmem:[#allocation58_spill] sm:$0xff] }
 0x142   :  { %v1925_v9 = vpop.permute.xlu1 %1924  ;;  %6122 = vst [vmem:[#allocation97_spill] sm:$0xff] %v3419_v3  ;;  %6123 = vst [vmem:[#allocation98_spill] sm:$0xff] %v3422_v51  ;;  %vm5860_vm1 = vcmp.lt.f32.partialorder %v6126_v55, inf  ;;  %v3444_v0 = vsel %vm423_vm15, %v409_v60, 0.0  ;;  %v3467_v60 = vsel %vm962_vm13, %v712_v41, inf  ;;  %vm1237_vm8 = vcmp.eq.s32.totalorder %v1215_v21, 1 }
 0x143   :  { %6119 = vst [vmem:[#allocation94_spill] sm:$0xff] %v3401_v35  ;;  %6120 = vst [vmem:[#allocation95_spill] sm:$0xff] %v3403_v14  ;;  %vm1947_vm12 = vcmp.eq.s32.totalorder %v1925_v9, 1  ;;  %v3453_v12 = vsel %vm5860_vm1, %v422_v63, 0.0  ;;  %v697_v9 = vsub.f32 %v2701_v32, %v3041_v48  ;;  %v982_v63 = vmin.f32 %v3416_v54, %v3419_v3 }
 0x144   :  { %v3429_v4 = vsel %vm1947_vm12, %v3385_v7, inf  ;;  %v3434_v18 = vsel %vm1947_vm12, %v3387_v25, inf  ;;  %6130 = vst [vmem:[#allocation101_spill] sm:$0xff] %v3444_v0  ;;  %6131 = vst [vmem:[#allocation102_spill] sm:$0xff] %v3453_v12  ;;  %v3485_v12 = vsel %vm743_vm2, %v3229_v49, inf  ;;  %v3488_v0 = vsel %vm743_vm2, %v3239_v2, inf }
 0x145   :  { %6125 = vst [vmem:[#allocation57_spill] sm:$0xff] %v3429_v4  ;;  %6127 = vst [vmem:[#allocation58_spill] sm:$0xff] %v3434_v18  ;;  %v3497_v18 = vmin.f32 %v982_v63, %v3463_v42  ;;  %v713_v49 = vmul.f32 %v697_v9, %v697_v9  ;;  %v714_v63 = vmul.f32 %v698_v19, %v698_v19  ;;  %v6144_v19 = vld [vmem:[#allocation45_spill] sm:$0xff]  ;;  %v3547_v21 = vsel %vm1456_vm7, %v3371_v52, inf }
 0x146   :  { %v1931_v5 = vpop.permute.xlu1 %1930  ;;  %6134 = vst [vmem:[#allocation105_spill] sm:$0xff] %v3467_v60  ;;  %6136 = vst [vmem:[#allocation107_spill] sm:$0xff] %v3485_v12  ;;  %v1193_v3 = vsub.f32 %v2701_v32, %v3283_v29 }
 0x147   :  { %vm1949_vm0 = vcmp.eq.s32.totalorder %v1931_v5, 1  ;;  %v3458_v5 = vsel %vm958_vm10, %v3117_v47, inf  ;;  %v3480_v47 = vsel %vm741_vm14, %v3109_v53, inf  ;;  %6137 = vst [vmem:[#allocation108_spill] sm:$0xff] %v3488_v0  ;;  %v3521_v9 = vsel %vm747_vm5, %v713_v49, inf }
 0x148   :  { %v3437_v14 = vsel %vm1949_vm0, %v3391_v11, inf  ;;  %v3440_v35 = vsel %vm1949_vm0, %v3393_v22, inf  ;;  %6132 = vst [vmem:[#allocation103_spill] sm:$0xff] %v3458_v5  ;;  %v995_v57 = vmin.f32 %v3458_v5, %v3422_v51  ;;  %6135 = vst [vmem:[#allocation106_spill] sm:$0xff] %v3480_v47  ;;  %v765_v2 = vmin.f32 %v3480_v47, %v3485_v12  ;;  %v6145_v12 = vld [vmem:[#allocation46_spill] sm:$0xff] }
 0x149   :  { %6128 = vst [vmem:[#allocation99_spill] sm:$0xff] %v3437_v14  ;;  %6129 = vst [vmem:[#allocation100_spill] sm:$0xff] %v3440_v35  ;;  %v3493_v35 = vsel %vm741_vm14, %v3218_v15, inf  ;;  %v3513_v15 = vsel %vm746_vm3, %v712_v41, inf  ;;  %v3517_v14 = vsel %vm963_vm4, %v713_v49, inf  ;;  %v3531_v41 = vsel %vm1456_vm7, %v3369_v10, inf }
 0x14a   :  { %v3471_v38 = vpop.permute.xlu1 %1933  ;;  %6138 = vst [vmem:[#allocation109_spill] sm:$0xff] %v3493_v35  ;;  %v3500_v53 = vmin.f32 %v995_v57, %v3467_v60  ;;  %v778_v37 = vmin.f32 %v3493_v35, %v3488_v0  ;;  %6140 = vst [vmem:[#allocation111_spill] sm:$0xff] %v3513_v15  ;;  %v1224_v57 = vpop.permute.xlu0 %1223  ;;  %v3559_v43 = vsel %vm747_vm5, %v714_v63, inf  ;;  %v3562_v47 = vsel %vm1237_vm8, %v3173_v8, inf }
 0x14b   :  { %6141 = vst [vmem:[#allocation112_spill] sm:$0xff] %v3521_v9  ;;  %6143 = vst [vmem:[#allocation114_spill] sm:$0xff] %v3531_v41  ;;  %vm1240_vm10 = vcmp.eq.s32.totalorder %v1224_v57, 1  ;;  %v6196_v9 = vld [vmem:[#allocation55_spill] sm:$0xff] }
 0x14c   :  { %6147 = vst [vmem:[#allocation46_spill] sm:$0xff] %v3547_v21  ;;  %6148 = vst [vmem:[#allocation115_spill] sm:$0xff] %v3559_v43 }
 0x14d   :  { %6149 = vst [vmem:[#allocation116_spill] sm:$0xff] %v3562_v47 }
 0x14e   :  { %v1230_v20 = vpop.permute.xlu0 %1229 }
 0x14f   :  { %v460_v48 = vpop.permute.xlu1 %459  ;;  %vm1242_vm12 = vcmp.eq.s32.totalorder %v1230_v20, 1 }
 0x150   :  { %vm468_vm9 = vcmp.eq.s32.totalorder %v460_v48, 1  ;;  %v3542_v48 = vsel %vm1454_vm6, %v3316_v59, inf }
 0x151   :  { %v3534_v0 = vsel %vm468_vm9, %v6144_v19, inf  ;;  %v3537_v35 = vsel %vm468_vm9, %v6145_v12, inf  ;;  %6146 = vst [vmem:[#allocation45_spill] sm:$0xff] %v3542_v48  ;;  %v3555_v12 = vsel %vm963_vm4, %v714_v63, inf }
 0x152   :  { %v490_v49 = vmin.f32 %v3054_v50, %v3534_v0  ;;  %v503_v19 = vmin.f32 %v3060_v30, %v3537_v35  ;;  %v3569_v50 = vsel %vm1237_vm8, %v3179_v13, inf  ;;  %v1689_v13 = vsub.f32 %v2701_v32, %v3074_v23 }
 0x153   :  { %6150 = vst [vmem:[#allocation117_spill] sm:$0xff] %v3569_v50 }
 0x154   :  { %v491_v4 = vmin.f32 %v6151_v40, %v490_v49  ;;  %v504_v63 = vmin.f32 %v6152_v17, %v503_v19  ;;  %v731_v8 = vpop.permute.xlu1 %730  ;;  %v1690_v19 = vsub.f32 %v2708_v34, %v3074_v23  ;;  %v6157_v40 = vld [vmem:[#allocation64_spill] sm:$0xff] }
 0x155   :  { %vm745_vm11 = vcmp.eq.s32.totalorder %v731_v8, 1  ;;  %v1189_v17 = vsub.f32 %v2701_v32, %v6157_v40  ;;  %v1190_v23 = vsub.f32 %v2708_v34, %v6157_v40 }
 0x156   :  { %v492_v42 = vrot.slane %v491_v4, 4  ;;  %v505_v30 = vrot.slane %v504_v63, 4  ;;  %v3584_v51 = vsel %vm745_vm11, %v3247_v45, inf  ;;  %v3587_v36 = vsel %vm745_vm11, %v3258_v31, inf }
 0x157   :  { %6153 = vst [vmem:[#allocation118_spill] sm:$0xff] %v3584_v51  ;;  %6154 = vst [vmem:[#allocation119_spill] sm:$0xff] %v3587_v36  ;;  %v3590_v24 = vmin.f32 %v765_v2, %v3584_v51  ;;  %v3593_v49 = vmin.f32 %v778_v37, %v3587_v36  ;;  %v3601_v45 = vmul.f32 %v3411_v61, %v3411_v61  ;;  %v3605_v2 = vsel %vm1240_vm10, %v3369_v10, inf }
 0x158   :  { %v493_v8 = vmin.f32 %v491_v4, %v492_v42  ;;  %v506_v31 = vmin.f32 %v504_v63, %v505_v30  ;;  %6158 = vst [vmem:[#allocation122_spill] sm:$0xff] %v3605_v2  ;;  %v3609_v37 = vsel %vm1240_vm10, %v3371_v52, inf  ;;  %v1685_v36 = vsub.f32 %v2701_v32, %v3065_v62 }
 0x159   :  { %6155 = vst [vmem:[#allocation120_spill] sm:$0xff] %v3590_v24  ;;  %6156 = vst [vmem:[#allocation121_spill] sm:$0xff] %v3593_v49  ;;  %v3611_v60 = vpop.permute.xlu1 %1442  ;;  %v3617_v4 = vmul.f32 %v1689_v13, %v1689_v13  ;;  %v1686_v10 = vsub.f32 %v2708_v34, %v3065_v62  ;;  %v3623_v42 = vsel %vm1242_vm12, %v3330_v27, inf  ;;  %v3625_v52 = vmul.f32 %v1690_v19, %v1690_v19  ;;  %v6195_v49 = vld [vmem:[#allocation54_spill] sm:$0xff] }
 0x15a   :  { %6159 = vst [vmem:[#allocation123_spill] sm:$0xff] %v3609_v37  ;;  %v494_v61 = vrot.slane %v493_v8, 2  ;;  %v507_v51 = vrot.slane %v506_v31, 2  ;;  %6161 = vst [vmem:[#allocation125_spill] sm:$0xff] %v3623_v42  ;;  %v3627_v57 = vmul.f32 %v1189_v17, %v1189_v17  ;;  %v1687_v30 = vsub.f32 %v2701_v32, %v3221_v6 }
 0x15b   :  { %6160 = vst [vmem:[#allocation124_spill] sm:$0xff] %v3617_v4  ;;  %6162 = vst [vmem:[#allocation126_spill] sm:$0xff] %v3625_v52  ;;  %v3633_v63 = vsel %vm1242_vm12, %v3343_v44, inf  ;;  %v1688_v62 = vsub.f32 %v2708_v34, %v3221_v6  ;;  %v1194_v19 = vsub.f32 %v2708_v34, %v3283_v29  ;;  %v3641_v17 = vmul.f32 %v1190_v23, %v1190_v23  ;;  %v6169_v23 = vld [vmem:[#allocation89_spill] sm:$0xff] }
 0x15c   :  { %6163 = vst [vmem:[#allocation127_spill] sm:$0xff] %v3633_v63  ;;  %v495_v13 = vmin.f32 %v493_v8, %v494_v61  ;;  %v508_v40 = vmin.f32 %v506_v31, %v507_v51  ;;  %v3645_v54 = vmul.f32 %v1685_v36, %v1685_v36  ;;  %v3647_v11 = vmul.f32 %v1686_v10, %v1686_v10  ;;  %v6168_v31 = vld [vmem:[#allocation88_spill] sm:$0xff]  ;;  %v6171_v36 = vld [vmem:[#allocation74_spill] sm:$0xff] }
 0x15d   :  { %v3643_v5 = vpop.permute.xlu1 %1445  ;;  %v6166_v51 = vmin.f32 %v3153_v56, %v3156_v16  ;;  %v3659_v29 = vmul.f32 %v1687_v30, %v1687_v30  ;;  %v3676_v61 = vsel %vm423_vm15, %v6124_v58, inf  ;;  %v3678_v6 = vmul.f32 %v1193_v3, %v1193_v3  ;;  %v6182_v58 = vld [vmem:[#allocation48_spill] sm:$0xff]  ;;  %v6183_v3 = vld [vmem:[#allocation49_spill] sm:$0xff]  ;;  %v6190_v16 = vld [vmem:[#allocation39_spill] sm:$0xff] }
 0x15e   :  { %6164 = vst [vmem:[#allocation128_spill] sm:$0xff] %v3645_v54  ;;  %v496_v20 = vrot.slane %v495_v13, 1  ;;  %v509_v22 = vrot.slane %v508_v40, 1  ;;  %6165 = vst [vmem:[#allocation129_spill] sm:$0xff] %v3647_v11  ;;  %v6172_v54 = vld [vmem:[#allocation73_spill] sm:$0xff]  ;;  %v3680_v30 = vmul.f32 %v1194_v19, %v1194_v19  ;;  %v6186_v19 = vld [vmem:[#allocation22_spill] sm:$0xff] }
 0x15f   :  { %v3653_v8 = vmin.f32 %v6166_v51, %v3511_v46  ;;  %6170 = vst [vmem:[#allocation88_spill] sm:$0xff] %v3659_v29  ;;  %v6173_v25 = vmin.f32 %v6171_v36, %v6172_v54  ;;  %v3671_v51 = vmul.f32 %v1688_v62, %v1688_v62  ;;  %6178 = vst [vmem:[#allocation134_spill] sm:$0xff] %v3676_v61  ;;  %v6179_v46 = vld [vmem:[#allocation19_spill] sm:$0xff]  ;;  %v6180_v62 = vld [vmem:[#allocation33_spill] sm:$0xff] }
 0x160   :  { %v3667_v11 = vmin.f32 %v495_v13, %v496_v20  ;;  %v3669_v7 = vmin.f32 %v508_v40, %v509_v22  ;;  %v3684_v54 = vsub.f32 %v2701_v32, %v6179_v46  ;;  %v6181_v22 = vld [vmem:[#allocation36_spill] sm:$0xff]  ;;  %v6185_v13 = vld [vmem:[#allocation17_spill] sm:$0xff]  ;;  %v6187_v20 = vld [vmem:[#allocation51_spill] sm:$0xff] }
 0x161   :  { %6167 = vst [vmem:[#allocation130_spill] sm:$0xff] %v3653_v8  ;;  %v3665_v10 = vmin.f32 %v6173_v25, %v3513_v15  ;;  %6177 = vst [vmem:[#allocation133_spill] sm:$0xff] %v3671_v51  ;;  %v3688_v25 = vsub.f32 %v2708_v34, %v6179_v46  ;;  %v6188_v61 = vld [vmem:[#allocation52_spill] sm:$0xff]  ;;  %v3708_v46 = vpop.permute.xlu0 %1451  ;;  %v6189_v15 = vld [vmem:[#allocation35_spill] sm:$0xff] }
 0x162   :  { %6175 = vst [vmem:[#allocation131_spill] sm:$0xff] %v3667_v11  ;;  %6176 = vst [vmem:[#allocation132_spill] sm:$0xff] %v3669_v7  ;;  %vm511_vm13 = vcmp.eq.f32.partialorder %v6180_v62, %v3667_v11  ;;  %vm512_vm14 = vcmp.eq.f32.partialorder %v6181_v22, %v3669_v7  ;;  %vm513_vm15 = vcmp.eq.f32.partialorder %v6182_v58, %v3667_v11  ;;  %v3698_v40 = vpop.permute.xlu1 %1674  ;;  %v6191_v36 = vld [vmem:[#allocation67_spill] sm:$0xff]  ;;  %v6192_v56 = vld [vmem:[#allocation68_spill] sm:$0xff] }
 0x163   :  { %6174 = vst [vmem:[#allocation89_spill] sm:$0xff] %v3665_v10  ;;  %vm514_vm0 = vcmp.eq.f32.partialorder %v6183_v3, %v3669_v7  ;;  %6184 = vst [vmem:[#allocation33_spill] sm:$0xff] %v3698_v40  ;;  %vm515_vm2 = vcmp.eq.f32.partialorder %v6185_v13, %v3667_v11  ;;  %vm516_vm3 = vcmp.eq.f32.partialorder %v6186_v19, %v3669_v7  ;;  %v6193_v51 = vld [vmem:[#allocation37_spill] sm:$0xff]  ;;  %v6194_v29 = vld [vmem:[#allocation20_spill] sm:$0xff]  ;;  %v529_v43 = vsel %vm513_vm15, %v6195_v49, 64 }
 0x164   :  { %vm517_vm4 = vcmp.eq.f32.partialorder %v6187_v20, %v3667_v11  ;;  %vm518_vm5 = vcmp.eq.f32.partialorder %v6188_v61, %v3669_v7  ;;  %vm519_vm6 = vcmp.eq.f32.partialorder %v6189_v15, %v3667_v11  ;;  %vm521_vm8 = vcmp.eq.f32.partialorder %v6191_v36, %v3667_v11  ;;  %v6197_v34 = vld [vmem:[#allocation56_spill] sm:$0xff] }
 0x165   :  { %vm522_vm9 = vcmp.eq.f32.partialorder %v6192_v56, %v3669_v7  ;;  %vm1238_vm10 = vcmp.eq.s32.totalorder %v6193_v51, 1  ;;  %vm523_vm11 = vcmp.eq.f32.partialorder %v3378_v26, %v3667_v11  ;;  %vm524_vm12 = vcmp.eq.f32.partialorder %v3381_v1, %v3669_v7  ;;  %v6199_v40 = vld [vmem:[#allocation60_spill] sm:$0xff] }
 0x166   :  { %vm525_vm1 = vcmp.eq.f32.partialorder %v3534_v0, %v3667_v11  ;;  %vm526_vm7 = vcmp.eq.f32.partialorder %v3537_v35, %v3669_v7  ;;  %v527_v10 = vsel %vm511_vm13, %v6194_v29, 64  ;;  %v528_v8 = vsel %vm512_vm14, %v6194_v29, 64 }
 0x167   :  { %v530_v24 = vsel %vm514_vm0, %v6195_v49, 64  ;;  %v531_v62 = vsel %vm515_vm2, %v6196_v9, 64  ;;  %v532_v22 = vsel %vm516_vm3, %v6196_v9, 64  ;;  %v533_v58 = vsel %vm517_vm4, %v6197_v34, 64  ;;  %v3759_v32 = vpop.permute.xlu1 %1710  ;;  %v6201_v9 = vld [vmem:[#allocation61_spill] sm:$0xff] }
 0x168   :  { %v534_v3 = vsel %vm518_vm5, %v6197_v34, 64  ;;  %6198 = vst [vmem:[#allocation36_spill] sm:$0xff] %v3759_v32  ;;  %v535_v13 = vsel %vm519_vm6, %v6199_v40, 64  ;;  %vm6200_vm13 = vcmp.eq.f32.partialorder %v6190_v16, %v3669_v7  ;;  %v537_v20 = vsel %vm521_vm8, %v6201_v9, 64  ;;  %v6202_v34 = vld [vmem:[#allocation62_spill] sm:$0xff] }
 0x169   :  { %v536_v19 = vsel %vm6200_vm13, %v6199_v40, 64  ;;  %v538_v61 = vsel %vm522_vm9, %v6201_v9, 64  ;;  %v539_v15 = vsel %vm523_vm11, %v6202_v34, 64  ;;  %v540_v16 = vsel %vm524_vm12, %v6202_v34, 64  ;;  %v6203_v40 = vld [vmem:[#allocation63_spill] sm:$0xff]  ;;  %v1233_v9 = vpop.permute.xlu0 %1232 }
 0x16a   :  { %v541_v36 = vsel %vm525_vm1, %v6203_v40, 64  ;;  %v542_v56 = vsel %vm526_vm7, %v6203_v40, 64  ;;  %vm543_vm14 = vcmp.lt.s32.totalorder %v527_v10, %v531_v62  ;;  %vm545_vm15 = vcmp.lt.s32.totalorder %v529_v43, %v533_v58 }
 0x16b   :  { %vm566_vm0 = vcmp.lt.s32.totalorder %v528_v8, %v532_v22  ;;  %vm568_vm2 = vcmp.lt.s32.totalorder %v530_v24, %v534_v3  ;;  %vm1460_vm3 = vcmp.eq.s32.totalorder %v3708_v46, 1  ;;  %v544_v26 = vsel %vm543_vm14, %v527_v10, %v531_v62  ;;  %v3794_v21 = vpop.permute.xlu1 %1716 }
 0x16c   :  { %v546_v1 = vsel %vm545_vm15, %v529_v43, %v533_v58  ;;  %v567_v34 = vsel %vm566_vm0, %v528_v8, %v532_v22  ;;  %v569_v32 = vsel %vm568_vm2, %v530_v24, %v534_v3  ;;  %vm547_vm4 = vcmp.lt.s32.totalorder %v544_v26, %v535_v13 }
 0x16d   :  { %vm549_vm1 = vcmp.lt.s32.totalorder %v546_v1, %v537_v20  ;;  %vm570_vm5 = vcmp.lt.s32.totalorder %v567_v34, %v536_v19  ;;  %vm572_vm6 = vcmp.lt.s32.totalorder %v569_v32, %v538_v61  ;;  %v548_v0 = vsel %vm547_vm4, %v544_v26, %v535_v13  ;;  %v1928_v40 = vpop.permute.xlu0 %1927 }
 0x16e   :  { %v550_v35 = vsel %vm549_vm1, %v546_v1, %v537_v20  ;;  %v571_v7 = vsel %vm570_vm5, %v567_v34, %v536_v19  ;;  %v573_v11 = vsel %vm572_vm6, %v569_v32, %v538_v61  ;;  %vm551_vm7 = vcmp.lt.s32.totalorder %v548_v0, %v539_v15 }
 0x16f   :  { %vm553_vm8 = vcmp.lt.s32.totalorder %v550_v35, %v541_v36  ;;  %vm574_vm9 = vcmp.lt.s32.totalorder %v571_v7, %v540_v16  ;;  %vm576_vm11 = vcmp.lt.s32.totalorder %v573_v11, %v542_v56  ;;  %v552_v48 = vsel %vm551_vm7, %v548_v0, %v539_v15  ;;  %v3796_v24 = vpop.permute.xlu1 %1719 }
 0x170   :  { %v554_v10 = vsel %vm553_vm8, %v550_v35, %v541_v36  ;;  %v575_v43 = vsel %vm574_vm9, %v571_v7, %v540_v16  ;;  %v577_v8 = vsel %vm576_vm11, %v573_v11, %v542_v56  ;;  %vm1243_vm12 = vcmp.eq.s32.totalorder %v1233_v9, 1 }
 0x171   :  { %v3801_v62 = vsel %vm1238_vm10, %v3306_v33, inf  ;;  %vm555_vm13 = vcmp.lt.s32.totalorder %v552_v48, %v554_v10  ;;  %vm578_vm14 = vcmp.lt.s32.totalorder %v575_v43, %v577_v8  ;;  %v3806_v32 = vsel %vm1238_vm10, %v3316_v59, inf  ;;  %v1714_v58 = vpop.permute.xlu0 %1713 }
 0x172   :  { %6204 = vst [vmem:[#allocation48_spill] sm:$0xff] %v3801_v62  ;;  %6205 = vst [vmem:[#allocation49_spill] sm:$0xff] %v3806_v32  ;;  %v556_v34 = vsel %vm555_vm13, %v552_v48, %v554_v10  ;;  %v579_v22 = vsel %vm578_vm14, %v575_v43, %v577_v8  ;;  %vm6206_vm15 = vcmp.lt.f32.partialorder %v6126_v55, inf  ;;  %v3815_v11 = vmul.f32 %v3684_v54, %v3684_v54 }
 0x173   :  { %v3811_v7 = vsel %vm6206_vm15, %v6126_v55, inf  ;;  %vm1948_vm0 = vcmp.eq.s32.totalorder %v1928_v40, 1  ;;  %v557_v33 = vrot.slane %v556_v34, 4  ;;  %v580_v9 = vrot.slane %v579_v22, 4 }
 0x174   :  { %6207 = vst [vmem:[#allocation17_spill] sm:$0xff] %v3811_v7  ;;  %6208 = vst [vmem:[#allocation22_spill] sm:$0xff] %v3815_v11  ;;  %v3818_v3 = vsel %vm1243_vm12, %v3678_v6, inf  ;;  %v3821_v59 = vsel %vm1243_vm12, %v3680_v30, inf  ;;  %v3825_v48 = vmul.f32 %v3688_v25, %v3688_v25  ;;  %v1262_v55 = vmin.f32 %v3801_v62, %v3605_v2  ;;  %v956_v51 = vpop.permute.xlu1 %955  ;;  %v6213_v25 = vld [vmem:[#allocation40_spill] sm:$0xff]  ;;  %v6237_v7 = vld [vmem:[#allocation46_spill] sm:$0xff] }
 0x175   :  { %6209 = vst [vmem:[#allocation51_spill] sm:$0xff] %v3821_v59  ;;  %v1275_v54 = vmin.f32 %v3806_v32, %v3609_v37  ;;  %vm558_vm10 = vcmp.lt.s32.totalorder %v556_v34, %v557_v33  ;;  %vm581_vm2 = vcmp.lt.s32.totalorder %v579_v22, %v580_v9  ;;  %vm1734_vm4 = vcmp.eq.s32.totalorder %v1714_v58, 1  ;;  %v1943_v1 = vpop.permute.xlu0 %1942  ;;  %v6239_v37 = vld [vmem:[#allocation33_spill] sm:$0xff]  ;;  %v6240_v2 = vld [vmem:[#allocation28_spill] sm:$0xff]  ;;  %v6241_v32 = vld [vmem:[#allocation30_spill] sm:$0xff] }
 0x176   :  { %6210 = vst [vmem:[#allocation52_spill] sm:$0xff] %v3825_v48  ;;  %v3832_v40 = vsel %vm1948_vm0, %v3566_v39, inf  ;;  %v3835_v13 = vsel %vm1948_vm0, %v3601_v45, inf  ;;  %v559_v19 = vsel %vm558_vm10, %v556_v34, %v557_v33  ;;  %v582_v20 = vsel %vm581_vm2, %v579_v22, %v580_v9  ;;  %v6219_v22 = vld [vmem:[#allocation91_spill] sm:$0xff]  ;;  %v6220_v9 = vld [vmem:[#allocation92_spill] sm:$0xff] }
 0x177   :  { %6211 = vst [vmem:[#allocation35_spill] sm:$0xff] %v3832_v40  ;;  %6212 = vst [vmem:[#allocation39_spill] sm:$0xff] %v3835_v13  ;;  %vm1239_vm1 = vcmp.eq.s32.totalorder %v6213_v25, 1  ;;  %v560_v61 = vrot.slane %v559_v19, 2  ;;  %v583_v15 = vrot.slane %v582_v20, 2  ;;  %v3841_v16 = vsel %vm1460_vm3, %v3815_v11, inf }
 0x178   :  { %v3844_v36 = vsel %vm1734_vm4, %v3566_v39, inf  ;;  %v3847_v56 = vsel %vm1734_vm4, %v3601_v45, inf  ;;  %v3852_v26 = vsel %vm1460_vm3, %v3825_v48, inf  ;;  %vm964_vm5 = vcmp.eq.s32.totalorder %v956_v51, 1  ;;  %v6217_v39 = vld [vmem:[#allocation75_spill] sm:$0xff]  ;;  %v6246_v11 = vld [vmem:[#allocation9_spill] sm:$0xff] }
 0x179   :  { %6214 = vst [vmem:[#allocation67_spill] sm:$0xff] %v3844_v36  ;;  %vm561_vm6 = vcmp.lt.s32.totalorder %v559_v19, %v560_v61  ;;  %vm584_vm7 = vcmp.lt.s32.totalorder %v582_v20, %v583_v15  ;;  %v3855_v0 = vmin.f32 %v1262_v55, %v3623_v42  ;;  %v3858_v35 = vmin.f32 %v1275_v54, %v3633_v63  ;;  %v3866_v46 = vpop.permute.xlu1 %1226  ;;  %v6221_v55 = vld [vmem:[#allocation76_spill] sm:$0xff] }
 0x17a   :  { %v3863_v45 = vsel %vm1239_vm1, %v6217_v39, inf  ;;  %v562_v10 = vsel %vm561_vm6, %v559_v19, %v560_v61  ;;  %v585_v43 = vsel %vm584_vm7, %v582_v20, %v583_v15  ;;  %vm1458_vm3 = vcmp.eq.s32.totalorder %v3643_v5, 1  ;;  %v1732_v15 = vpop.permute.xlu0 %1731  ;;  %v6236_v20 = vld [vmem:[#allocation45_spill] sm:$0xff] }
 0x17b   :  { %6215 = vst [vmem:[#allocation68_spill] sm:$0xff] %v3855_v0  ;;  %6216 = vst [vmem:[#allocation37_spill] sm:$0xff] %v3858_v35  ;;  %v563_v8 = vrot.slane %v562_v10, 1  ;;  %v586_v34 = vrot.slane %v585_v43, 1  ;;  %v3869_v33 = vsel %vm964_vm5, %v6219_v22, inf  ;;  %v3872_v58 = vsel %vm964_vm5, %v6220_v9, inf }
 0x17c   :  { %6218 = vst [vmem:[#allocation54_spill] sm:$0xff] %v3863_v45  ;;  %v3877_v54 = vsel %vm1239_vm1, %v6221_v55, inf  ;;  %vm1953_vm8 = vcmp.eq.s32.totalorder %v1943_v1, 1  ;;  %v986_v51 = vmin.f32 %v3497_v18, %v3869_v33  ;;  %v999_v19 = vmin.f32 %v3500_v53, %v3872_v58  ;;  %v6244_v35 = vld [vmem:[#allocation115_spill] sm:$0xff]  ;;  %v6245_v0 = vld [vmem:[#allocation121_spill] sm:$0xff] }
 0x17d   :  { %6222 = vst [vmem:[#allocation40_spill] sm:$0xff] %v3877_v54  ;;  %vm1950_vm9 = vcmp.eq.s32.totalorder %v3471_v38, 1  ;;  %vm564_vm11 = vcmp.lt.s32.totalorder %v562_v10, %v563_v8  ;;  %vm1457_vm12 = vcmp.eq.s32.totalorder %v3611_v60, 1  ;;  %v3892_v25 = vsel %vm1458_vm3, %v3330_v27, inf }
 0x17e   :  { %v3887_v61 = vsel %vm564_vm11, %v562_v10, %v563_v8  ;;  %6223 = vst [vmem:[#allocation75_spill] sm:$0xff] %v3892_v25  ;;  %v6224_v18 = vmin.f32 %v6168_v31, %v3517_v14  ;;  %v6225_v39 = vmin.f32 %v6169_v23, %v3555_v12  ;;  %vm587_vm13 = vcmp.lt.s32.totalorder %v585_v43, %v586_v34  ;;  %v3911_v8 = vpop.permute.xlu1 %1936  ;;  %v6228_v31 = vld [vmem:[#allocation94_spill] sm:$0xff]  ;;  %v6230_v23 = vld [vmem:[#allocation95_spill] sm:$0xff] }
 0x17f   :  { %v3904_v10 = vsel %vm1953_vm8, %v3617_v4, inf  ;;  %v3909_v27 = vsel %vm1458_vm3, %v3343_v44, inf  ;;  %vm589_vm14 = vcmp.eq.s32.totalorder %v6194_v29, %v3887_v61  ;;  %vm591_vm15 = vcmp.eq.s32.totalorder %v6195_v49, %v3887_v61 }
 0x180   :  { %v987_v53 = vmin.f32 %v6224_v18, %v986_v51  ;;  %v1000_v55 = vmin.f32 %v6225_v39, %v999_v19  ;;  %6226 = vst [vmem:[#allocation91_spill] sm:$0xff] %v3904_v10  ;;  %6227 = vst [vmem:[#allocation92_spill] sm:$0xff] %v3909_v27  ;;  %v3914_v51 = vsel %vm1950_vm9, %v6228_v31, inf  ;;  %v3917_v19 = vsel %vm1950_vm9, %v6230_v23, inf }
 0x181   :  { %6229 = vst [vmem:[#allocation76_spill] sm:$0xff] %v3914_v51  ;;  %6231 = vst [vmem:[#allocation94_spill] sm:$0xff] %v3917_v19  ;;  %v3921_v18 = vsel %vm1953_vm8, %v3625_v52, inf  ;;  %v3926_v39 = vsel %vm1457_vm12, %v3627_v57, inf  ;;  %v3935_v44 = vsel %vm1457_vm12, %v3641_v17, inf  ;;  %v6235_v5 = vmin.f32 %v3526_v28, %v3531_v41  ;;  %v6252_v28 = vld [vmem:[#allocation80_spill] sm:$0xff] }
 0x182   :  { %6232 = vst [vmem:[#allocation95_spill] sm:$0xff] %v3921_v18  ;;  %6233 = vst [vmem:[#allocation135_spill] sm:$0xff] %v3926_v39  ;;  %vm1740_vm0 = vcmp.eq.s32.totalorder %v1732_v15, 1  ;;  %v3943_v38 = vsel %vm587_vm13, %v585_v43, %v586_v34  ;;  %v6238_v63 = vmin.f32 %v6236_v20, %v6237_v7  ;;  %v1691_v60 = vsub.f32 %v6240_v2, %v6239_v37  ;;  %v6242_v43 = vld [vmem:[#allocation112_spill] sm:$0xff]  ;;  %v6247_v2 = vld [vmem:[#allocation11_spill] sm:$0xff] }
 0x183   :  { %6234 = vst [vmem:[#allocation136_spill] sm:$0xff] %v3935_v44  ;;  %v3941_v1 = vmin.f32 %v6235_v5, %v3892_v25  ;;  %v1692_v62 = vsub.f32 %v6241_v32, %v6239_v37  ;;  %v6243_v34 = vld [vmem:[#allocation120_spill] sm:$0xff]  ;;  %v607_v25 = vsel %vm591_vm15, %v6247_v2, 0.0  ;;  %v6248_v32 = vld [vmem:[#allocation77_spill] sm:$0xff]  ;;  %v6249_v37 = vld [vmem:[#allocation79_spill] sm:$0xff]  ;;  %vm590_vm10 = vcmp.eq.s32.totalorder %v6194_v29, %v3943_v38 }
 0x184   :  { %v3949_v42 = vmin.f32 %v6238_v63, %v3909_v27  ;;  %v3963_v63 = vpop.permute.xlu1 %1939  ;;  %v605_v27 = vsel %vm589_vm14, %v6246_v11, 0.0  ;;  %v6250_v20 = vmin.f32 %v6248_v32, %v6249_v37  ;;  %v6251_v5 = vld [vmem:[#allocation78_spill] sm:$0xff]  ;;  %vm592_vm2 = vcmp.eq.s32.totalorder %v6195_v49, %v3943_v38  ;;  %v6254_v41 = vld [vmem:[#allocation36_spill] sm:$0xff] }
 0x185   :  { %v6253_v7 = vmin.f32 %v6251_v5, %v6252_v28  ;;  %vm1733_vm4 = vcmp.eq.s32.totalorder %v6254_v41, 1  ;;  %v3990_v37 = vmul.f32 %v1692_v62, %v1692_v62  ;;  %vm1735_vm1 = vcmp.eq.s32.totalorder %v3794_v21, 1  ;;  %v6258_v41 = vld [vmem:[#allocation42_spill] sm:$0xff]  ;;  %v6261_v62 = vld [vmem:[#allocation59_spill] sm:$0xff] }
 0x186   :  { %v3971_v52 = vmin.f32 %v6250_v20, %v3926_v39  ;;  %v3988_v39 = vmul.f32 %v1691_v60, %v1691_v60  ;;  %v988_v28 = vrot.slane %v987_v53, 4  ;;  %v1001_v5 = vrot.slane %v1000_v55, 4  ;;  %v6259_v20 = vld [vmem:[#allocation43_spill] sm:$0xff] }
 0x187   :  { %v3977_v4 = vmin.f32 %v6253_v7, %v3935_v44  ;;  %6256 = vst [vmem:[#allocation30_spill] sm:$0xff] %v3990_v37  ;;  %v6257_v7 = vld [vmem:[#allocation55_spill] sm:$0xff]  ;;  %v621_v44 = vadd.f32 %v607_v25, %v605_v27  ;;  %v606_v32 = vsel %vm590_vm10, %v6246_v11, 0.0  ;;  %v608_v48 = vsel %vm592_vm2, %v6247_v2, 0.0  ;;  %v6262_v11 = vld [vmem:[#allocation56_spill] sm:$0xff] }
 0x188   :  { %6255 = vst [vmem:[#allocation28_spill] sm:$0xff] %v3988_v39  ;;  %vm593_vm5 = vcmp.eq.s32.totalorder %v6257_v7, %v3887_v61  ;;  %v3998_v19 = vsel %vm1733_vm4, %v6258_v41, inf  ;;  %v4001_v60 = vsel %vm1733_vm4, %v6259_v20, inf  ;;  %v4006_v13 = vsel %vm1735_vm1, %v6261_v62, inf  ;;  %v740_v51 = vpop.permute.xlu1 %739  ;;  %v6263_v2 = vld [vmem:[#allocation8_spill] sm:$0xff]  ;;  %v6264_v20 = vld [vmem:[#allocation93_spill] sm:$0xff] }
 0x189   :  { %6260 = vst [vmem:[#allocation112_spill] sm:$0xff] %v4001_v60  ;;  %vm1736_vm6 = vcmp.eq.s32.totalorder %v3796_v24, 1  ;;  %v989_v25 = vmin.f32 %v987_v53, %v988_v28  ;;  %v1002_v27 = vmin.f32 %v1000_v55, %v1001_v5  ;;  %vm594_vm7 = vcmp.eq.s32.totalorder %v6257_v7, %v3943_v38  ;;  %v6269_v5 = vld [vmem:[#allocation60_spill] sm:$0xff]  ;;  %v6291_v60 = vld [vmem:[#allocation63_spill] sm:$0xff] }
 0x18a   :  { %vm595_vm3 = vcmp.eq.s32.totalorder %v6262_v11, %v3887_v61  ;;  %v609_v41 = vsel %vm593_vm5, %v6263_v2, 0.0  ;;  %v4017_v40 = vsel %vm1735_vm1, %v6264_v20, inf  ;;  %v634_v18 = vadd.f32 %v608_v48, %v606_v32 }
 0x18b   :  { %6265 = vst [vmem:[#allocation120_spill] sm:$0xff] %v4017_v40  ;;  %v622_v62 = vadd.f32 %v621_v44, %v609_v41  ;;  %v990_v10 = vrot.slane %v989_v25, 2  ;;  %v1003_v59 = vrot.slane %v1002_v27, 2  ;;  %v4021_v28 = vsel %vm1740_vm0, %v3988_v39, inf  ;;  %v6290_v40 = vld [vmem:[#allocation62_spill] sm:$0xff] }
 0x18c   :  { %6266 = vst [vmem:[#allocation115_spill] sm:$0xff] %v4021_v28  ;;  %v4025_v53 = vsel %vm1740_vm0, %v3990_v37, inf  ;;  %v4032_v21 = vsel %vm1736_vm6, %v6228_v31, inf  ;;  %vm596_vm8 = vcmp.eq.s32.totalorder %v6262_v11, %v3943_v38  ;;  %vm1241_vm9 = vcmp.eq.s32.totalorder %v3866_v46, 1  ;;  %v6270_v31 = vld [vmem:[#allocation10_spill] sm:$0xff]  ;;  %v1449_v41 = vpop.permute.xlu1 %1448  ;;  %v6289_v28 = vld [vmem:[#allocation61_spill] sm:$0xff] }
 0x18d   :  { %6267 = vst [vmem:[#allocation121_spill] sm:$0xff] %v4025_v53  ;;  %6268 = vst [vmem:[#allocation9_spill] sm:$0xff] %v4032_v21  ;;  %v991_v48 = vmin.f32 %v989_v25, %v990_v10  ;;  %v1004_v44 = vmin.f32 %v1002_v27, %v1003_v59  ;;  %vm597_vm11 = vcmp.eq.s32.totalorder %v6269_v5, %v3887_v61  ;;  %v610_v15 = vsel %vm594_vm7, %v6263_v2, 0.0 }
 0x18e   :  { %vm598_vm12 = vcmp.eq.s32.totalorder %v6269_v5, %v3943_v38  ;;  %v611_v32 = vsel %vm595_vm3, %v6270_v31, 0.0  ;;  %v635_v59 = vadd.f32 %v634_v18, %v610_v15  ;;  %v4054_v55 = vsel %vm1736_vm6, %v6230_v23, inf  ;;  %v6277_v15 = vld [vmem:[#allocation96_spill] sm:$0xff] }
 0x18f   :  { %v623_v10 = vadd.f32 %v622_v62, %v611_v32  ;;  %v992_v25 = vrot.slane %v991_v48, 1  ;;  %v1005_v27 = vrot.slane %v1004_v44, 1  ;;  %6271 = vst [vmem:[#allocation11_spill] sm:$0xff] %v4054_v55  ;;  %vm748_vm13 = vcmp.eq.s32.totalorder %v740_v51, 1  ;;  %v6276_v51 = vld [vmem:[#allocation13_spill] sm:$0xff]  ;;  %v6279_v32 = vld [vmem:[#allocation84_spill] sm:$0xff] }
 0x190   :  { %v4065_v18 = vsel %vm1241_vm9, %v3627_v57, inf  ;;  %v4070_v62 = vsel %vm1241_vm9, %v3641_v17, inf  ;;  %v612_v24 = vsel %vm596_vm8, %v6270_v31, 0.0  ;;  %v613_v23 = vsel %vm597_vm11, %v6276_v51, 0.0  ;;  %v6278_v31 = vld [vmem:[#allocation103_spill] sm:$0xff] }
 0x191   :  { %v4058_v37 = vmin.f32 %v991_v48, %v992_v25  ;;  %v4060_v39 = vmin.f32 %v1004_v44, %v1005_v27  ;;  %6274 = vst [vmem:[#allocation42_spill] sm:$0xff] %v4065_v18  ;;  %6275 = vst [vmem:[#allocation43_spill] sm:$0xff] %v4070_v62  ;;  %v4084_v57 = vsel %vm598_vm12, %v6276_v51, 0.0  ;;  %vm1459_vm14 = vcmp.eq.s32.totalorder %v1449_v41, 1  ;;  %v6283_v27 = vld [vmem:[#allocation97_spill] sm:$0xff]  ;;  %v6284_v41 = vld [vmem:[#allocation98_spill] sm:$0xff] }
 0x192   :  { %v4086_v46 = vadd.f32 %v623_v10, %v613_v23  ;;  %v4088_v17 = vadd.f32 %v635_v59, %v612_v24  ;;  %v4091_v48 = vsel %vm748_vm13, %v6219_v22, inf  ;;  %v4094_v44 = vsel %vm748_vm13, %v6220_v9, inf  ;;  %v6280_v10 = vld [vmem:[#allocation85_spill] sm:$0xff]  ;;  %v6281_v59 = vld [vmem:[#allocation82_spill] sm:$0xff]  ;;  %v6282_v22 = vld [vmem:[#allocation83_spill] sm:$0xff] }
 0x193   :  { %6272 = vst [vmem:[#allocation36_spill] sm:$0xff] %v4058_v37  ;;  %6273 = vst [vmem:[#allocation55_spill] sm:$0xff] %v4060_v39  ;;  %vm1009_vm15 = vcmp.eq.f32.partialorder %v6277_v15, %v4058_v37  ;;  %vm1010_vm0 = vcmp.eq.f32.partialorder %v6278_v31, %v4060_v39  ;;  %vm1011_vm10 = vcmp.eq.f32.partialorder %v6279_v32, %v4058_v37  ;;  %v4109_v9 = vsel %vm1459_vm14, %v3678_v6, inf  ;;  %v6285_v24 = vld [vmem:[#allocation86_spill] sm:$0xff]  ;;  %v6286_v51 = vld [vmem:[#allocation87_spill] sm:$0xff] }
 0x194   :  { %vm1012_vm2 = vcmp.eq.f32.partialorder %v6280_v10, %v4060_v39  ;;  %vm1007_vm4 = vcmp.eq.f32.partialorder %v6281_v59, %v4058_v37  ;;  %vm1008_vm1 = vcmp.eq.f32.partialorder %v6282_v22, %v4060_v39  ;;  %v4112_v25 = vsel %vm1459_vm14, %v3680_v30, inf  ;;  %v6287_v23 = vld [vmem:[#allocation104_spill] sm:$0xff]  ;;  %v6288_v6 = vld [vmem:[#allocation105_spill] sm:$0xff] }
 0x195   :  { %vm1013_vm5 = vcmp.eq.f32.partialorder %v6283_v27, %v4058_v37  ;;  %vm1014_vm6 = vcmp.eq.f32.partialorder %v6284_v41, %v4060_v39  ;;  %vm1015_vm7 = vcmp.eq.f32.partialorder %v6285_v24, %v4058_v37  ;;  %vm1016_vm3 = vcmp.eq.f32.partialorder %v6286_v51, %v4060_v39 }
 0x196   :  { %vm1017_vm8 = vcmp.eq.f32.partialorder %v6287_v23, %v4058_v37  ;;  %vm1018_vm9 = vcmp.eq.f32.partialorder %v6288_v6, %v4060_v39  ;;  %vm1019_vm11 = vcmp.eq.f32.partialorder %v3517_v14, %v4058_v37  ;;  %vm1020_vm12 = vcmp.eq.f32.partialorder %v3555_v12, %v4060_v39 }
 0x197   :  { %vm1021_vm13 = vcmp.eq.f32.partialorder %v3869_v33, %v4058_v37  ;;  %vm1022_vm14 = vcmp.eq.f32.partialorder %v3872_v58, %v4060_v39  ;;  %v1023_v30 = vsel %vm1007_vm4, %v6194_v29, 64  ;;  %v1024_v59 = vsel %vm1008_vm1, %v6194_v29, 64 }
 0x198   :  { %v1025_v22 = vsel %vm1009_vm15, %v6195_v49, 64  ;;  %v1026_v20 = vsel %vm1010_vm0, %v6195_v49, 64  ;;  %v1027_v2 = vsel %vm1011_vm10, %v6257_v7, 64  ;;  %v1028_v53 = vsel %vm1012_vm2, %v6257_v7, 64 }
 0x199   :  { %vm599_vm4 = vcmp.eq.s32.totalorder %v6289_v28, %v3887_v61  ;;  %v1029_v15 = vsel %vm1013_vm5, %v6262_v11, 64  ;;  %v1030_v31 = vsel %vm1014_vm6, %v6262_v11, 64  ;;  %v1031_v32 = vsel %vm1015_vm7, %v6269_v5, 64 }
 0x19a   :  { %v1032_v10 = vsel %vm1016_vm3, %v6269_v5, 64  ;;  %v1033_v27 = vsel %vm1017_vm8, %v6289_v28, 64  ;;  %v1034_v41 = vsel %vm1018_vm9, %v6289_v28, 64  ;;  %v1035_v24 = vsel %vm1019_vm11, %v6290_v40, 64 }
 0x19b   :  { %v1036_v51 = vsel %vm1020_vm12, %v6290_v40, 64  ;;  %v1037_v23 = vsel %vm1021_vm13, %v6291_v60, 64  ;;  %v1038_v6 = vsel %vm1022_vm14, %v6291_v60, 64  ;;  %vm1039_vm15 = vcmp.lt.s32.totalorder %v1023_v30, %v1027_v2 }
 0x19c   :  { %vm1041_vm0 = vcmp.lt.s32.totalorder %v1025_v22, %v1029_v15  ;;  %v1040_v21 = vsel %vm1039_vm15, %v1023_v30, %v1027_v2  ;;  %vm1062_vm10 = vcmp.lt.s32.totalorder %v1024_v59, %v1028_v53  ;;  %vm1064_vm2 = vcmp.lt.s32.totalorder %v1026_v20, %v1030_v31 }
 0x19d   :  { %v1042_v14 = vsel %vm1041_vm0, %v1025_v22, %v1029_v15  ;;  %vm600_vm1 = vcmp.eq.s32.totalorder %v6289_v28, %v3943_v38  ;;  %vm1043_vm5 = vcmp.lt.s32.totalorder %v1040_v21, %v1031_v32  ;;  %v1063_v12 = vsel %vm1062_vm10, %v1024_v59, %v1028_v53 }
 0x19e   :  { %vm1045_vm6 = vcmp.lt.s32.totalorder %v1042_v14, %v1033_v27  ;;  %v1065_v36 = vsel %vm1064_vm2, %v1026_v20, %v1030_v31  ;;  %vm601_vm7 = vcmp.eq.s32.totalorder %v6290_v40, %v3887_v61  ;;  %v1044_v33 = vsel %vm1043_vm5, %v1040_v21, %v1031_v32  ;;  %v6292_v20 = vld [vmem:[#allocation130_spill] sm:$0xff] }
 0x19f   :  { %v1046_v37 = vsel %vm1045_vm6, %v1042_v14, %v1033_v27  ;;  %vm1066_vm3 = vcmp.lt.s32.totalorder %v1063_v12, %v1032_v10  ;;  %vm1068_vm8 = vcmp.lt.s32.totalorder %v1065_v36, %v1034_v41  ;;  %vm1047_vm9 = vcmp.lt.s32.totalorder %v1044_v33, %v1035_v24 }
 0x1a0   :  { %vm1049_vm11 = vcmp.lt.s32.totalorder %v1046_v37, %v1037_v23  ;;  %v1067_v58 = vsel %vm1066_vm3, %v1063_v12, %v1032_v10  ;;  %v1069_v2 = vsel %vm1068_vm8, %v1065_v36, %v1034_v41  ;;  %v1048_v30 = vsel %vm1047_vm9, %v1044_v33, %v1035_v24  ;;  %v6293_v36 = vld [vmem:[#allocation89_spill] sm:$0xff] }
 0x1a1   :  { %v1050_v22 = vsel %vm1049_vm11, %v1046_v37, %v1037_v23  ;;  %vm1070_vm12 = vcmp.lt.s32.totalorder %v1067_v58, %v1036_v51  ;;  %vm1072_vm13 = vcmp.lt.s32.totalorder %v1069_v2, %v1038_v6  ;;  %vm602_vm14 = vcmp.eq.s32.totalorder %v6290_v40, %v3943_v38 }
 0x1a2   :  { %vm603_vm15 = vcmp.eq.s32.totalorder %v6291_v60, %v3887_v61  ;;  %vm1051_vm0 = vcmp.lt.s32.totalorder %v1048_v30, %v1050_v22  ;;  %v1071_v53 = vsel %vm1070_vm12, %v1067_v58, %v1036_v51  ;;  %v1073_v21 = vsel %vm1072_vm13, %v1069_v2, %v1038_v6  ;;  %v6295_v51 = vld [vmem:[#allocation12_spill] sm:$0xff]  ;;  %v6305_v61 = vld [vmem:[#allocation129_spill] sm:$0xff] }
 0x1a3   :  { %v770_v59 = vmin.f32 %v6292_v20, %v4091_v48  ;;  %v1052_v15 = vsel %vm1051_vm0, %v1048_v30, %v1050_v22  ;;  %vm1074_vm10 = vcmp.lt.s32.totalorder %v1071_v53, %v1073_v21  ;;  %v783_v31 = vmin.f32 %v6293_v36, %v4094_v44 }
 0x1a4   :  { %v1481_v37 = vmin.f32 %v3971_v52, %v4109_v9  ;;  %v1053_v32 = vrot.slane %v1052_v15, 4  ;;  %v1075_v10 = vsel %vm1074_vm10, %v1071_v53, %v1073_v21  ;;  %v6294_v27 = vmin.f32 %v6243_v34, %v6242_v43 }
 0x1a5   :  { %v1494_v24 = vmin.f32 %v3977_v4, %v4112_v25  ;;  %v615_v23 = vsel %vm599_vm4, %v6295_v51, 0.0  ;;  %v1076_v6 = vrot.slane %v1075_v10, 4  ;;  %v6296_v14 = vmin.f32 %v6245_v0, %v6244_v35 }
 0x1a6   :  { %v771_v41 = vmin.f32 %v6294_v27, %v770_v59  ;;  %v6297_v52 = vmin.f32 %v3941_v1, %v3841_v16  ;;  %v637_v34 = vadd.f32 %v4088_v17, %v4084_v57  ;;  %vm1054_vm2 = vcmp.lt.s32.totalorder %v1052_v15, %v1053_v32  ;;  %v6299_v17 = vld [vmem:[#allocation15_spill] sm:$0xff] }
 0x1a7   :  { %v784_v12 = vmin.f32 %v6296_v14, %v783_v31  ;;  %v6298_v4 = vmin.f32 %v3949_v42, %v3852_v26  ;;  %v625_v30 = vadd.f32 %v4086_v46, %v615_v23  ;;  %v1055_v22 = vsel %vm1054_vm2, %v1052_v15, %v1053_v32 }
 0x1a8   :  { %v1483_v33 = vmin.f32 %v1481_v37, %v6297_v52  ;;  %v772_v58 = vrot.slane %v771_v41, 4  ;;  %vm1077_vm4 = vcmp.lt.s32.totalorder %v1075_v10, %v1076_v6  ;;  %v1056_v0 = vrot.slane %v1055_v22, 2 }
 0x1a9   :  { %v1496_v2 = vmin.f32 %v1494_v24, %v6298_v4  ;;  %v785_v53 = vrot.slane %v784_v12, 4  ;;  %v1078_v21 = vsel %vm1077_vm4, %v1075_v10, %v1076_v6  ;;  %vm604_vm5 = vcmp.eq.s32.totalorder %v6291_v60, %v3943_v38 }
 0x1aa   :  { %v773_v20 = vmin.f32 %v771_v41, %v772_v58  ;;  %v1484_v59 = vrot.slane %v1483_v33, 4  ;;  %v616_v1 = vsel %vm600_vm1, %v6295_v51, 0.0  ;;  %v1079_v57 = vrot.slane %v1078_v21, 2  ;;  %v6300_v51 = vld [vmem:[#allocation14_spill] sm:$0xff]  ;;  %v6303_v58 = vld [vmem:[#allocation128_spill] sm:$0xff] }
 0x1ab   :  { %v786_v42 = vmin.f32 %v784_v12, %v785_v53  ;;  %v617_v46 = vsel %vm601_vm7, %v6299_v17, 0.0  ;;  %v638_v15 = vadd.f32 %v637_v34, %v616_v1  ;;  %vm1057_vm6 = vcmp.lt.s32.totalorder %v1055_v22, %v1056_v0 }
 0x1ac   :  { %vm1951_vm3 = vcmp.eq.s32.totalorder %v3911_v8, 1  ;;  %v626_v36 = vadd.f32 %v625_v30, %v617_v46  ;;  %v1058_v31 = vsel %vm1057_vm6, %v1055_v22, %v1056_v0  ;;  %vm1080_vm8 = vcmp.lt.s32.totalorder %v1078_v21, %v1079_v57  ;;  %v6311_v8 = vld [vmem:[#allocation58_spill] sm:$0xff] }
 0x1ad   :  { %v1497_v37 = vrot.slane %v1496_v2, 4  ;;  %v1059_v32 = vrot.slane %v1058_v31, 1  ;;  %v1081_v10 = vsel %vm1080_vm8, %v1078_v21, %v1079_v57  ;;  %v774_v27 = vrot.slane %v773_v20, 2  ;;  %v6307_v57 = vld [vmem:[#allocation57_spill] sm:$0xff] }
 0x1ae   :  { %v1485_v41 = vmin.f32 %v1483_v33, %v1484_v59  ;;  %v618_v24 = vsel %vm602_vm14, %v6299_v17, 0.0  ;;  %v619_v23 = vsel %vm603_vm15, %v6300_v51, 0.0  ;;  %v1082_v6 = vrot.slane %v1081_v10, 1  ;;  %v6308_v17 = vld [vmem:[#allocation99_spill] sm:$0xff] }
 0x1af   :  { %v787_v14 = vrot.slane %v786_v42, 2  ;;  %v6301_v12 = vmin.f32 %v3562_v47, %v3863_v45  ;;  %v6302_v33 = vmin.f32 %v3569_v50, %v3877_v54  ;;  %v4263_v4 = vsel %vm1951_vm3, %v6303_v58, inf }
 0x1b0   :  { %6304 = vst [vmem:[#allocation59_spill] sm:$0xff] %v4263_v4  ;;  %v4268_v30 = vsel %vm1951_vm3, %v6305_v61, inf  ;;  %v627_v22 = vadd.f32 %v626_v36, %v619_v23  ;;  %v639_v53 = vadd.f32 %v638_v15, %v618_v24  ;;  %vm1060_vm1 = vcmp.lt.s32.totalorder %v1058_v31, %v1059_v32  ;;  %v6312_v36 = vld [vmem:[#allocation100_spill] sm:$0xff] }
 0x1b1   :  { %v4252_v52 = vmin.f32 %v6301_v12, %v4065_v18  ;;  %v4258_v34 = vmin.f32 %v6302_v33, %v4070_v62  ;;  %6306 = vst [vmem:[#allocation56_spill] sm:$0xff] %v4268_v30  ;;  %vm1952_vm7 = vcmp.eq.s32.totalorder %v3963_v63, 1  ;;  %vm1083_vm9 = vcmp.lt.s32.totalorder %v1081_v10, %v1082_v6  ;;  %v6322_v63 = vld [vmem:[#allocation35_spill] sm:$0xff] }
 0x1b2   :  { %v775_v0 = vmin.f32 %v773_v20, %v774_v27  ;;  %v1486_v21 = vrot.slane %v1485_v41, 2  ;;  %v1498_v59 = vmin.f32 %v1496_v2, %v1497_v37  ;;  %v6309_v46 = vmin.f32 %v6307_v57, %v6308_v17  ;;  %v6315_v27 = vld [vmem:[#allocation51_spill] sm:$0xff]  ;;  %v4307_v37 = vpop.permute.xlu1 %1722  ;;  %v6331_v57 = vld [vmem:[#allocation21_spill] sm:$0xff] }
 0x1b3   :  { %v6313_v15 = vmin.f32 %v6311_v8, %v6312_v36  ;;  %v788_v23 = vmin.f32 %v786_v42, %v787_v14  ;;  %v620_v2 = vsel %vm604_vm5, %v6300_v51, 0.0  ;;  %v4289_v20 = vsel %vm1060_vm1, %v1058_v31, %v1059_v32  ;;  %v6318_v14 = vld [vmem:[#allocation133_spill] sm:$0xff]  ;;  %v6328_v36 = vld [vmem:[#allocation94_spill] sm:$0xff] }
 0x1b4   :  { %v4277_v12 = vmin.f32 %v6309_v46, %v4263_v4  ;;  %v628_v46 = vrot.slane %v627_v22, 4  ;;  %v640_v1 = vadd.f32 %v639_v53, %v620_v2  ;;  %v4295_v39 = vsel %vm1083_vm9, %v1081_v10, %v1082_v6  ;;  %v6327_v2 = vld [vmem:[#allocation39_spill] sm:$0xff]  ;;  %v6350_v10 = vld [vmem:[#allocation110_spill] sm:$0xff] }
 0x1b5   :  { %v4283_v24 = vmin.f32 %v6313_v15, %v4268_v30  ;;  %v6316_v15 = vld [vmem:[#allocation88_spill] sm:$0xff]  ;;  %v4305_v38 = vsel %vm1952_vm7, %v6318_v14, inf  ;;  %v776_v31 = vrot.slane %v775_v0, 1  ;;  %v1487_v32 = vmin.f32 %v1485_v41, %v1486_v21 }
 0x1b6   :  { %6310 = vst [vmem:[#allocation8_spill] sm:$0xff] %v4277_v12  ;;  %v4300_v42 = vsel %vm1952_vm7, %v6316_v15, inf  ;;  %6319 = vst [vmem:[#allocation10_spill] sm:$0xff] %v4305_v38  ;;  %v1499_v51 = vrot.slane %v1498_v59, 2  ;;  %vm1085_vm11 = vcmp.eq.s32.totalorder %v6194_v29, %v4289_v20  ;;  %v789_v33 = vrot.slane %v788_v23, 1  ;;  %v6323_v41 = vld [vmem:[#allocation76_spill] sm:$0xff] }
 0x1b7   :  { %6314 = vst [vmem:[#allocation93_spill] sm:$0xff] %v4283_v24  ;;  %6317 = vst [vmem:[#allocation60_spill] sm:$0xff] %v4300_v42  ;;  %vm1086_vm12 = vcmp.eq.s32.totalorder %v6194_v29, %v4295_v39  ;;  %vm1087_vm13 = vcmp.eq.s32.totalorder %v6195_v49, %v4289_v20  ;;  %vm1088_vm14 = vcmp.eq.s32.totalorder %v6195_v49, %v4295_v39  ;;  %v641_v4 = vrot.slane %v640_v1, 4  ;;  %v6351_v12 = vld [vmem:[#allocation111_spill] sm:$0xff] }
 0x1b8   :  { %v6324_v21 = vmin.f32 %v6322_v63, %v6323_v41  ;;  %v4327_v6 = vadd.f32 %v628_v46, %v627_v22  ;;  %v6329_v8 = vmin.f32 %v6327_v2, %v6328_v36  ;;  %vm1737_vm15 = vcmp.eq.s32.totalorder %v4307_v37, 1  ;;  %v6333_v22 = vld [vmem:[#allocation27_spill] sm:$0xff]  ;;  %v6342_v63 = vld [vmem:[#allocation118_spill] sm:$0xff] }
 0x1b9   :  { %v1101_v62 = vsel %vm1085_vm11, %v6331_v57, 0.0  ;;  %v4337_v18 = vmin.f32 %v775_v0, %v776_v31  ;;  %v1488_v50 = vrot.slane %v1487_v32, 1  ;;  %v4339_v47 = vmin.f32 %v1498_v59, %v1499_v51  ;;  %v6335_v0 = vld [vmem:[#allocation106_spill] sm:$0xff]  ;;  %v6336_v59 = vld [vmem:[#allocation71_spill] sm:$0xff]  ;;  %v6339_v51 = vld [vmem:[#allocation72_spill] sm:$0xff] }
 0x1ba   :  { %v4325_v30 = vmin.f32 %v6324_v21, %v4300_v42  ;;  %6326 = vst [vmem:[#allocation96_spill] sm:$0xff] %v4327_v6  ;;  %v4333_v17 = vmin.f32 %v6329_v8, %v4305_v38  ;;  %v1102_v21 = vsel %vm1086_vm12, %v6331_v57, 0.0  ;;  %v1103_v46 = vsel %vm1087_vm13, %v6333_v22, 0.0  ;;  %v6337_v8 = vld [vmem:[#allocation109_spill] sm:$0xff]  ;;  %v6343_v36 = vld [vmem:[#allocation119_spill] sm:$0xff] }
 0x1bb   :  { %6332 = vst [vmem:[#allocation84_spill] sm:$0xff] %v4337_v18  ;;  %v1104_v6 = vsel %vm1088_vm14, %v6333_v22, 0.0  ;;  %v4344_v42 = vmin.f32 %v788_v23, %v789_v33  ;;  %vm1089_vm0 = vcmp.eq.s32.totalorder %v6257_v7, %v4289_v20  ;;  %vm1090_vm10 = vcmp.eq.s32.totalorder %v6257_v7, %v4295_v39  ;;  %v6338_v23 = vld [vmem:[#allocation74_spill] sm:$0xff]  ;;  %v6340_v38 = vld [vmem:[#allocation73_spill] sm:$0xff] }
 0x1bc   :  { %6325 = vst [vmem:[#allocation13_spill] sm:$0xff] %v4325_v30  ;;  %6330 = vst [vmem:[#allocation103_spill] sm:$0xff] %v4333_v17  ;;  %vm791_vm2 = vcmp.eq.f32.partialorder %v6335_v0, %v4337_v18  ;;  %vm793_vm4 = vcmp.eq.f32.partialorder %v6336_v59, %v4337_v18  ;;  %vm1091_vm5 = vcmp.eq.s32.totalorder %v6262_v11, %v4289_v20  ;;  %v4375_v41 = vsel %vm1737_vm15, %v6303_v58, inf  ;;  %v6348_v58 = vld [vmem:[#allocation108_spill] sm:$0xff] }
 0x1bd   :  { %6334 = vst [vmem:[#allocation85_spill] sm:$0xff] %v4344_v42  ;;  %vm1092_vm6 = vcmp.eq.s32.totalorder %v6262_v11, %v4295_v39  ;;  %vm792_vm3 = vcmp.eq.f32.partialorder %v6337_v8, %v4344_v42  ;;  %vm794_vm8 = vcmp.eq.f32.partialorder %v6338_v23, %v4344_v42  ;;  %v1117_v33 = vadd.f32 %v1103_v46, %v1101_v62  ;;  %v6345_v62 = vld [vmem:[#allocation31_spill] sm:$0xff] }
 0x1be   :  { %v1130_v31 = vadd.f32 %v1104_v6, %v1102_v21  ;;  %vm797_vm1 = vcmp.eq.f32.partialorder %v6339_v51, %v4337_v18  ;;  %vm798_vm7 = vcmp.eq.f32.partialorder %v6340_v38, %v4344_v42  ;;  %v4366_v2 = vadd.f32 %v641_v4, %v640_v1  ;;  %6344 = vst [vmem:[#allocation83_spill] sm:$0xff] %v4375_v41  ;;  %v6346_v1 = vld [vmem:[#allocation25_spill] sm:$0xff] }
 0x1bf   :  { %vm799_vm9 = vcmp.eq.f32.partialorder %v6342_v63, %v4337_v18  ;;  %vm800_vm11 = vcmp.eq.f32.partialorder %v6343_v36, %v4344_v42  ;;  %v1105_v6 = vsel %vm1089_vm0, %v6345_v62, 0.0  ;;  %v1106_v4 = vsel %vm1090_vm10, %v6345_v62, 0.0 }
 0x1c0   :  { %6341 = vst [vmem:[#allocation82_spill] sm:$0xff] %v4366_v2  ;;  %v1107_v21 = vsel %vm1091_vm5, %v6346_v1, 0.0  ;;  %v4387_v46 = vsel %vm1092_vm6, %v6346_v1, 0.0  ;;  %v6347_v2 = vld [vmem:[#allocation107_spill] sm:$0xff]  ;;  %vm796_vm13 = vcmp.eq.f32.partialorder %v6348_v58, %v4344_v42  ;;  %v4393_v54 = vmin.f32 %v1487_v32, %v1488_v50 }
 0x1c1   :  { %vm795_vm12 = vcmp.eq.f32.partialorder %v6347_v2, %v4337_v18  ;;  %v1501_v45 = vrot.slane %v4339_v47, 1  ;;  %v1118_v53 = vadd.f32 %v1117_v33, %v1105_v6  ;;  %v1131_v24 = vadd.f32 %v1130_v31, %v1106_v4 }
 0x1c2   :  { %6349 = vst [vmem:[#allocation97_spill] sm:$0xff] %v4393_v54  ;;  %vm801_vm14 = vcmp.eq.f32.partialorder %v6350_v10, %v4337_v18  ;;  %vm802_vm0 = vcmp.eq.f32.partialorder %v6351_v12, %v4344_v42  ;;  %v807_v2 = vsel %vm791_vm2, %v6194_v29, 64  ;;  %v808_v50 = vsel %vm792_vm3, %v6194_v29, 64 }
 0x1c3   :  { %v809_v32 = vsel %vm793_vm4, %v6195_v49, 64  ;;  %v810_v33 = vsel %vm794_vm8, %v6195_v49, 64  ;;  %v811_v31 = vsel %vm795_vm12, %v6257_v7, 64  ;;  %v812_v0 = vsel %vm796_vm13, %v6257_v7, 64 }
 0x1c4   :  { %v813_v8 = vsel %vm797_vm1, %v6262_v11, 64  ;;  %v814_v59 = vsel %vm798_vm7, %v6262_v11, 64  ;;  %vm803_vm10 = vcmp.eq.f32.partialorder %v6242_v43, %v4337_v18  ;;  %vm804_vm2 = vcmp.eq.f32.partialorder %v6244_v35, %v4344_v42 }
 0x1c5   :  { %vm805_vm4 = vcmp.eq.f32.partialorder %v4091_v48, %v4337_v18  ;;  %vm806_vm5 = vcmp.eq.f32.partialorder %v4094_v44, %v4344_v42  ;;  %v815_v23 = vsel %vm799_vm9, %v6269_v5, 64  ;;  %v816_v38 = vsel %vm800_vm11, %v6269_v5, 64 }
 0x1c6   :  { %v817_v35 = vsel %vm801_vm14, %v6289_v28, 64  ;;  %v818_v43 = vsel %vm802_vm0, %v6289_v28, 64  ;;  %vm823_vm6 = vcmp.lt.s32.totalorder %v807_v2, %v811_v31  ;;  %vm825_vm3 = vcmp.lt.s32.totalorder %v809_v32, %v813_v8 }
 0x1c7   :  { %vm846_vm8 = vcmp.lt.s32.totalorder %v808_v50, %v812_v0  ;;  %vm848_vm1 = vcmp.lt.s32.totalorder %v810_v33, %v814_v59  ;;  %vm1093_vm7 = vcmp.eq.s32.totalorder %v6269_v5, %v4289_v20  ;;  %vm1094_vm9 = vcmp.eq.s32.totalorder %v6269_v5, %v4295_v39 }
 0x1c8   :  { %v819_v36 = vsel %vm803_vm10, %v6290_v40, 64  ;;  %v820_v10 = vsel %vm804_vm2, %v6290_v40, 64  ;;  %v824_v63 = vsel %vm823_vm6, %v807_v2, %v811_v31  ;;  %v826_v51 = vsel %vm825_vm3, %v809_v32, %v813_v8  ;;  %v6353_v8 = vld [vmem:[#allocation77_spill] sm:$0xff] }
 0x1c9   :  { %vm827_vm11 = vcmp.lt.s32.totalorder %v824_v63, %v815_v23  ;;  %vm829_vm12 = vcmp.lt.s32.totalorder %v826_v51, %v817_v35  ;;  %v847_v12 = vsel %vm846_vm8, %v808_v50, %v812_v0  ;;  %v849_v6 = vsel %vm848_vm1, %v810_v33, %v814_v59 }
 0x1ca   :  { %v821_v4 = vsel %vm805_vm4, %v6291_v60, 64  ;;  %v822_v58 = vsel %vm806_vm5, %v6291_v60, 64  ;;  %v828_v17 = vsel %vm827_vm11, %v824_v63, %v815_v23  ;;  %v830_v30 = vsel %vm829_vm12, %v826_v51, %v817_v35  ;;  %v6355_v35 = vld [vmem:[#allocation79_spill] sm:$0xff] }
 0x1cb   :  { %vm831_vm13 = vcmp.lt.s32.totalorder %v828_v17, %v819_v36  ;;  %vm833_vm14 = vcmp.lt.s32.totalorder %v830_v30, %v821_v4  ;;  %vm850_vm0 = vcmp.lt.s32.totalorder %v847_v12, %v816_v38  ;;  %vm852_vm10 = vcmp.lt.s32.totalorder %v849_v6, %v818_v43 }
 0x1cc   :  { %v832_v2 = vsel %vm831_vm13, %v828_v17, %v819_v36  ;;  %v834_v32 = vsel %vm833_vm14, %v830_v30, %v821_v4  ;;  %v851_v50 = vsel %vm850_vm0, %v847_v12, %v816_v38  ;;  %v853_v33 = vsel %vm852_vm10, %v849_v6, %v818_v43  ;;  %v6354_v17 = vld [vmem:[#allocation78_spill] sm:$0xff] }
 0x1cd   :  { %vm835_vm2 = vcmp.lt.s32.totalorder %v832_v2, %v834_v32  ;;  %vm854_vm6 = vcmp.lt.s32.totalorder %v851_v50, %v820_v10  ;;  %vm856_vm3 = vcmp.lt.s32.totalorder %v853_v33, %v822_v58  ;;  %v4465_v48 = vmin.f32 %v4339_v47, %v1501_v45  ;;  %v6356_v47 = vld [vmem:[#allocation80_spill] sm:$0xff]  ;;  %v6357_v43 = vld [vmem:[#allocation114_spill] sm:$0xff] }
 0x1ce   :  { %v836_v31 = vsel %vm835_vm2, %v832_v2, %v834_v32  ;;  %v855_v0 = vsel %vm854_vm6, %v851_v50, %v820_v10  ;;  %v857_v44 = vsel %vm856_vm3, %v853_v33, %v822_v58  ;;  %vm1503_vm4 = vcmp.eq.f32.partialorder %v6353_v8, %v4393_v54  ;;  %v6361_v2 = vld [vmem:[#allocation44_spill] sm:$0xff] }
 0x1cf   :  { %6352 = vst [vmem:[#allocation98_spill] sm:$0xff] %v4465_v48  ;;  %v1119_v59 = vadd.f32 %v1118_v53, %v1107_v21  ;;  %v837_v23 = vrot.slane %v836_v31, 4  ;;  %vm858_vm5 = vcmp.lt.s32.totalorder %v855_v0, %v857_v44  ;;  %vm1504_vm8 = vcmp.eq.f32.partialorder %v6354_v17, %v4465_v48  ;;  %v6358_v53 = vld [vmem:[#allocation46_spill] sm:$0xff]  ;;  %v4486_v21 = vpop.permute.xlu1 %1725 }
 0x1d0   :  { %v1132_v30 = vadd.f32 %v1131_v24, %v4387_v46  ;;  %v859_v38 = vsel %vm858_vm5, %v855_v0, %v857_v44  ;;  %vm1507_vm1 = vcmp.eq.f32.partialorder %v6355_v35, %v4393_v54  ;;  %vm1508_vm11 = vcmp.eq.f32.partialorder %v6356_v47, %v4465_v48  ;;  %v6359_v46 = vld [vmem:[#allocation29_spill] sm:$0xff] }
 0x1d1   :  { %vm838_vm12 = vcmp.lt.s32.totalorder %v836_v31, %v837_v23  ;;  %v860_v45 = vrot.slane %v859_v38, 4  ;;  %vm1509_vm13 = vcmp.eq.f32.partialorder %v6357_v43, %v4393_v54  ;;  %vm1510_vm14 = vcmp.eq.f32.partialorder %v6358_v53, %v4465_v48 }
 0x1d2   :  { %vm1095_vm0 = vcmp.eq.s32.totalorder %v6289_v28, %v4289_v20  ;;  %vm1096_vm10 = vcmp.eq.s32.totalorder %v6289_v28, %v4295_v39  ;;  %vm1097_vm2 = vcmp.eq.s32.totalorder %v6290_v40, %v4289_v20  ;;  %v839_v24 = vsel %vm838_vm12, %v836_v31, %v837_v23 }
 0x1d3   :  { %v1109_v36 = vsel %vm1093_vm7, %v6359_v46, 0.0  ;;  %v1110_v10 = vsel %vm1094_vm9, %v6359_v46, 0.0  ;;  %v840_v63 = vrot.slane %v839_v24, 2  ;;  %vm861_vm6 = vcmp.lt.s32.totalorder %v859_v38, %v860_v45 }
 0x1d4   :  { %vm1098_vm3 = vcmp.eq.s32.totalorder %v6290_v40, %v4295_v39  ;;  %v1120_v51 = vadd.f32 %v1119_v59, %v1109_v36  ;;  %v1133_v12 = vadd.f32 %v1132_v30, %v1110_v10  ;;  %v862_v6 = vsel %vm861_vm6, %v859_v38, %v860_v45  ;;  %v6365_v36 = vld [vmem:[#allocation113_spill] sm:$0xff] }
 0x1d5   :  { %vm841_vm5 = vcmp.lt.s32.totalorder %v839_v24, %v840_v63  ;;  %v863_v4 = vrot.slane %v862_v6, 2  ;;  %v4501_v58 = vsel %vm1737_vm15, %v6305_v61, inf  ;;  %vm5962_vm7 = vcmp.eq.s32.totalorder %v4486_v21, 1  ;;  %v6363_v61 = vld [vmem:[#allocation66_spill] sm:$0xff]  ;;  %v6366_v10 = vld [vmem:[#allocation45_spill] sm:$0xff] }
 0x1d6   :  { %6360 = vst [vmem:[#allocation86_spill] sm:$0xff] %v4501_v58  ;;  %v1111_v32 = vsel %vm1095_vm0, %v6361_v2, 0.0  ;;  %v1112_v50 = vsel %vm1096_vm10, %v6361_v2, 0.0  ;;  %v842_v33 = vsel %vm841_vm5, %v839_v24, %v840_v63  ;;  %v6362_v31 = vmin.f32 %v3998_v19, %v4006_v13 }
 0x1d7   :  { %v4522_v0 = vsel %vm1097_vm2, %v6363_v61, 0.0  ;;  %v4525_v44 = vsel %vm1098_vm3, %v6363_v61, 0.0  ;;  %v843_v59 = vrot.slane %v842_v33, 1  ;;  %vm864_vm15 = vcmp.lt.s32.totalorder %v862_v6, %v863_v4 }
 0x1d8   :  { %v4516_v37 = vmin.f32 %v6362_v31, %v4375_v41  ;;  %v4527_v23 = vadd.f32 %v1120_v51, %v1111_v32  ;;  %v4529_v30 = vadd.f32 %v1133_v12, %v1112_v50  ;;  %v865_v38 = vsel %vm864_vm15, %v862_v6, %v863_v4  ;;  %v6367_v51 = vld [vmem:[#allocation135_spill] sm:$0xff]  ;;  %v6368_v12 = vld [vmem:[#allocation136_spill] sm:$0xff] }
 0x1d9   :  { %v4534_v45 = vsel %vm5962_vm7, %v6316_v15, inf  ;;  %vm844_vm9 = vcmp.lt.s32.totalorder %v842_v33, %v843_v59  ;;  %v866_v24 = vrot.slane %v865_v38, 1  ;;  %vm1505_vm12 = vcmp.eq.f32.partialorder %v6365_v36, %v4393_v54  ;;  %v6369_v6 = vld [vmem:[#allocation75_spill] sm:$0xff]  ;;  %v6370_v15 = vld [vmem:[#allocation92_spill] sm:$0xff] }
 0x1da   :  { %6364 = vst [vmem:[#allocation87_spill] sm:$0xff] %v4534_v45  ;;  %vm1506_vm0 = vcmp.eq.f32.partialorder %v6366_v10, %v4465_v48  ;;  %v4540_v63 = vsel %vm844_vm9, %v842_v33, %v843_v59  ;;  %vm1511_vm10 = vcmp.eq.f32.partialorder %v6367_v51, %v4393_v54  ;;  %vm1512_vm2 = vcmp.eq.f32.partialorder %v6368_v12, %v4465_v48 }
 0x1db   :  { %vm1513_vm6 = vcmp.eq.f32.partialorder %v6369_v6, %v4393_v54  ;;  %vm867_vm3 = vcmp.lt.s32.totalorder %v865_v38, %v866_v24  ;;  %vm1514_vm5 = vcmp.eq.f32.partialorder %v6370_v15, %v4465_v48  ;;  %v1519_v32 = vsel %vm1503_vm4, %v6194_v29, 64 }
 0x1dc   :  { %v4554_v4 = vsel %vm867_vm3, %v865_v38, %v866_v24  ;;  %v1520_v50 = vsel %vm1504_vm8, %v6194_v29, 64  ;;  %vm869_vm15 = vcmp.eq.s32.totalorder %v6194_v29, %v4540_v63  ;;  %vm871_vm9 = vcmp.eq.s32.totalorder %v6195_v49, %v4540_v63 }
 0x1dd   :  { %vm870_vm3 = vcmp.eq.s32.totalorder %v6194_v29, %v4554_v4  ;;  %vm872_vm7 = vcmp.eq.s32.totalorder %v6195_v49, %v4554_v4  ;;  %v1521_v8 = vsel %vm1505_vm12, %v6195_v49, 64  ;;  %v1522_v17 = vsel %vm1506_vm0, %v6195_v49, 64 }
 0x1de   :  { %v1523_v33 = vsel %vm1507_vm1, %v6257_v7, 64  ;;  %v1524_v31 = vsel %vm1508_vm11, %v6257_v7, 64  ;;  %v1525_v59 = vsel %vm1509_vm13, %v6262_v11, 64  ;;  %v1526_v38 = vsel %vm1510_vm14, %v6262_v11, 64 }
 0x1df   :  { %v1527_v35 = vsel %vm1511_vm10, %v6269_v5, 64  ;;  %v1528_v47 = vsel %vm1512_vm2, %v6269_v5, 64  ;;  %v885_v24 = vsel %vm869_vm15, %v6331_v57, 0.0  ;;  %v886_v43 = vsel %vm870_vm3, %v6331_v57, 0.0 }
 0x1e0   :  { %v887_v36 = vsel %vm871_vm9, %v6333_v22, 0.0  ;;  %v888_v10 = vsel %vm872_vm7, %v6333_v22, 0.0  ;;  %vm1518_vm4 = vcmp.eq.f32.partialorder %v3852_v26, %v4465_v48  ;;  %vm873_vm8 = vcmp.eq.s32.totalorder %v6257_v7, %v4540_v63 }
 0x1e1   :  { %v1529_v53 = vsel %vm1513_vm6, %v6289_v28, 64  ;;  %v1530_v57 = vsel %vm1514_vm5, %v6289_v28, 64  ;;  %vm6371_vm1 = vcmp.eq.f32.partialorder %v4109_v9, %v4393_v54  ;;  %vm874_vm11 = vcmp.eq.s32.totalorder %v6257_v7, %v4554_v4 }
 0x1e2   :  { %v1531_v22 = vsel %vm6371_vm1, %v6290_v40, 64  ;;  %vm875_vm13 = vcmp.eq.s32.totalorder %v6262_v11, %v4540_v63  ;;  %vm6372_vm14 = vcmp.eq.f32.partialorder %v4112_v25, %v4465_v48  ;;  %vm6373_vm7 = vcmp.eq.f32.partialorder %v3841_v16, %v4393_v54  ;;  %v6406_v48 = vld [vmem:[#allocation93_spill] sm:$0xff] }
 0x1e3   :  { %v1532_v51 = vsel %vm6372_vm14, %v6290_v40, 64  ;;  %v1533_v12 = vsel %vm6373_vm7, %v6291_v60, 64  ;;  %vm876_vm12 = vcmp.eq.s32.totalorder %v6262_v11, %v4554_v4  ;;  %vm877_vm0 = vcmp.eq.s32.totalorder %v6269_v5, %v4540_v63 }
 0x1e4   :  { %v901_v9 = vadd.f32 %v887_v36, %v885_v24  ;;  %v914_v6 = vadd.f32 %v888_v10, %v886_v43  ;;  %v889_v15 = vsel %vm873_vm8, %v6345_v62, 0.0  ;;  %vm1535_vm10 = vcmp.lt.s32.totalorder %v1519_v32, %v1523_v33 }
 0x1e5   :  { %vm1537_vm2 = vcmp.lt.s32.totalorder %v1521_v8, %v1525_v59  ;;  %vm1558_vm6 = vcmp.lt.s32.totalorder %v1520_v50, %v1524_v31  ;;  %vm879_vm5 = vcmp.eq.s32.totalorder %v6289_v28, %v4540_v63  ;;  %v890_v25 = vsel %vm874_vm11, %v6345_v62, 0.0 }
 0x1e6   :  { %v902_v16 = vadd.f32 %v901_v9, %v889_v15  ;;  %v1536_v54 = vsel %vm1535_vm10, %v1519_v32, %v1523_v33  ;;  %v1538_v42 = vsel %vm1537_vm2, %v1521_v8, %v1525_v59  ;;  %v1559_v18 = vsel %vm1558_vm6, %v1520_v50, %v1524_v31 }
 0x1e7   :  { %vm1539_vm15 = vcmp.lt.s32.totalorder %v1536_v54, %v1527_v35  ;;  %vm1541_vm9 = vcmp.lt.s32.totalorder %v1538_v42, %v1529_v53  ;;  %vm1560_vm3 = vcmp.lt.s32.totalorder %v1522_v17, %v1526_v38  ;;  %v891_v24 = vsel %vm875_vm13, %v6346_v1, 0.0 }
 0x1e8   :  { %v915_v43 = vadd.f32 %v914_v6, %v890_v25  ;;  %v1540_v36 = vsel %vm1539_vm15, %v1536_v54, %v1527_v35  ;;  %v1542_v10 = vsel %vm1541_vm9, %v1538_v42, %v1529_v53  ;;  %v1561_v41 = vsel %vm1560_vm3, %v1522_v17, %v1526_v38  ;;  %v1236_v35 = vpop.permute.xlu1 %1235  ;;  %v6374_v6 = vld [vmem:[#allocation22_spill] sm:$0xff]  ;;  %v6375_v25 = vld [vmem:[#allocation52_spill] sm:$0xff] }
 0x1e9   :  { %vm1543_vm8 = vcmp.lt.s32.totalorder %v1540_v36, %v1531_v22  ;;  %vm1545_vm1 = vcmp.lt.s32.totalorder %v1542_v10, %v1533_v12  ;;  %vm1562_vm14 = vcmp.lt.s32.totalorder %v1559_v18, %v1528_v47  ;;  %vm878_vm11 = vcmp.eq.s32.totalorder %v6269_v5, %v4554_v4 }
 0x1ea   :  { %v903_v62 = vadd.f32 %v902_v16, %v891_v24  ;;  %v1544_v32 = vsel %vm1543_vm8, %v1540_v36, %v1531_v22  ;;  %v1546_v8 = vsel %vm1545_vm1, %v1542_v10, %v1533_v12  ;;  %v892_v50 = vsel %vm876_vm12, %v6346_v1, 0.0  ;;  %v6376_v24 = vld [vmem:[#allocation68_spill] sm:$0xff]  ;;  %v6377_v36 = vld [vmem:[#allocation37_spill] sm:$0xff] }
 0x1eb   :  { %vm1547_vm7 = vcmp.lt.s32.totalorder %v1544_v32, %v1546_v8  ;;  %v1563_v33 = vsel %vm1562_vm14, %v1559_v18, %v1528_v47  ;;  %vm1564_vm13 = vcmp.lt.s32.totalorder %v1561_v41, %v1530_v57  ;;  %v916_v54 = vadd.f32 %v915_v43, %v892_v50 }
 0x1ec   :  { %v1534_v42 = vsel %vm1518_vm4, %v6291_v60, 64  ;;  %v1548_v17 = vsel %vm1547_vm7, %v1544_v32, %v1546_v8  ;;  %v1565_v31 = vsel %vm1564_vm13, %v1561_v41, %v1530_v57  ;;  %vm1099_vm10 = vcmp.eq.s32.totalorder %v6291_v60, %v4289_v20 }
 0x1ed   :  { %v893_v59 = vsel %vm877_vm0, %v6359_v46, 0.0  ;;  %v1549_v1 = vrot.slane %v1548_v17, 4  ;;  %vm1566_vm12 = vcmp.lt.s32.totalorder %v1563_v33, %v1532_v51  ;;  %vm1568_vm2 = vcmp.lt.s32.totalorder %v1565_v31, %v1534_v42 }
 0x1ee   :  { %vm880_vm6 = vcmp.eq.s32.totalorder %v6289_v28, %v4554_v4  ;;  %v904_v18 = vadd.f32 %v903_v62, %v893_v59  ;;  %v1567_v38 = vsel %vm1566_vm12, %v1563_v33, %v1532_v51  ;;  %v1569_v26 = vsel %vm1568_vm2, %v1565_v31, %v1534_v42 }
 0x1ef   :  { %vm1100_vm4 = vcmp.eq.s32.totalorder %v6291_v60, %v4295_v39  ;;  %vm881_vm15 = vcmp.eq.s32.totalorder %v6290_v40, %v4540_v63  ;;  %v894_v41 = vsel %vm878_vm11, %v6359_v46, 0.0  ;;  %vm1550_vm0 = vcmp.lt.s32.totalorder %v1548_v17, %v1549_v1 }
 0x1f0   :  { %vm1570_vm9 = vcmp.lt.s32.totalorder %v1567_v38, %v1569_v26  ;;  %vm882_vm3 = vcmp.eq.s32.totalorder %v6290_v40, %v4554_v4  ;;  %v917_v47 = vadd.f32 %v916_v54, %v894_v41  ;;  %v1551_v53 = vsel %vm1550_vm0, %v1548_v17, %v1549_v1 }
 0x1f1   :  { %v1571_v57 = vsel %vm1570_vm9, %v1567_v38, %v1569_v26  ;;  %v895_v22 = vsel %vm879_vm5, %v6361_v2, 0.0  ;;  %v1552_v51 = vrot.slane %v1551_v53, 2  ;;  %vm1244_vm8 = vcmp.eq.s32.totalorder %v1236_v35, 1 }
 0x1f2   :  { %v1572_v12 = vrot.slane %v1571_v57, 4  ;;  %v896_v46 = vsel %vm880_vm6, %v6361_v2, 0.0  ;;  %v905_v9 = vadd.f32 %v904_v18, %v895_v22  ;;  %v4687_v15 = vsel %vm1244_vm8, %v6374_v6, inf }
 0x1f3   :  { %v4690_v16 = vsel %vm1244_vm8, %v6375_v25, inf  ;;  %vm1553_vm1 = vcmp.lt.s32.totalorder %v1551_v53, %v1552_v51  ;;  %v1266_v43 = vmin.f32 %v6376_v24, %v4687_v15  ;;  %v1122_v62 = vadd.f32 %v4527_v23, %v4522_v0 }
 0x1f4   :  { %vm1573_vm14 = vcmp.lt.s32.totalorder %v1571_v57, %v1572_v12  ;;  %v1279_v10 = vmin.f32 %v6377_v36, %v4690_v16  ;;  %v918_v32 = vadd.f32 %v917_v47, %v896_v46  ;;  %v1554_v2 = vsel %vm1553_vm1, %v1551_v53, %v1552_v51  ;;  %v6386_v53 = vld [vmem:[#allocation112_spill] sm:$0xff] }
 0x1f5   :  { %v1574_v8 = vsel %vm1573_vm14, %v1571_v57, %v1572_v12  ;;  %v1555_v50 = vrot.slane %v1554_v2, 1  ;;  %v6378_v54 = vmin.f32 %v4252_v52, %v3818_v3  ;;  %v6379_v17 = vmin.f32 %v4258_v34, %v6315_v27  ;;  %v6387_v57 = vld [vmem:[#allocation120_spill] sm:$0xff] }
 0x1f6   :  { %v1575_v33 = vrot.slane %v1574_v8, 2  ;;  %v1135_v59 = vadd.f32 %v4529_v30, %v4525_v44  ;;  %vm883_vm5 = vcmp.eq.s32.totalorder %v6291_v60, %v4540_v63  ;;  %v897_v0 = vsel %vm881_vm15, %v6363_v61, 0.0  ;;  %v1946_v44 = vpop.permute.xlu1 %1945  ;;  %v6382_v30 = vld [vmem:[#allocation32_spill] sm:$0xff] }
 0x1f7   :  { %v1267_v42 = vmin.f32 %v6378_v54, %v1266_v43  ;;  %v1280_v31 = vmin.f32 %v6379_v17, %v1279_v10  ;;  %v898_v52 = vsel %vm882_vm3, %v6363_v61, 0.0  ;;  %v906_v23 = vadd.f32 %v905_v9, %v897_v0  ;;  %v6390_v43 = vld [vmem:[#allocation115_spill] sm:$0xff]  ;;  %v6393_v17 = vld [vmem:[#allocation16_spill] sm:$0xff] }
 0x1f8   :  { %vm1556_vm11 = vcmp.lt.s32.totalorder %v1554_v2, %v1555_v50  ;;  %vm1576_vm7 = vcmp.lt.s32.totalorder %v1574_v8, %v1575_v33  ;;  %vm6380_vm13 = vcmp.eq.s32.totalorder %v4486_v21, 1  ;;  %v1115_v1 = vsel %vm1099_vm10, %v6382_v30, 0.0  ;;  %v6383_v21 = vld [vmem:[#allocation67_spill] sm:$0xff] }
 0x1f9   :  { %v4719_v34 = vsel %vm6380_vm13, %v6318_v14, inf  ;;  %vm884_vm12 = vcmp.eq.s32.totalorder %v6291_v60, %v4554_v4  ;;  %v919_v18 = vadd.f32 %v918_v32, %v898_v52  ;;  %v1577_v38 = vsel %vm1576_vm7, %v1574_v8, %v1575_v33  ;;  %v6384_v14 = vld [vmem:[#allocation9_spill] sm:$0xff]  ;;  %v6392_v33 = vld [vmem:[#allocation34_spill] sm:$0xff] }
 0x1fa   :  { %6381 = vst [vmem:[#allocation104_spill] sm:$0xff] %v4719_v34  ;;  %v4727_v61 = vadd.f32 %v1122_v62, %v1115_v1  ;;  %v4729_v26 = vsel %vm1556_vm11, %v1554_v2, %v1555_v50  ;;  %v1578_v35 = vrot.slane %v1577_v38, 1  ;;  %v6385_v41 = vmin.f32 %v6383_v21, %v6384_v14  ;;  %v1729_v10 = vpop.permute.xlu1 %1728  ;;  %v6391_v62 = vld [vmem:[#allocation121_spill] sm:$0xff] }
 0x1fb   :  { %v1116_v20 = vsel %vm1100_vm4, %v6382_v30, 0.0  ;;  %v899_v4 = vsel %vm883_vm5, %v6382_v30, 0.0  ;;  %v6388_v22 = vmin.f32 %v6386_v53, %v6387_v57  ;;  %v6389_v12 = vmin.f32 %v3847_v56, %v4054_v55 }
 0x1fc   :  { %v1760_v47 = vmin.f32 %v6385_v41, %v4534_v45  ;;  %v4755_v9 = vadd.f32 %v1135_v59, %v1116_v20  ;;  %v900_v39 = vsel %vm884_vm12, %v6382_v30, 0.0  ;;  %v907_v6 = vadd.f32 %v906_v23, %v899_v4  ;;  %v6394_v30 = vld [vmem:[#allocation38_spill] sm:$0xff] }
 0x1fd   :  { %v4747_v51 = vmin.f32 %v6388_v22, %v4501_v58  ;;  %v4753_v46 = vmin.f32 %v6389_v12, %v4719_v34  ;;  %vm1579_vm10 = vcmp.lt.s32.totalorder %v1577_v38, %v1578_v35  ;;  %v920_v63 = vadd.f32 %v919_v18, %v900_v39  ;;  %v6396_v20 = vld [vmem:[#allocation30_spill] sm:$0xff]  ;;  %v6397_v22 = vld [vmem:[#allocation13_spill] sm:$0xff] }
 0x1fe   :  { %v4758_v25 = vsel %vm1579_vm10, %v1577_v38, %v1578_v35  ;;  %vm1581_vm2 = vcmp.eq.s32.totalorder %v6194_v29, %v4729_v26  ;;  %vm1583_vm6 = vcmp.eq.s32.totalorder %v6195_v49, %v4729_v26  ;;  %v1762_v36 = vmin.f32 %v1760_v47, %v6390_v43  ;;  %v6395_v35 = vld [vmem:[#allocation28_spill] sm:$0xff] }
 0x1ff   :  { %vm1582_vm4 = vcmp.eq.s32.totalorder %v6194_v29, %v4758_v25  ;;  %vm1584_vm15 = vcmp.eq.s32.totalorder %v6195_v49, %v4758_v25  ;;  %vm1585_vm0 = vcmp.eq.s32.totalorder %v6257_v7, %v4729_v26  ;;  %v1775_v32 = vmin.f32 %v4753_v46, %v6391_v62  ;;  %v6398_v46 = vld [vmem:[#allocation124_spill] sm:$0xff]  ;;  %v6407_v62 = vld [vmem:[#allocation95_spill] sm:$0xff] }
 0x200   :  { %v1268_v2 = vrot.slane %v1267_v42, 4  ;;  %v1281_v8 = vrot.slane %v1280_v31, 4  ;;  %v908_v50 = vrot.slane %v907_v6, 4  ;;  %v1597_v54 = vsel %vm1581_vm2, %v6392_v33, 0.0 }
 0x201   :  { %v1599_v59 = vsel %vm1583_vm6, %v6393_v17, 0.0  ;;  %vm1954_vm9 = vcmp.eq.s32.totalorder %v1946_v44, 1  ;;  %v921_v0 = vrot.slane %v920_v63, 4  ;;  %v1598_v52 = vsel %vm1582_vm4, %v6392_v33, 0.0 }
 0x202   :  { %v1600_v23 = vsel %vm1584_vm15, %v6393_v17, 0.0  ;;  %vm1739_vm3 = vcmp.eq.s32.totalorder %v1729_v10, 1  ;;  %vm1586_vm8 = vcmp.eq.s32.totalorder %v6257_v7, %v4758_v25  ;;  %vm1587_vm1 = vcmp.eq.s32.totalorder %v6262_v11, %v4729_v26 }
 0x203   :  { %vm1589_vm14 = vcmp.eq.s32.totalorder %v6269_v5, %v4729_v26  ;;  %v1601_v1 = vsel %vm1585_vm0, %v6394_v30, 0.0  ;;  %v1613_v18 = vadd.f32 %v1599_v59, %v1597_v54  ;;  %v1269_v38 = vmin.f32 %v1267_v42, %v1268_v2  ;;  %v6402_v59 = vld [vmem:[#allocation91_spill] sm:$0xff] }
 0x204   :  { %v1282_v44 = vmin.f32 %v1280_v31, %v1281_v8  ;;  %v4786_v41 = vsel %vm1954_vm9, %v6395_v35, inf  ;;  %v1626_v47 = vadd.f32 %v1600_v23, %v1598_v52  ;;  %v4789_v4 = vsel %vm1954_vm9, %v6396_v20, inf  ;;  %v6400_v31 = vld [vmem:[#allocation103_spill] sm:$0xff]  ;;  %v6401_v8 = vld [vmem:[#allocation8_spill] sm:$0xff]  ;;  %v6404_v35 = vld [vmem:[#allocation126_spill] sm:$0xff] }
 0x205   :  { %v1976_v12 = vmin.f32 %v6397_v22, %v4786_v41  ;;  %v4795_v39 = vsel %vm1739_vm3, %v6398_v46, inf  ;;  %vm1588_vm5 = vcmp.eq.s32.totalorder %v6262_v11, %v4758_v25  ;;  %v1270_v54 = vrot.slane %v1269_v38, 2 }
 0x206   :  { %6399 = vst [vmem:[#allocation105_spill] sm:$0xff] %v4795_v39  ;;  %v1283_v42 = vrot.slane %v1282_v44, 2  ;;  %v1989_v2 = vmin.f32 %v6400_v31, %v4789_v4  ;;  %vm1590_vm11 = vcmp.eq.s32.totalorder %v6269_v5, %v4758_v25  ;;  %v6403_v52 = vmin.f32 %v6401_v8, %v6402_v59 }
 0x207   :  { %v4808_v20 = vsel %vm1739_vm3, %v6404_v35, inf  ;;  %v1761_v22 = vmin.f32 %v4516_v37, %v4795_v39  ;;  %v1602_v46 = vsel %vm1586_vm8, %v6394_v30, 0.0  ;;  %v1271_v31 = vmin.f32 %v1269_v38, %v1270_v54  ;;  %v6414_v54 = vld [vmem:[#allocation49_spill] sm:$0xff] }
 0x208   :  { %v1977_v23 = vmin.f32 %v6403_v52, %v1976_v12  ;;  %6405 = vst [vmem:[#allocation61_spill] sm:$0xff] %v4808_v20  ;;  %v1284_v24 = vmin.f32 %v1282_v44, %v1283_v42  ;;  %v6408_v43 = vmin.f32 %v6406_v48, %v6407_v62  ;;  %v1614_v8 = vadd.f32 %v1613_v18, %v1601_v1  ;;  %v6409_v48 = vld [vmem:[#allocation41_spill] sm:$0xff]  ;;  %v6415_v42 = vld [vmem:[#allocation54_spill] sm:$0xff] }
 0x209   :  { %v1627_v12 = vadd.f32 %v1626_v47, %v1602_v46  ;;  %v1774_v10 = vmin.f32 %v4747_v51, %v4808_v20  ;;  %v1272_v35 = vrot.slane %v1271_v31, 1  ;;  %v4821_v39 = vmin.f32 %v1761_v22, %v1762_v36  ;;  %v6417_v22 = vld [vmem:[#allocation116_spill] sm:$0xff]  ;;  %v6418_v46 = vld [vmem:[#allocation117_spill] sm:$0xff] }
 0x20a   :  { %v1990_v34 = vmin.f32 %v6408_v43, %v1989_v2  ;;  %v1978_v52 = vrot.slane %v1977_v23, 4  ;;  %v1285_v45 = vrot.slane %v1284_v24, 1  ;;  %v4824_v55 = vadd.f32 %v908_v50, %v907_v6  ;;  %v6416_v2 = vld [vmem:[#allocation40_spill] sm:$0xff] }
 0x20b   :  { %v4826_v38 = vadd.f32 %v921_v0, %v920_v63  ;;  %v1603_v43 = vsel %vm1587_vm1, %v6409_v48, 0.0  ;;  %v4834_v1 = vmin.f32 %v1271_v31, %v1272_v35  ;;  %v4838_v18 = vmin.f32 %v1774_v10, %v1775_v32  ;;  %v6412_v63 = vld [vmem:[#allocation64_spill] sm:$0xff]  ;;  %v6423_v10 = vld [vmem:[#allocation125_spill] sm:$0xff]  ;;  %v6424_v35 = vld [vmem:[#allocation127_spill] sm:$0xff] }
 0x20c   :  { %v1991_v37 = vrot.slane %v1990_v34, 4  ;;  %v4828_v44 = vmin.f32 %v1977_v23, %v1978_v52  ;;  %v4836_v51 = vmin.f32 %v1284_v24, %v1285_v45  ;;  %v1604_v6 = vsel %vm1588_vm5, %v6409_v48, 0.0  ;;  %v6413_v32 = vld [vmem:[#allocation48_spill] sm:$0xff]  ;;  %v6422_v52 = vld [vmem:[#allocation43_spill] sm:$0xff] }
 0x20d   :  { %6410 = vst [vmem:[#allocation62_spill] sm:$0xff] %v4834_v1  ;;  %v4848_v36 = vsel %vm1589_vm14, %v6412_v63, 0.0  ;;  %v4854_v50 = vsel %vm1590_vm11, %v6412_v63, 0.0  ;;  %v4856_v45 = vadd.f32 %v1614_v8, %v1603_v43  ;;  %v4858_v24 = vadd.f32 %v1627_v12, %v1604_v6  ;;  %v6420_v8 = vld [vmem:[#allocation123_spill] sm:$0xff]  ;;  %v6421_v12 = vld [vmem:[#allocation42_spill] sm:$0xff] }
 0x20e   :  { %6411 = vst [vmem:[#allocation63_spill] sm:$0xff] %v4836_v51  ;;  %vm1289_vm7 = vcmp.eq.f32.partialorder %v6413_v32, %v4834_v1  ;;  %v4862_v0 = vmin.f32 %v1990_v34, %v1991_v37  ;;  %vm1290_vm13 = vcmp.eq.f32.partialorder %v6414_v54, %v4836_v51  ;;  %vm1291_vm12 = vcmp.eq.f32.partialorder %v6415_v42, %v4834_v1  ;;  %v6419_v34 = vld [vmem:[#allocation122_spill] sm:$0xff] }
 0x20f   :  { %vm1292_vm10 = vcmp.eq.f32.partialorder %v6416_v2, %v4836_v51  ;;  %v1980_v23 = vrot.slane %v4828_v44, 2  ;;  %vm1287_vm2 = vcmp.eq.f32.partialorder %v6417_v22, %v4834_v1  ;;  %vm1288_vm6 = vcmp.eq.f32.partialorder %v6418_v46, %v4836_v51 }
 0x210   :  { %vm1293_vm4 = vcmp.eq.f32.partialorder %v6419_v34, %v4834_v1  ;;  %vm1294_vm15 = vcmp.eq.f32.partialorder %v6420_v8, %v4836_v51  ;;  %vm1295_vm0 = vcmp.eq.f32.partialorder %v6421_v12, %v4834_v1  ;;  %vm1296_vm9 = vcmp.eq.f32.partialorder %v6422_v52, %v4836_v51 }
 0x211   :  { %vm1297_vm3 = vcmp.eq.f32.partialorder %v6423_v10, %v4834_v1  ;;  %vm1298_vm8 = vcmp.eq.f32.partialorder %v6424_v35, %v4836_v51  ;;  %vm1299_vm1 = vcmp.eq.f32.partialorder %v3818_v3, %v4834_v1  ;;  %vm1300_vm14 = vcmp.eq.f32.partialorder %v6315_v27, %v4836_v51 }
 0x212   :  { %vm1301_vm5 = vcmp.eq.f32.partialorder %v4687_v15, %v4834_v1  ;;  %vm1302_vm11 = vcmp.eq.f32.partialorder %v4690_v16, %v4836_v51  ;;  %v1303_v37 = vsel %vm1287_vm2, %v6194_v29, 64  ;;  %v1304_v43 = vsel %vm1288_vm6, %v6194_v29, 64 }
 0x213   :  { %v1305_v6 = vsel %vm1289_vm7, %v6195_v49, 64  ;;  %v1306_v22 = vsel %vm1290_vm13, %v6195_v49, 64  ;;  %v1307_v46 = vsel %vm1291_vm12, %v6257_v7, 64  ;;  %v1308_v58 = vsel %vm1292_vm10, %v6257_v7, 64 }
 0x214   :  { %v1309_v32 = vsel %vm1293_vm4, %v6262_v11, 64  ;;  %vm1591_vm7 = vcmp.eq.s32.totalorder %v6289_v28, %v4729_v26  ;;  %vm1592_vm13 = vcmp.eq.s32.totalorder %v6289_v28, %v4758_v25  ;;  %v1310_v54 = vsel %vm1294_vm15, %v6262_v11, 64 }
 0x215   :  { %v1311_v42 = vsel %vm1295_vm0, %v6269_v5, 64  ;;  %v1312_v2 = vsel %vm1296_vm9, %v6269_v5, 64  ;;  %v1313_v34 = vsel %vm1297_vm3, %v6289_v28, 64  ;;  %v1314_v8 = vsel %vm1298_vm8, %v6289_v28, 64 }
 0x216   :  { %v1315_v12 = vsel %vm1299_vm1, %v6290_v40, 64  ;;  %v1316_v52 = vsel %vm1300_vm14, %v6290_v40, 64  ;;  %v1317_v10 = vsel %vm1301_vm5, %v6291_v60, 64  ;;  %v1318_v35 = vsel %vm1302_vm11, %v6291_v60, 64 }
 0x217   :  { %vm1319_vm12 = vcmp.lt.s32.totalorder %v1303_v37, %v1307_v46  ;;  %vm1321_vm10 = vcmp.lt.s32.totalorder %v1305_v6, %v1309_v32  ;;  %vm1342_vm2 = vcmp.lt.s32.totalorder %v1304_v43, %v1308_v58  ;;  %vm1344_vm6 = vcmp.lt.s32.totalorder %v1306_v22, %v1310_v54 }
 0x218   :  { %v1320_v3 = vsel %vm1319_vm12, %v1303_v37, %v1307_v46  ;;  %v1322_v31 = vsel %vm1321_vm10, %v1305_v6, %v1309_v32  ;;  %v1343_v47 = vsel %vm1342_vm2, %v1304_v43, %v1308_v58  ;;  %v1345_v27 = vsel %vm1344_vm6, %v1306_v22, %v1310_v54 }
 0x219   :  { %vm1323_vm4 = vcmp.lt.s32.totalorder %v1320_v3, %v1311_v42  ;;  %vm1325_vm15 = vcmp.lt.s32.totalorder %v1322_v31, %v1313_v34  ;;  %vm1346_vm0 = vcmp.lt.s32.totalorder %v1343_v47, %v1312_v2  ;;  %vm1348_vm9 = vcmp.lt.s32.totalorder %v1345_v27, %v1314_v8 }
 0x21a   :  { %v1324_v20 = vsel %vm1323_vm4, %v1320_v3, %v1311_v42  ;;  %v1326_v14 = vsel %vm1325_vm15, %v1322_v31, %v1313_v34  ;;  %v1347_v15 = vsel %vm1346_vm0, %v1343_v47, %v1312_v2  ;;  %v1349_v1 = vsel %vm1348_vm9, %v1345_v27, %v1314_v8  ;;  %v6425_v42 = vld [vmem:[#allocation18_spill] sm:$0xff]  ;;  %v6428_v3 = vld [vmem:[#allocation57_spill] sm:$0xff]  ;;  %v6429_v27 = vld [vmem:[#allocation99_spill] sm:$0xff] }
 0x21b   :  { %vm1327_vm3 = vcmp.lt.s32.totalorder %v1324_v20, %v1315_v12  ;;  %vm1329_vm8 = vcmp.lt.s32.totalorder %v1326_v14, %v1317_v10  ;;  %vm1350_vm1 = vcmp.lt.s32.totalorder %v1347_v15, %v1316_v52  ;;  %vm1593_vm14 = vcmp.eq.s32.totalorder %v6290_v40, %v4729_v26 }
 0x21c   :  { %vm1594_vm5 = vcmp.eq.s32.totalorder %v6290_v40, %v4758_v25  ;;  %v1328_v58 = vsel %vm1327_vm3, %v1324_v20, %v1315_v12  ;;  %v1330_v16 = vsel %vm1329_vm8, %v1326_v14, %v1317_v10  ;;  %v1351_v37 = vsel %vm1350_vm1, %v1347_v15, %v1316_v52  ;;  %v6430_v15 = vld [vmem:[#allocation76_spill] sm:$0xff] }
 0x21d   :  { %vm1352_vm11 = vcmp.lt.s32.totalorder %v1349_v1, %v1318_v35  ;;  %vm1331_vm12 = vcmp.lt.s32.totalorder %v1328_v58, %v1330_v16  ;;  %v1981_v31 = vmin.f32 %v4828_v44, %v1980_v23  ;;  %v1993_v47 = vrot.slane %v4862_v0, 2 }
 0x21e   :  { %v1353_v43 = vsel %vm1352_vm11, %v1349_v1, %v1318_v35  ;;  %v1616_v6 = vadd.f32 %v4856_v45, %v4848_v36  ;;  %v1629_v22 = vadd.f32 %v4858_v24, %v4854_v50  ;;  %v1332_v46 = vsel %vm1331_vm12, %v1328_v58, %v1330_v16  ;;  %v6432_v16 = vld [vmem:[#allocation100_spill] sm:$0xff] }
 0x21f   :  { %vm1354_vm10 = vcmp.lt.s32.totalorder %v1351_v37, %v1353_v43  ;;  %v1333_v32 = vrot.slane %v1332_v46, 4  ;;  %v1982_v20 = vrot.slane %v1981_v31, 1  ;;  %v1994_v14 = vmin.f32 %v4862_v0, %v1993_v47  ;;  %v6433_v47 = vld [vmem:[#allocation94_spill] sm:$0xff] }
 0x220   :  { %v1355_v54 = vsel %vm1354_vm10, %v1351_v37, %v1353_v43  ;;  %v1607_v44 = vsel %vm1591_vm7, %v6425_v42, 0.0  ;;  %v1608_v1 = vsel %vm1592_vm13, %v6425_v42, 0.0  ;;  %v6426_v50 = vrot.slane %v4821_v39, 4 }
 0x221   :  { %v1356_v36 = vrot.slane %v1355_v54, 4  ;;  %vm1334_vm2 = vcmp.lt.s32.totalorder %v1332_v46, %v1333_v32  ;;  %v4981_v24 = vmin.f32 %v1981_v31, %v1982_v20  ;;  %v1995_v23 = vrot.slane %v1994_v14, 1 }
 0x222   :  { %v1765_v45 = vmin.f32 %v4821_v39, %v6426_v50  ;;  %v6427_v0 = vrot.slane %v4838_v18, 4  ;;  %v1617_v34 = vadd.f32 %v1616_v6, %v1607_v44  ;;  %v1630_v8 = vadd.f32 %v1629_v22, %v1608_v1  ;;  %v6434_v6 = vld [vmem:[#allocation90_spill] sm:$0xff]  ;;  %v6435_v1 = vld [vmem:[#allocation35_spill] sm:$0xff] }
 0x223   :  { %v1335_v12 = vsel %vm1334_vm2, %v1332_v46, %v1333_v32  ;;  %vm1357_vm7 = vcmp.lt.s32.totalorder %v1355_v54, %v1356_v36  ;;  %v4986_v35 = vmin.f32 %v1994_v14, %v1995_v23  ;;  %vm1997_vm13 = vcmp.eq.f32.partialorder %v6428_v3, %v4981_v24 }
 0x224   :  { %v1778_v2 = vmin.f32 %v4838_v18, %v6427_v0  ;;  %v1336_v52 = vrot.slane %v1335_v12, 2  ;;  %v1358_v10 = vsel %vm1357_vm7, %v1355_v54, %v1356_v36  ;;  %v1766_v58 = vrot.slane %v1765_v45, 2  ;;  %v6431_v18 = vld [vmem:[#allocation58_spill] sm:$0xff]  ;;  %v6436_v36 = vld [vmem:[#allocation39_spill] sm:$0xff] }
 0x225   :  { %v1359_v39 = vrot.slane %v1358_v10, 2  ;;  %vm1998_vm0 = vcmp.eq.f32.partialorder %v6431_v18, %v4986_v35  ;;  %v1609_v22 = vsel %vm1593_vm14, %v6434_v6, 0.0  ;;  %v1610_v46 = vsel %vm1594_vm5, %v6434_v6, 0.0 }
 0x226   :  { %vm1337_vm15 = vcmp.lt.s32.totalorder %v1335_v12, %v1336_v52  ;;  %v1779_v37 = vrot.slane %v1778_v2, 2  ;;  %v5009_v20 = vadd.f32 %v1617_v34, %v1609_v22  ;;  %v5011_v14 = vadd.f32 %v1630_v8, %v1610_v46 }
 0x227   :  { %v1338_v31 = vsel %vm1337_vm15, %v1335_v12, %v1336_v52  ;;  %vm1360_vm3 = vcmp.lt.s32.totalorder %v1358_v10, %v1359_v39  ;;  %vm1999_vm1 = vcmp.eq.f32.partialorder %v6435_v1, %v4981_v24  ;;  %v5017_v50 = vmin.f32 %v1765_v45, %v1766_v58  ;;  %v6437_v12 = vld [vmem:[#allocation59_spill] sm:$0xff]  ;;  %v6439_v52 = vld [vmem:[#allocation60_spill] sm:$0xff] }
 0x228   :  { %v1339_v32 = vrot.slane %v1338_v31, 1  ;;  %v1361_v54 = vsel %vm1360_vm3, %v1358_v10, %v1359_v39  ;;  %v5019_v23 = vmin.f32 %v1778_v2, %v1779_v37  ;;  %v5027_v34 = vsel %vm1997_vm13, %v6194_v29, 64  ;;  %v6438_v2 = vld [vmem:[#allocation56_spill] sm:$0xff]  ;;  %v6440_v10 = vld [vmem:[#allocation10_spill] sm:$0xff]  ;;  %v6441_v1 = vld [vmem:[#allocation19_spill] sm:$0xff] }
 0x229   :  { %v1362_v44 = vrot.slane %v1361_v54, 1  ;;  %v5033_v8 = vsel %vm1998_vm0, %v6194_v29, 64  ;;  %v2015_v3 = vsel %vm1999_vm1, %v6195_v49, 64 }
 0x22a   :  { %vm1340_vm11 = vcmp.lt.s32.totalorder %v1338_v31, %v1339_v32 }
 0x22b   :  { %v1341_v0 = vsel %vm1340_vm11, %v1338_v31, %v1339_v32  ;;  %vm1363_vm14 = vcmp.lt.s32.totalorder %v1361_v54, %v1362_v44 }
 0x22c   :  { %v1364_v45 = vsel %vm1363_vm14, %v1361_v54, %v1362_v44  ;;  %vm1365_vm10 = vcmp.eq.s32.totalorder %v6194_v29, %v1341_v0  ;;  %vm1367_vm2 = vcmp.eq.s32.totalorder %v6195_v49, %v1341_v0  ;;  %vm1369_vm14 = vcmp.eq.s32.totalorder %v6257_v7, %v1341_v0 }
 0x22d   :  { %vm1366_vm0 = vcmp.eq.s32.totalorder %v6194_v29, %v1364_v45  ;;  %vm1368_vm11 = vcmp.eq.s32.totalorder %v6195_v49, %v1364_v45  ;;  %vm1370_vm7 = vcmp.eq.s32.totalorder %v6257_v7, %v1364_v45  ;;  %vm1371_vm3 = vcmp.eq.s32.totalorder %v6262_v11, %v1341_v0 }
 0x22e   :  { %vm1372_vm5 = vcmp.eq.s32.totalorder %v6262_v11, %v1364_v45  ;;  %vm1373_vm1 = vcmp.eq.s32.totalorder %v6269_v5, %v1341_v0  ;;  %vm1374_vm8 = vcmp.eq.s32.totalorder %v6269_v5, %v1364_v45  ;;  %vm1375_vm4 = vcmp.eq.s32.totalorder %v6289_v28, %v1341_v0 }
 0x22f   :  { %vm1376_vm9 = vcmp.eq.s32.totalorder %v6289_v28, %v1364_v45  ;;  %vm1377_vm6 = vcmp.eq.s32.totalorder %v6290_v40, %v1341_v0  ;;  %vm1378_vm12 = vcmp.eq.s32.totalorder %v6290_v40, %v1364_v45  ;;  %vm1379_vm15 = vcmp.eq.s32.totalorder %v6291_v60, %v1341_v0 }
 0x230   :  { %vm1380_vm13 = vcmp.eq.s32.totalorder %v6291_v60, %v1364_v45  ;;  %v1381_v39 = vsel %vm1365_vm10, %v6392_v33, 0.0  ;;  %v1382_v58 = vsel %vm1366_vm0, %v6392_v33, 0.0  ;;  %v1383_v18 = vsel %vm1367_vm2, %v6393_v17, 0.0 }
 0x231   :  { %v1384_v37 = vsel %vm1368_vm11, %v6393_v17, 0.0  ;;  %v1385_v31 = vsel %vm1369_vm14, %v6394_v30, 0.0  ;;  %v1386_v22 = vsel %vm1370_vm7, %v6394_v30, 0.0  ;;  %v1387_v33 = vsel %vm1371_vm3, %v6409_v48, 0.0 }
 0x232   :  { %v1388_v46 = vsel %vm1372_vm5, %v6409_v48, 0.0  ;;  %v1389_v17 = vsel %vm1373_vm1, %v6412_v63, 0.0  ;;  %v1390_v32 = vsel %vm1374_vm8, %v6412_v63, 0.0  ;;  %v1391_v30 = vsel %vm1375_vm4, %v6425_v42, 0.0 }
 0x233   :  { %v1392_v54 = vsel %vm1376_vm9, %v6425_v42, 0.0  ;;  %v1393_v48 = vsel %vm1377_vm6, %v6434_v6, 0.0  ;;  %v1394_v44 = vsel %vm1378_vm12, %v6434_v6, 0.0  ;;  %v1395_v63 = vsel %vm1379_vm15, %v6441_v1, 0.0 }
 0x234   :  { %v1396_v43 = vsel %vm1380_vm13, %v6441_v1, 0.0  ;;  %v1397_v51 = vadd.f32 %v1383_v18, %v1381_v39  ;;  %v1410_v29 = vadd.f32 %v1384_v37, %v1382_v58  ;;  %vm2012_vm4 = vcmp.eq.f32.partialorder %v4789_v4, %v4986_v35 }
 0x235   :  { %vm6442_vm6 = vcmp.eq.f32.partialorder %v6436_v36, %v4986_v35  ;;  %vm6443_vm9 = vcmp.eq.f32.partialorder %v6429_v27, %v4981_v24  ;;  %vm6444_vm8 = vcmp.eq.f32.partialorder %v6432_v16, %v4986_v35  ;;  %vm6445_vm12 = vcmp.eq.f32.partialorder %v6430_v15, %v4981_v24 }
 0x236   :  { %v2016_v42 = vsel %vm6442_vm6, %v6195_v49, 64  ;;  %v2017_v6 = vsel %vm6443_vm9, %v6257_v7, 64  ;;  %v2018_v0 = vsel %vm6444_vm8, %v6257_v7, 64  ;;  %v2019_v45 = vsel %vm6445_vm12, %v6262_v11, 64 }
 0x237   :  { %v1398_v39 = vadd.f32 %v1397_v51, %v1385_v31  ;;  %v1411_v58 = vadd.f32 %v1410_v29, %v1386_v22  ;;  %vm6446_vm5 = vcmp.eq.f32.partialorder %v6433_v47, %v4986_v35  ;;  %vm6447_vm10 = vcmp.eq.f32.partialorder %v6437_v12, %v4981_v24 }
 0x238   :  { %v2020_v36 = vsel %vm6446_vm5, %v6262_v11, 64  ;;  %v2021_v27 = vsel %vm6447_vm10, %v6269_v5, 64  ;;  %vm6448_vm2 = vcmp.eq.f32.partialorder %v6438_v2, %v4986_v35  ;;  %vm6449_vm7 = vcmp.eq.f32.partialorder %v6439_v52, %v4981_v24 }
 0x239   :  { %v2022_v16 = vsel %vm6448_vm2, %v6269_v5, 64  ;;  %v2023_v29 = vsel %vm6449_vm7, %v6289_v28, 64  ;;  %vm6450_vm15 = vcmp.eq.f32.partialorder %v6440_v10, %v4986_v35  ;;  %vm6451_vm13 = vcmp.eq.f32.partialorder %v6402_v59, %v4981_v24 }
 0x23a   :  { %v2024_v51 = vsel %vm6450_vm15, %v6289_v28, 64  ;;  %v2025_v15 = vsel %vm6451_vm13, %v6290_v40, 64  ;;  %vm1595_vm3 = vcmp.eq.s32.totalorder %v6291_v60, %v4729_v26  ;;  %v1399_v47 = vadd.f32 %v1398_v39, %v1387_v33 }
 0x23b   :  { %v1412_v12 = vadd.f32 %v1411_v58, %v1388_v46  ;;  %vm6452_vm0 = vcmp.eq.f32.partialorder %v6407_v62, %v4986_v35  ;;  %vm6453_vm11 = vcmp.eq.f32.partialorder %v4786_v41, %v4981_v24  ;;  %vm1596_vm14 = vcmp.eq.s32.totalorder %v6291_v60, %v4758_v25 }
 0x23c   :  { %v2026_v2 = vsel %vm6452_vm0, %v6290_v40, 64  ;;  %v2027_v52 = vsel %vm6453_vm11, %v6291_v60, 64  ;;  %vm2029_vm1 = vcmp.lt.s32.totalorder %v5027_v34, %v2017_v6  ;;  %vm2031_vm6 = vcmp.lt.s32.totalorder %v2015_v3, %v2019_v45 }
 0x23d   :  { %vm2052_vm9 = vcmp.lt.s32.totalorder %v5033_v8, %v2018_v0  ;;  %vm2054_vm8 = vcmp.lt.s32.totalorder %v2016_v42, %v2020_v36  ;;  %v1400_v59 = vadd.f32 %v1399_v47, %v1389_v17  ;;  %v1413_v10 = vadd.f32 %v1412_v12, %v1390_v32 }
 0x23e   :  { %v2030_v18 = vsel %vm2029_vm1, %v5027_v34, %v2017_v6  ;;  %v2032_v62 = vsel %vm2031_vm6, %v2015_v3, %v2019_v45  ;;  %v2053_v37 = vsel %vm2052_vm9, %v5033_v8, %v2018_v0  ;;  %v2055_v41 = vsel %vm2054_vm8, %v2016_v42, %v2020_v36 }
 0x23f   :  { %vm2033_vm12 = vcmp.lt.s32.totalorder %v2030_v18, %v2021_v27  ;;  %vm2035_vm5 = vcmp.lt.s32.totalorder %v2032_v62, %v2023_v29  ;;  %v1401_v31 = vadd.f32 %v1400_v59, %v1391_v30  ;;  %v1414_v22 = vadd.f32 %v1413_v10, %v1392_v54 }
 0x240   :  { %v2034_v33 = vsel %vm2033_vm12, %v2030_v18, %v2021_v27  ;;  %v2036_v46 = vsel %vm2035_vm5, %v2032_v62, %v2023_v29  ;;  %vm2056_vm7 = vcmp.lt.s32.totalorder %v2053_v37, %v2022_v16  ;;  %vm2058_vm15 = vcmp.lt.s32.totalorder %v2055_v41, %v2024_v51 }
 0x241   :  { %vm2037_vm10 = vcmp.lt.s32.totalorder %v2034_v33, %v2025_v15  ;;  %vm2039_vm2 = vcmp.lt.s32.totalorder %v2036_v46, %v2027_v52  ;;  %v1402_v39 = vadd.f32 %v1401_v31, %v1393_v48  ;;  %v1415_v58 = vadd.f32 %v1414_v22, %v1394_v44 }
 0x242   :  { %v2038_v17 = vsel %vm2037_vm10, %v2034_v33, %v2025_v15  ;;  %v2040_v32 = vsel %vm2039_vm2, %v2036_v46, %v2027_v52  ;;  %v2028_v34 = vsel %vm2012_vm4, %v6291_v60, 64  ;;  %v2057_v8 = vsel %vm2056_vm7, %v2053_v37, %v2022_v16  ;;  %v6457_v33 = vld [vmem:[#allocation9_spill] sm:$0xff]  ;;  %v6458_v46 = vld [vmem:[#allocation11_spill] sm:$0xff] }
 0x243   :  { %vm2041_vm13 = vcmp.lt.s32.totalorder %v2038_v17, %v2040_v32  ;;  %v2059_v3 = vsel %vm2058_vm15, %v2055_v41, %v2024_v51  ;;  %v1403_v30 = vadd.f32 %v1402_v39, %v1395_v63  ;;  %v1416_v54 = vadd.f32 %v1415_v58, %v1396_v43  ;;  %v6459_v58 = vld [vmem:[#allocation83_spill] sm:$0xff]  ;;  %v6474_v37 = vld [vmem:[#allocation121_spill] sm:$0xff] }
 0x244   :  { %v2042_v42 = vsel %vm2041_vm13, %v2038_v17, %v2040_v32  ;;  %vm2060_vm0 = vcmp.lt.s32.totalorder %v2057_v8, %v2026_v2  ;;  %vm2062_vm11 = vcmp.lt.s32.totalorder %v2059_v3, %v2028_v34  ;;  %v1768_v48 = vrot.slane %v5017_v50, 1  ;;  %v6460_v17 = vld [vmem:[#allocation86_spill] sm:$0xff]  ;;  %v6461_v32 = vld [vmem:[#allocation87_spill] sm:$0xff] }
 0x245   :  { %v2043_v6 = vrot.slane %v2042_v42, 4  ;;  %v2061_v0 = vsel %vm2060_vm0, %v2057_v8, %v2026_v2  ;;  %v923_v44 = vrot.slane %v4826_v38, 2  ;;  %v1404_v45 = vrot.slane %v1403_v30, 4 }
 0x246   :  { %v2063_v36 = vsel %vm2062_vm11, %v2059_v3, %v2028_v34  ;;  %v1781_v27 = vrot.slane %v5019_v23, 1  ;;  %v1611_v4 = vsel %vm1595_vm3, %v6441_v1, 0.0  ;;  %v1417_v63 = vrot.slane %v1416_v54, 4  ;;  %v6462_v34 = vld [vmem:[#allocation20_spill] sm:$0xff] }
 0x247   :  { %vm2044_vm4 = vcmp.lt.s32.totalorder %v2042_v42, %v2043_v6  ;;  %vm2064_vm1 = vcmp.lt.s32.totalorder %v2061_v0, %v2063_v36  ;;  %v1612_v43 = vsel %vm1596_vm14, %v6441_v1, 0.0  ;;  %v5189_v16 = vadd.f32 %v5009_v20, %v1611_v4  ;;  %v6463_v3 = vld [vmem:[#allocation104_spill] sm:$0xff] }
 0x248   :  { %v2045_v29 = vsel %vm2044_vm4, %v2042_v42, %v2043_v6  ;;  %v2065_v51 = vsel %vm2064_vm1, %v2061_v0, %v2063_v36  ;;  %v5192_v15 = vadd.f32 %v5011_v14, %v1612_v43  ;;  %v5195_v26 = vmin.f32 %v5017_v50, %v1768_v48  ;;  %v6467_v0 = vld [vmem:[#allocation65_spill] sm:$0xff] }
 0x249   :  { %v2046_v47 = vrot.slane %v2045_v29, 2  ;;  %v2066_v12 = vrot.slane %v2065_v51, 4  ;;  %v6454_v2 = vrot.slane %v4727_v61, 4  ;;  %v6455_v25 = vrot.slane %v4755_v9, 4  ;;  %v6470_v43 = vld [vmem:[#allocation53_spill] sm:$0xff] }
 0x24a   :  { %v5207_v1 = vadd.f32 %v1404_v45, %v1403_v30  ;;  %v5210_v14 = vmin.f32 %v5019_v23, %v1781_v27  ;;  %v6456_v59 = vrot.slane %v4824_v55, 2  ;;  %v5217_v10 = vadd.f32 %v1417_v63, %v1416_v54  ;;  %v6464_v30 = vld [vmem:[#allocation105_spill] sm:$0xff]  ;;  %v6469_v27 = vld [vmem:[#allocation50_spill] sm:$0xff] }
 0x24b   :  { %v5200_v52 = vadd.f32 %v6454_v2, %v4727_v61  ;;  %v5205_v20 = vadd.f32 %v6455_v25, %v4755_v9  ;;  %vm2047_vm3 = vcmp.lt.s32.totalorder %v2045_v29, %v2046_v47  ;;  %vm2067_vm14 = vcmp.lt.s32.totalorder %v2065_v51, %v2066_v12  ;;  %v6465_v54 = vld [vmem:[#allocation61_spill] sm:$0xff] }
 0x24c   :  { %v5215_v50 = vadd.f32 %v6456_v59, %v4824_v55  ;;  %v5220_v61 = vadd.f32 %v923_v44, %v4826_v38  ;;  %v2048_v18 = vsel %vm2047_vm3, %v2045_v29, %v2046_v47  ;;  %v2068_v62 = vsel %vm2067_vm14, %v2065_v51, %v2066_v12  ;;  %v6468_v44 = vld [vmem:[#allocation115_spill] sm:$0xff]  ;;  %v6471_v47 = vld [vmem:[#allocation69_spill] sm:$0xff] }
 0x24d   :  { %v2049_v23 = vrot.slane %v2048_v18, 1  ;;  %v2069_v41 = vrot.slane %v2068_v62, 2  ;;  %vm1783_vm6 = vcmp.eq.f32.partialorder %v3998_v19, %v5195_v26  ;;  %v1406_v55 = vrot.slane %v5207_v1, 2  ;;  %v6472_v25 = vld [vmem:[#allocation81_spill] sm:$0xff] }
 0x24e   :  { %vm1784_vm9 = vcmp.eq.f32.partialorder %v6386_v53, %v5210_v14  ;;  %vm1785_vm8 = vcmp.eq.f32.partialorder %v6383_v21, %v5195_v26  ;;  %vm1786_vm12 = vcmp.eq.f32.partialorder %v3847_v56, %v5210_v14  ;;  %vm1787_vm2 = vcmp.eq.f32.partialorder %v4006_v13, %v5195_v26  ;;  %v6466_v56 = vld [vmem:[#allocation47_spill] sm:$0xff] }
 0x24f   :  { %vm2050_vm5 = vcmp.lt.s32.totalorder %v2048_v18, %v2049_v23  ;;  %vm2070_vm10 = vcmp.lt.s32.totalorder %v2068_v62, %v2069_v41  ;;  %v1799_v8 = vsel %vm1783_vm6, %v6462_v34, 64  ;;  %v1800_v42 = vsel %vm1784_vm9, %v6462_v34, 64 }
 0x250   :  { %v5236_v31 = vsel %vm2050_vm5, %v2048_v18, %v2049_v23  ;;  %v2071_v22 = vsel %vm2070_vm10, %v2068_v62, %v2069_v41  ;;  %v1801_v19 = vsel %vm1785_vm8, %v6195_v49, 64  ;;  %v5274_v6 = vsel %vm1786_vm12, %v6195_v49, 64  ;;  %v6473_v23 = vld [vmem:[#allocation70_spill] sm:$0xff] }
 0x251   :  { %v2072_v39 = vrot.slane %v2071_v22, 1  ;;  %vm2075_vm1 = vcmp.eq.s32.totalorder %v6462_v34, %v5236_v31  ;;  %vm2077_vm10 = vcmp.eq.s32.totalorder %v6195_v49, %v5236_v31  ;;  %vm2079_vm5 = vcmp.eq.s32.totalorder %v6257_v7, %v5236_v31 }
 0x252   :  { %vm2081_vm9 = vcmp.eq.s32.totalorder %v6262_v11, %v5236_v31  ;;  %vm2083_vm8 = vcmp.eq.s32.totalorder %v6269_v5, %v5236_v31  ;;  %vm2085_vm14 = vcmp.eq.s32.totalorder %v6289_v28, %v5236_v31  ;;  %vm2087_vm12 = vcmp.eq.s32.totalorder %v6290_v40, %v5236_v31 }
 0x253   :  { %vm2073_vm6 = vcmp.lt.s32.totalorder %v2071_v22, %v2072_v39  ;;  %v2091_v21 = vsel %vm2075_vm1, %v6466_v56, 0.0  ;;  %v2093_v48 = vsel %vm2077_vm10, %v6467_v0, 0.0  ;;  %vm1797_vm15 = vcmp.eq.f32.partialorder %v6468_v44, %v5195_v26 }
 0x254   :  { %v5282_v53 = vsel %vm2073_vm6, %v2071_v22, %v2072_v39  ;;  %v2095_v4 = vsel %vm2079_vm5, %v6469_v27, 0.0  ;;  %v2097_v29 = vsel %vm2081_vm9, %v6470_v43, 0.0  ;;  %v2099_v12 = vsel %vm2083_vm8, %v6471_v47, 0.0 }
 0x255   :  { %vm2076_vm3 = vcmp.eq.s32.totalorder %v6462_v34, %v5282_v53  ;;  %vm2078_vm4 = vcmp.eq.s32.totalorder %v6195_v49, %v5282_v53  ;;  %vm2080_vm11 = vcmp.eq.s32.totalorder %v6257_v7, %v5282_v53  ;;  %vm2082_vm6 = vcmp.eq.s32.totalorder %v6262_v11, %v5282_v53 }
 0x256   :  { %vm2084_vm0 = vcmp.eq.s32.totalorder %v6269_v5, %v5282_v53  ;;  %vm2086_vm13 = vcmp.eq.s32.totalorder %v6289_v28, %v5282_v53  ;;  %vm2088_vm7 = vcmp.eq.s32.totalorder %v6290_v40, %v5282_v53  ;;  %v2092_v45 = vsel %vm2076_vm3, %v6466_v56, 0.0 }
 0x257   :  { %v2094_v36 = vsel %vm2078_vm4, %v6467_v0, 0.0  ;;  %v2096_v63 = vsel %vm2080_vm11, %v6469_v27, 0.0  ;;  %v2098_v51 = vsel %vm2082_vm6, %v6470_v43, 0.0  ;;  %vm2089_vm4 = vcmp.eq.s32.totalorder %v6291_v60, %v5236_v31  ;;  %v6485_v31 = vld [vmem:[#allocation96_spill] sm:$0xff] }
 0x258   :  { %v2100_v2 = vsel %vm2084_vm0, %v6471_v47, 0.0  ;;  %v2101_v59 = vsel %vm2085_vm14, %v6472_v25, 0.0  ;;  %v2102_v18 = vsel %vm2086_vm13, %v6472_v25, 0.0  ;;  %v2107_v62 = vadd.f32 %v2093_v48, %v2091_v21 }
 0x259   :  { %v2103_v41 = vsel %vm2087_vm12, %v6473_v23, 0.0  ;;  %v2104_v22 = vsel %vm2088_vm7, %v6473_v23, 0.0  ;;  %v2120_v39 = vadd.f32 %v2094_v36, %v2092_v45  ;;  %vm1798_vm11 = vcmp.eq.f32.partialorder %v6474_v37, %v5210_v14 }
 0x25a   :  { %v1803_v9 = vsel %vm1787_vm2, %v6257_v7, 64  ;;  %vm2090_vm13 = vcmp.eq.s32.totalorder %v6291_v60, %v5282_v53  ;;  %v2108_v21 = vadd.f32 %v2107_v62, %v2095_v4  ;;  %vm6475_vm0 = vcmp.eq.f32.partialorder %v6387_v57, %v5210_v14 }
 0x25b   :  { %v1804_v48 = vsel %vm6475_vm0, %v6257_v7, 64  ;;  %vm6476_vm7 = vcmp.eq.f32.partialorder %v6457_v33, %v5195_v26  ;;  %vm6477_vm1 = vcmp.eq.f32.partialorder %v6458_v46, %v5210_v14  ;;  %v2121_v36 = vadd.f32 %v2120_v39, %v2096_v63 }
 0x25c   :  { %v1805_v45 = vsel %vm6476_vm7, %v6262_v11, 64  ;;  %v1806_v13 = vsel %vm6477_vm1, %v6262_v11, 64  ;;  %vm6478_vm2 = vcmp.eq.f32.partialorder %v6459_v58, %v5195_v26  ;;  %vm6479_vm3 = vcmp.eq.f32.partialorder %v6460_v17, %v5210_v14 }
 0x25d   :  { %v1807_v4 = vsel %vm6478_vm2, %v6269_v5, 64  ;;  %v1808_v57 = vsel %vm6479_vm3, %v6269_v5, 64  ;;  %vm6480_vm14 = vcmp.eq.f32.partialorder %v6461_v32, %v5195_v26  ;;  %v2109_v62 = vadd.f32 %v2108_v21, %v2097_v29 }
 0x25e   :  { %v1809_v33 = vsel %vm6480_vm14, %v6289_v28, 64  ;;  %vm6481_vm5 = vcmp.eq.f32.partialorder %v6463_v3, %v5210_v14  ;;  %vm6482_vm10 = vcmp.eq.f32.partialorder %v6464_v30, %v5195_v26  ;;  %vm6483_vm9 = vcmp.eq.f32.partialorder %v6465_v54, %v5210_v14 }
 0x25f   :  { %v1810_v46 = vsel %vm6481_vm5, %v6289_v28, 64  ;;  %v1811_v58 = vsel %vm6482_vm10, %v6290_v40, 64  ;;  %v1812_v17 = vsel %vm6483_vm9, %v6290_v40, 64  ;;  %v2122_v63 = vadd.f32 %v2121_v36, %v2098_v51 }
 0x260   :  { %vm1815_vm8 = vcmp.lt.s32.totalorder %v1799_v8, %v1803_v9  ;;  %vm1817_vm12 = vcmp.lt.s32.totalorder %v1801_v19, %v1805_v45  ;;  %vm1838_vm6 = vcmp.lt.s32.totalorder %v1800_v42, %v1804_v48  ;;  %v2110_v32 = vadd.f32 %v2109_v62, %v2099_v12  ;;  %v6484_v12 = vld [vmem:[#allocation33_spill] sm:$0xff] }
 0x261   :  { %v1816_v29 = vsel %vm1815_vm8, %v1799_v8, %v1803_v9  ;;  %v1818_v39 = vsel %vm1817_vm12, %v1801_v19, %v1805_v45  ;;  %v1839_v21 = vsel %vm1838_vm6, %v1800_v42, %v1804_v48  ;;  %v2123_v3 = vadd.f32 %v2122_v63, %v2100_v2  ;;  %v6488_v63 = vld [vmem:[#allocation132_spill] sm:$0xff] }
 0x262   :  { %vm1819_vm0 = vcmp.lt.s32.totalorder %v1816_v29, %v1807_v4  ;;  %vm1821_vm7 = vcmp.lt.s32.totalorder %v1818_v39, %v1809_v33  ;;  %vm1840_vm1 = vcmp.lt.s32.totalorder %v5274_v6, %v1806_v13  ;;  %v1813_v30 = vsel %vm1797_vm15, %v6291_v60, 64 }
 0x263   :  { %v1820_v54 = vsel %vm1819_vm0, %v1816_v29, %v1807_v4  ;;  %v1822_v38 = vsel %vm1821_vm7, %v1818_v39, %v1809_v33  ;;  %v1841_v51 = vsel %vm1840_vm1, %v5274_v6, %v1806_v13  ;;  %v2111_v36 = vadd.f32 %v2110_v32, %v2101_v59  ;;  %v6486_v33 = vld [vmem:[#allocation82_spill] sm:$0xff] }
 0x264   :  { %vm1823_vm2 = vcmp.lt.s32.totalorder %v1820_v54, %v1811_v58  ;;  %vm1825_vm3 = vcmp.lt.s32.totalorder %v1822_v38, %v1813_v30  ;;  %vm1842_vm14 = vcmp.lt.s32.totalorder %v1839_v21, %v1808_v57  ;;  %v2124_v9 = vadd.f32 %v2123_v3, %v2102_v18  ;;  %v6489_v3 = vld [vmem:[#allocation134_spill] sm:$0xff] }
 0x265   :  { %v1824_v8 = vsel %vm1823_vm2, %v1820_v54, %v1811_v58  ;;  %v1826_v42 = vsel %vm1825_vm3, %v1822_v38, %v1813_v30  ;;  %v1843_v19 = vsel %vm1842_vm14, %v1839_v21, %v1808_v57  ;;  %v2105_v2 = vsel %vm2089_vm4, %v6484_v12, 0.0  ;;  %v6490_v30 = vld [vmem:[#allocation84_spill] sm:$0xff]  ;;  %v6491_v54 = vld [vmem:[#allocation17_spill] sm:$0xff] }
 0x266   :  { %vm1827_vm5 = vcmp.lt.s32.totalorder %v1824_v8, %v1826_v42  ;;  %vm1844_vm10 = vcmp.lt.s32.totalorder %v1841_v51, %v1810_v46  ;;  %vm1846_vm15 = vcmp.lt.s32.totalorder %v1843_v19, %v1812_v17  ;;  %v1814_v6 = vsel %vm1798_vm11, %v6291_v60, 64 }
 0x267   :  { %v1828_v44 = vsel %vm1827_vm5, %v1824_v8, %v1826_v42  ;;  %v1845_v59 = vsel %vm1844_vm10, %v1841_v51, %v1810_v46  ;;  %v1847_v48 = vsel %vm1846_vm15, %v1843_v19, %v1812_v17  ;;  %v2106_v38 = vsel %vm2090_vm13, %v6484_v12, 0.0  ;;  %v6487_v46 = vld [vmem:[#allocation131_spill] sm:$0xff]  ;;  %v6492_v51 = vld [vmem:[#allocation85_spill] sm:$0xff] }
 0x268   :  { %v1829_v18 = vrot.slane %v1828_v44, 4  ;;  %vm1848_vm9 = vcmp.lt.s32.totalorder %v1845_v59, %v1814_v6  ;;  %v630_v45 = vrot.slane %v6485_v31, 2  ;;  %v2112_v13 = vadd.f32 %v2111_v36, %v2103_v41 }
 0x269   :  { %v2125_v4 = vadd.f32 %v2124_v9, %v2104_v22  ;;  %v1849_v57 = vsel %vm1848_vm9, %v1845_v59, %v1814_v6  ;;  %v643_v62 = vrot.slane %v6486_v33, 2  ;;  %vm647_vm11 = vcmp.lt.f32.partialorder %v6487_v46, inf }
 0x26a   :  { %vm1830_vm4 = vcmp.lt.s32.totalorder %v1828_v44, %v1829_v18  ;;  %vm1850_vm8 = vcmp.lt.s32.totalorder %v1847_v48, %v1849_v57  ;;  %v631_v37 = vadd.f32 %v630_v45, %v6485_v31  ;;  %vm648_vm13 = vcmp.lt.f32.partialorder %v6488_v63, inf  ;;  %v6493_v31 = vld [vmem:[#allocation101_spill] sm:$0xff] }
 0x26b   :  { %v1831_v58 = vsel %vm1830_vm4, %v1828_v44, %v1829_v18  ;;  %v1851_v17 = vsel %vm1850_vm8, %v1847_v48, %v1849_v57  ;;  %v644_v53 = vadd.f32 %v643_v62, %v6486_v33  ;;  %v912_v41 = vrot.slane %v5215_v50, 1  ;;  %v6494_v57 = vld [vmem:[#allocation102_spill] sm:$0xff] }
 0x26c   :  { %v1832_v32 = vrot.slane %v1831_v58, 2  ;;  %v1852_v29 = vrot.slane %v1851_v17, 4  ;;  %v632_v39 = vrot.slane %v631_v37, 1  ;;  %v925_v21 = vrot.slane %v5220_v61, 1 }
 0x26d   :  { %v645_v22 = vrot.slane %v644_v53, 1  ;;  %vm927_vm12 = vcmp.lt.f32.partialorder %v6490_v30, %v6489_v3  ;;  %vm928_vm6 = vcmp.lt.f32.partialorder %v6492_v51, %v6491_v54  ;;  %v913_v9 = vadd.f32 %v912_v41, %v5215_v50 }
 0x26e   :  { %vm1833_vm0 = vcmp.lt.s32.totalorder %v1831_v58, %v1832_v32  ;;  %vm1853_vm7 = vcmp.lt.s32.totalorder %v1851_v17, %v1852_v29  ;;  %v633_v36 = vadd.f32 %v632_v39, %v631_v37  ;;  %v926_v6 = vadd.f32 %v925_v21, %v5220_v61 }
 0x26f   :  { %v1834_v8 = vsel %vm1833_vm0, %v1831_v58, %v1832_v32  ;;  %v1854_v42 = vsel %vm1853_vm7, %v1851_v17, %v1852_v29  ;;  %v646_v19 = vadd.f32 %v645_v22, %v644_v53  ;;  %v5425_v18 = vsel %vm927_vm12, %v6490_v30, %v6489_v3  ;;  %v6495_v53 = vld [vmem:[#allocation36_spill] sm:$0xff]  ;;  %v6496_v32 = vld [vmem:[#allocation55_spill] sm:$0xff] }
 0x270   :  { %v1835_v44 = vrot.slane %v1834_v8, 1  ;;  %v1855_v59 = vrot.slane %v1854_v42, 2  ;;  %v5418_v48 = vsel %vm647_vm11, %v633_v36, 0.0  ;;  %v5436_v61 = vsel %vm928_vm6, %v6492_v51, %v6491_v54 }
 0x271   :  { %v5429_v50 = vsel %vm648_vm13, %v646_v19, 0.0  ;;  %v5442_v45 = vsel %vm927_vm12, %v913_v9, %v6493_v31  ;;  %v5448_v33 = vsel %vm928_vm6, %v926_v6, %v6494_v57  ;;  %v5453_v62 = vsel %vm647_vm11, %v6487_v46, inf }
 0x272   :  { %vm1836_vm1 = vcmp.lt.s32.totalorder %v1834_v8, %v1835_v44  ;;  %vm1856_vm2 = vcmp.lt.s32.totalorder %v1854_v42, %v1855_v59  ;;  %v5458_v37 = vsel %vm648_vm13, %v6488_v63, inf  ;;  %vm1143_vm3 = vcmp.lt.f32.partialorder %v6495_v53, %v5453_v62 }
 0x273   :  { %v5460_v58 = vsel %vm1836_vm1, %v1834_v8, %v1835_v44  ;;  %v1857_v17 = vsel %vm1856_vm2, %v1854_v42, %v1855_v59  ;;  %vm1144_vm14 = vcmp.lt.f32.partialorder %v6496_v32, %v5458_v37  ;;  %v5466_v29 = vadd.f32 %v2112_v13, %v2105_v2  ;;  %v6498_v42 = vld [vmem:[#allocation62_spill] sm:$0xff]  ;;  %v6499_v59 = vld [vmem:[#allocation63_spill] sm:$0xff] }
 0x274   :  { %v1858_v39 = vrot.slane %v1857_v17, 1  ;;  %vm1861_vm5 = vcmp.eq.s32.totalorder %v6462_v34, %v5460_v58  ;;  %vm1863_vm10 = vcmp.eq.s32.totalorder %v6195_v49, %v5460_v58  ;;  %v5472_v46 = vadd.f32 %v2125_v4, %v2106_v38 }
 0x275   :  { %vm1865_vm15 = vcmp.eq.s32.totalorder %v6257_v7, %v5460_v58  ;;  %v1126_v63 = vrot.slane %v5200_v52, 2  ;;  %v1139_v41 = vrot.slane %v5205_v20, 2  ;;  %vm1867_vm4 = vcmp.eq.s32.totalorder %v6262_v11, %v5460_v58 }
 0x276   :  { %vm1859_vm9 = vcmp.lt.s32.totalorder %v1857_v17, %v1858_v39  ;;  %vm1869_vm8 = vcmp.eq.s32.totalorder %v6269_v5, %v5460_v58  ;;  %vm1871_vm11 = vcmp.eq.s32.totalorder %v6289_v28, %v5460_v58  ;;  %vm1873_vm13 = vcmp.eq.s32.totalorder %v6290_v40, %v5460_v58 }
 0x277   :  { %v5484_v2 = vsel %vm1859_vm9, %v1857_v17, %v1858_v39  ;;  %v1877_v38 = vsel %vm1861_vm5, %v6466_v56, 0.0  ;;  %v1879_v13 = vsel %vm1863_vm10, %v6467_v0, 0.0  ;;  %v1883_v21 = vsel %vm1867_vm4, %v6470_v43, 0.0 }
 0x278   :  { %vm1862_vm12 = vcmp.eq.s32.totalorder %v6462_v34, %v5484_v2  ;;  %vm1864_vm6 = vcmp.eq.s32.totalorder %v6195_v49, %v5484_v2  ;;  %vm1866_vm0 = vcmp.eq.s32.totalorder %v6257_v7, %v5484_v2  ;;  %vm1868_vm7 = vcmp.eq.s32.totalorder %v6262_v11, %v5484_v2 }
 0x279   :  { %vm1870_vm1 = vcmp.eq.s32.totalorder %v6269_v5, %v5484_v2  ;;  %vm1872_vm2 = vcmp.eq.s32.totalorder %v6289_v28, %v5484_v2  ;;  %vm1874_vm5 = vcmp.eq.s32.totalorder %v6290_v40, %v5484_v2  ;;  %v1881_v49 = vsel %vm1865_vm15, %v6469_v27, 0.0 }
 0x27a   :  { %v1878_v4 = vsel %vm1862_vm12, %v6466_v56, 0.0  ;;  %v1880_v22 = vsel %vm1864_vm6, %v6467_v0, 0.0  ;;  %v1885_v3 = vsel %vm1869_vm8, %v6471_v47, 0.0  ;;  %v1882_v30 = vsel %vm1866_vm0, %v6469_v27, 0.0 }
 0x27b   :  { %v1884_v54 = vsel %vm1868_vm7, %v6470_v43, 0.0  ;;  %v1886_v7 = vsel %vm1870_vm1, %v6471_v47, 0.0  ;;  %v1887_v56 = vsel %vm1871_vm11, %v6472_v25, 0.0  ;;  %vm1875_vm10 = vcmp.eq.s32.totalorder %v6291_v60, %v5460_v58 }
 0x27c   :  { %vm1876_vm15 = vcmp.eq.s32.totalorder %v6291_v60, %v5484_v2  ;;  %v1888_v11 = vsel %vm1872_vm2, %v6472_v25, 0.0  ;;  %v1889_v5 = vsel %vm1873_vm13, %v6473_v23, 0.0  ;;  %v1890_v0 = vsel %vm1874_vm5, %v6473_v23, 0.0 }
 0x27d   :  { %v1893_v27 = vadd.f32 %v1879_v13, %v1877_v38  ;;  %v1906_v43 = vadd.f32 %v1880_v22, %v1878_v4  ;;  %v1127_v28 = vadd.f32 %v1126_v63, %v5200_v52  ;;  %v1140_v47 = vadd.f32 %v1139_v41, %v5205_v20 }
 0x27e   :  { %v1145_v51 = vsel %vm1143_vm3, %v6495_v53, %v5453_v62  ;;  %v1146_v40 = vsel %vm1144_vm14, %v6496_v32, %v5458_v37  ;;  %v1407_v23 = vadd.f32 %v1406_v55, %v5207_v1  ;;  %v6497_v52 = vrot.slane %v5217_v10, 2  ;;  %v6502_v37 = vld [vmem:[#allocation97_spill] sm:$0xff] }
 0x27f   :  { %v1894_v25 = vadd.f32 %v1893_v27, %v1881_v49  ;;  %v1907_v36 = vadd.f32 %v1906_v43, %v1882_v30  ;;  %v1128_v9 = vrot.slane %v1127_v28, 1  ;;  %v1141_v8 = vrot.slane %v1140_v47, 1 }
 0x280   :  { %v1420_v20 = vadd.f32 %v6497_v52, %v5217_v10  ;;  %vm1423_vm9 = vcmp.lt.f32.partialorder %v6498_v42, %v5425_v18  ;;  %v1408_v6 = vrot.slane %v1407_v23, 1  ;;  %vm1424_vm4 = vcmp.lt.f32.partialorder %v6499_v59, %v5436_v61 }
 0x281   :  { %v1895_v19 = vadd.f32 %v1894_v25, %v1883_v21  ;;  %v1908_v31 = vadd.f32 %v1907_v36, %v1884_v54  ;;  %v1129_v57 = vadd.f32 %v1128_v9, %v1127_v28  ;;  %v1142_v17 = vadd.f32 %v1141_v8, %v1140_v47  ;;  %v6504_v9 = vld [vmem:[#allocation24_spill] sm:$0xff] }
 0x282   :  { %v1421_v44 = vrot.slane %v1420_v20, 1  ;;  %v5562_v1 = vsel %vm1423_vm9, %v6498_v42, %v5425_v18  ;;  %v1409_v55 = vadd.f32 %v1408_v6, %v1407_v23  ;;  %v5566_v63 = vsel %vm1424_vm4, %v6499_v59, %v5436_v61 }
 0x283   :  { %v1896_v10 = vadd.f32 %v1895_v19, %v1885_v3  ;;  %v1909_v41 = vadd.f32 %v1908_v31, %v1886_v7  ;;  %v1147_v38 = vsel %vm1143_vm3, %v1129_v57, %v5418_v48  ;;  %v1148_v13 = vsel %vm1144_vm14, %v1142_v17, %v5429_v50  ;;  %v6503_v50 = vld [vmem:[#allocation98_spill] sm:$0xff] }
 0x284   :  { %v1422_v39 = vadd.f32 %v1421_v44, %v1420_v20  ;;  %v6500_v49 = vrot.slane %v5189_v16, 4  ;;  %v1427_v61 = vsel %vm1423_vm9, %v1409_v55, %v5442_v45  ;;  %v6501_v48 = vrot.slane %v5192_v15, 4 }
 0x285   :  { %v1897_v22 = vadd.f32 %v1896_v10, %v1887_v56  ;;  %v1910_v53 = vadd.f32 %v1909_v41, %v1888_v11  ;;  %vm1639_vm3 = vcmp.lt.f32.partialorder %v6502_v37, %v1145_v51  ;;  %vm1640_vm14 = vcmp.lt.f32.partialorder %v6503_v50, %v1146_v40 }
 0x286   :  { %v1621_v4 = vadd.f32 %v6500_v49, %v5189_v16  ;;  %v1428_v21 = vsel %vm1424_vm4, %v1422_v39, %v5448_v33  ;;  %v1634_v62 = vadd.f32 %v6501_v48, %v5192_v15  ;;  %v1641_v30 = vsel %vm1639_vm3, %v6502_v37, %v1145_v51  ;;  %v6505_v48 = vld [vmem:[#allocation23_spill] sm:$0xff] }
 0x287   :  { %v1898_v32 = vadd.f32 %v1897_v22, %v1889_v5  ;;  %v1642_v18 = vsel %vm1640_vm14, %v6503_v50, %v1146_v40  ;;  %v1891_v15 = vsel %vm1875_vm10, %v6484_v12, 0.0  ;;  %v1892_v45 = vsel %vm1876_vm15, %v6484_v12, 0.0 }
 0x288   :  { %v1622_v3 = vrot.slane %v1621_v4, 2  ;;  %v1635_v16 = vrot.slane %v1634_v62, 2  ;;  %v1911_v33 = vadd.f32 %v1910_v53, %v1890_v0  ;;  %v2114_v11 = vrot.slane %v5466_v29, 4 }
 0x289   :  { %v1899_v7 = vadd.f32 %v1898_v32, %v1891_v15  ;;  %v2127_v5 = vrot.slane %v5472_v46, 4  ;;  %vm2133_vm8 = vcmp.lt.f32.partialorder %v4981_v24, %v1641_v30  ;;  %vm2134_vm11 = vcmp.lt.f32.partialorder %v4986_v35, %v1642_v18 }
 0x28a   :  { %v1623_v54 = vadd.f32 %v1622_v3, %v1621_v4  ;;  %v1636_v56 = vadd.f32 %v1635_v16, %v1634_v62  ;;  %v1912_v27 = vadd.f32 %v1911_v33, %v1892_v45  ;;  %v2115_v47 = vadd.f32 %v2114_v11, %v5466_v29  ;;  %v6506_v3 = vld [vmem:[#allocation26_spill] sm:$0xff] }
 0x28b   :  { %v1900_v58 = vrot.slane %v1899_v7, 4  ;;  %v2128_v60 = vadd.f32 %v2127_v5, %v5472_v46  ;;  %2351 = vlog2.f32 %v6504_v9  ;;  %vm1919_vm13 = vcmp.lt.f32.partialorder %v5195_v26, %v5562_v1  ;;  %v28_v5 = vld [vmem:[%s5645_s0] ss:$4 sm:$0x3] }
 0x28c   :  { %v1624_v43 = vrot.slane %v1623_v54, 1  ;;  %v1637_v28 = vrot.slane %v1636_v56, 1  ;;  %v1913_v12 = vrot.slane %v1912_v27, 4  ;;  %v2116_v23 = vrot.slane %v2115_v47, 2 }
 0x28d   :  { %v1901_v0 = vadd.f32 %v1900_v58, %v1899_v7  ;;  %v2129_v52 = vrot.slane %v2128_v60, 2  ;;  %vm1920_vm12 = vcmp.lt.f32.partialorder %v5210_v14, %v5566_v63  ;;  %v2396_v24 = vmov 1966171168  }
 0x28e   :  { %v1625_v2 = vadd.f32 %v1624_v43, %v1623_v54  ;;  %v1638_v25 = vadd.f32 %v1637_v28, %v1636_v56  ;;  %v1914_v20 = vadd.f32 %v1913_v12, %v1912_v27  ;;  %v2117_v19 = vadd.f32 %v2116_v23, %v2115_v47 }
 0x28f   :  { %v1902_v42 = vrot.slane %v1901_v0, 2  ;;  %v2130_v29 = vadd.f32 %v2129_v52, %v2128_v60  ;;  %v2147_v22 = vunpack.c.l.s4 %v2396_v24  ;;  %vm40_vm6 = vcmp.eq.f32.partialorder %v28_v5, 0.0 }
 0x290   :  { %v1643_v36 = vsel %vm1639_vm3, %v1625_v2, %v1147_v38  ;;  %v1644_v8 = vsel %vm1640_vm14, %v1638_v25, %v1148_v13  ;;  %v1915_v6 = vrot.slane %v1914_v20, 2  ;;  %v2118_v44 = vrot.slane %v2117_v19, 1 }
 0x291   :  { %v1903_v46 = vadd.f32 %v1902_v42, %v1901_v0  ;;  %v2131_v59 = vrot.slane %v2130_v29, 1  ;;  %v2148_v53 = vunpack.c.0.s8 %v2147_v22  ;;  %vm39_vm0 = vcmp.eq.f32.partialorder %v28_v5, 1.0 }
 0x292   :  { %v1916_v31 = vadd.f32 %v1915_v6, %v1914_v20  ;;  %v2119_v17 = vadd.f32 %v2118_v44, %v2117_v19  ;;  %vm2217_vm7 = vcmask 1040384  }
 0x293   :  { %v1904_v57 = vrot.slane %v1903_v46, 1  ;;  %v2132_v10 = vadd.f32 %v2131_v59, %v2130_v29 }
 0x294   :  { %v1917_v55 = vrot.slane %v1916_v31, 1  ;;  %v2135_v51 = vsel %vm2133_vm8, %v2119_v17, %v1643_v36 }
 0x295   :  { %v1905_v39 = vadd.f32 %v1904_v57, %v1903_v46  ;;  %v2136_v40 = vsel %vm2134_vm11, %v2132_v10, %v1644_v8  ;;  %2353 = vlog2.f32 %v2135_v51  ;;  %v2352_v13 = vpop.eup %2351 }
 0x296   :  { %v1918_v41 = vadd.f32 %v1917_v55, %v1916_v31  ;;  %2355 = vlog2.f32 %v2136_v40  ;;  %v2138_v4 = vmul.f32 0.6931472, %v2352_v13 }
 0x297   :  { %v1921_v38 = vsel %vm1919_vm13, %v1905_v39, %v1427_v61 }
 0x298   :  { %v1922_v49 = vsel %vm1920_vm12, %v1918_v41, %v1428_v21  ;;  %2357 = vlog2.f32 %v1921_v38  ;;  %v2172_v35 = vrot.slane %v2138_v4, %v6505_v48  ;;  %v2176_v37 = vrot.slane %v2138_v4, %v6506_v3 }
 0x299   :  { %2359 = vlog2.f32 %v1922_v49  ;;  %v2151_v21 = vsub.s32 %v2148_v53, %v6462_v34  ;;  %v2253_v34 = vld [vmem:[%s5645_s0 + $0x2] ss:$4 sm:$0x3]  ;;  %s2230_s0 = sld [smem:[#allocation2]] }
 0x29f   :  { %v2354_v62 = vpop.eup %2353  ;;  %p2231_p5 = scmp.gt.f32.partialorder %s2230_s0, 0.5 }
 0x2a0   :  { %v2356_v26 = vpop.eup %2355  ;;  %v2165_v1 = vmul.f32 0.6931472, %v2354_v62 }
 0x2a1   :  { %v2167_v32 = vmul.f32 0.6931472, %v2356_v26 }
 0x2a2   :  { %v2358_v50 = vpop.eup %2357  ;;  %v2179_v61 = vsub.f32 %v2165_v1, %v2172_v35 }
 0x2a3   :  { %v2360_v14 = vpop.eup %2359  ;;  %v2140_v63 = vmul.f32 0.6931472, %v2358_v50  ;;  %v2180_v30 = vsub.f32 %v2167_v32, %v2176_v37 }
 0x2a4   :  { %v2142_v16 = vmul.f32 0.6931472, %v2360_v14  ;;  %v2181_v18 = vsub.f32 0.0, %v2179_v61 }
 0x2a5   :  { %v2182_v45 = vsub.f32 0.0, %v2180_v30 }
 0x2a6   :  { %v2145_v15 = vcombine.low %v2140_v63, %v2142_v16  ;;  %v2183_v33 = vmax.f32 %v2181_v18, 0.0 }
 0x2a7   :  { %v2184_v7 = vmax.f32 %v2182_v45, 0.0 }
 0x2a8   :  { %v2152_v54 = vrot.slane %v2145_v15, %v2151_v21 }
 0x2a9   :  { %v2187_v11 = vcombine.low %v2183_v33, %v2184_v7 }
 0x2aa   :  { %v2159_v56 = vrot.slane %v2152_v54, %v2151_v21 }
 0x2ab   :  { %v2194_v43 = vrot.slane %v2187_v11, %v2151_v21 }
 0x2ac   :  { %v2161_v27 = vsub.f32 %v2138_v4, %v2159_v56 }
 0x2ad   :  { %v2201_v28 = vrot.slane %v2194_v43, %v2151_v21 }
 0x2ae   :  { %v2162_v58 = vsub.f32 0.0, %v2161_v27 }
 0x2af   :  { %v2203_v60 = vsel %vm40_vm6, %v2201_v28, 0.0 }
 0x2b0   :  { %v2163_v47 = vmax.f32 %v2162_v58, 0.0 }
 0x2b2   :  { %v2204_v12 = vsel %vm39_vm0, %v2163_v47, %v2203_v60 }
 0x2b3   :  { %v2205_v2 = vmul.f32 %v2253_v34, %v2204_v12 }
 0x2b5   :  { %v2210_v0 = vrot.slane %v2205_v2, %v6505_v48  ;;  %v2214_v25 = vrot.slane %v2205_v2, %v6506_v3 }
 0x2b7   :  { %v2218_v23 = vsel %vm2217_vm7, %v2210_v0, 0.0  ;;  %v2219_v52 = vsel %vm2217_vm7, %v2214_v25, 0.0 }
 0x2b8   :  { %v2220_v20 = vadd.f32 %v2219_v52, %v2218_v23 }
 0x2ba   :  { %2221 = vadd.xlane.f32.xlu1 %v2220_v20 }
 0x347   :  { %v2222_v36 = vpop.xlane.xlu1 %2221 }
 0x348   :  { %v2223_v9 = vrot.slane %v2222_v36, 4 }
 0x34a   :  { %v2224_v8 = vadd.f32 %v2223_v9, %v2222_v36 }
 0x34c   :  { %v2225_v42 = vrot.slane %v2224_v8, 2 }
 0x34e   :  { %v2226_v19 = vadd.f32 %v2225_v42, %v2224_v8 }
 0x350   :  { %v2227_v29 = vrot.slane %v2226_v19, 1 }
 0x352   :  { %v2228_v6 = vadd.f32 %v2227_v29, %v2226_v19 }
 0x354   :  { %2263 = vpush %v2228_v6 }
 0x385   :  { %s2264_s11 = spop %2263 }
 0x386   :  { %s6508_s11 = smov (%p2231_p5, %s2264_s11), 0.0 }
 0x387   :  { %s2234_s12 = sadd.f32 %s2262_s10, %s6508_s11 }
 0x389   :  { %2236 = sst [smem:[#allocation5]] %s2234_s12 }
 0x38a   :  { %2382 = shalt.err (!%p2379_p8)
}
 0x38b   :  { %s2397_s2 = smov [#allocation5]  }
 0x38c   :  { %2244 = dma.smem_to_hbm %s2397_s2, 16, %s5648_s3, [#allocation3]  }
 0x38d   :  { %2385 = dma.done.wait [#allocation3], 16  }
 0x38e   :  { %2386 = vsyncadd [#allocation3], 4294967280 }
 0x38f   :  { %2248 = sfence }
 0x390   :  { %2249 = vsyncpa [#allocation3], 1 }
 0x391   :  { %2250 = vsyncpa [#allocation4], 1 }

</bundles_post_ra>
